<compile_context>
chip_gen: v7x
topology: tpu7x:2x2x1
jax: 0.10.0
libtpu: 0.0.40
codegen_flags: <defaults>
</compile_context>

<pallas_src>
import math

import jax
import jax.numpy as jnp
from jax.experimental import pallas as pl
from jax.experimental.pallas import tpu as pltpu

_LANE = 128  # TPU vreg lane width


# ------------------------------- small helpers ------------------------------ #
def _round_up(n, m):
    return ((n + m - 1) // m) * m


def _pad_weight(W):
    """(d_in, d_out) f32 -> lane-padded bf16 (exact under Linear+ReLU: pad rows are 0)."""
    d_in, d_out = W.shape
    Kp, Np = _round_up(d_in, _LANE), _round_up(d_out, _LANE)
    return jnp.pad(W, ((0, Kp - d_in), (0, Np - d_out))).astype(jnp.bfloat16)


def _pad_bias(b):
    """(1, d_out) f32 -> lane-padded f32 row (added post-accumulate in f32)."""
    b = b.reshape(1, -1).astype(jnp.float32)
    d_out = b.shape[1]
    return jnp.pad(b, ((0, 0), (0, _round_up(d_out, _LANE) - d_out)))


def _chip_heuristics():
    """Best-effort generation sniffing; conservative defaults if probing fails."""
    vmem_bytes = 64 * 1024 * 1024        # conservative default: v7x per-TC VMEM
    mxu_dim = 256                        # v6e/v7x MXU height
    try:
        vmem_bytes = int(pltpu.get_tpu_info().vmem_capacity_bytes)
    except Exception:
        pass
    try:
        kind = jax.devices()[0].device_kind.lower()
        if "v5" in kind or "v4" in kind:
            mxu_dim = 128                # v5e: 4x(128x128) MXU -> tm=128 fills M
    except Exception:
        pass
    # v7x has 64 MiB/TC and two TensorCores sharing the parallel grid axis.
    two_tc = vmem_bytes <= 96 * 1024 * 1024
    return vmem_bytes, mxu_dim, two_tc


def _choose_tm(batch, mxu_dim, two_tc):
    if mxu_dim <= 128:
        tm = 128                         # v5e
    elif batch >= 1024:
        tm = 512                         # amortize per-step overhead on big batches
    elif batch >= 192:
        tm = 256                         # fill the 256-tall v6e/v7x MXU
    else:
        tm = 128
    if two_tc:
        # Keep >= 2 batch tiles when possible so v7x's second TensorCore gets work.
        while tm > 128 and pl.cdiv(batch, tm) < 2:
            tm //= 2
    return tm


def _resident_spec(shape, single_buffered):
    """Constant index_map keeps this block VMEM-resident across grid steps;
    Buffered(1) avoids allocating a useless second buffer for it."""
    if single_buffered:
        return pl.BlockSpec(shape, lambda i: (0, 0), pipeline_mode=pl.Buffered(1))
    return pl.BlockSpec(shape, lambda i: (0, 0))


# ------------------------------- Pallas kernel ------------------------------ #
def _make_fcnet_kernel(num_layers):
    """Fused ReLU-chain of bf16 matmuls with f32 accumulation for one batch tile."""

    def kernel(*refs):
        x_ref, out_ref = refs[0], refs[-1]
        # f32 tile straight from HBM; cast to bf16 on the VPU (hidden under the MXU).
        h = x_ref[...].astype(jnp.bfloat16)
        y = None
        for l in range(num_layers):
            w_ref = refs[1 + 2 * l]
            b_ref = refs[2 + 2 * l]
            y = jnp.dot(h, w_ref[...], preferred_element_type=jnp.float32) + b_ref[...]
            if l < num_layers - 1:       # ReLU on all but the last layer
                h = jnp.maximum(y, 0.0).astype(jnp.bfloat16)
        # f32 writeback kept for fidelity; cast to bf16 here if downstream allows.
        out_ref[...] = y

    return kernel


# -------------------------------- forward class ----------------------------- #
class FCNetPallas:
    """FCNet forward with one-time (hoisted) weight prep and cached jitted kernels."""

    def __init__(self, params):
        self.layer_dims = tuple((int(W.shape[0]), int(W.shape[1])) for W, _ in params)
        self.dim_input = self.layer_dims[0][0]
        self.num_classes = self.layer_dims[-1][1]
        # Hoisted: pad + bf16-cast all weights exactly once (not per forward call).
        flat = []
        for W, b in params:
            flat.append(_pad_weight(W))
            flat.append(_pad_bias(b))
        self.flat_params = tuple(flat)
        self.vmem_bytes, self.mxu_dim, self.two_tc = _chip_heuristics()
        self._fns = {}                   # batch size -> compiled jitted forward

    def __call__(self, img):
        assert math.prod(img.shape[1:]) == self.dim_input, "flattened dim mismatch"
        B = int(img.shape[0])
        fn = self._fns.get(B)
        if fn is not None:
            return fn(img, *self.flat_params)
        fn, out = self._compile(B, img)
        self._fns[B] = fn
        return out

    def _compile(self, B, img):
        # Prefer single-buffered resident weights (halves their VMEM footprint);
        # fall back to default buffering if this build rejects Buffered(1).
        try:
            fn = self._build(B, resident_buffered=True)
            return fn, fn(img, *self.flat_params)
        except Exception:
            fn = self._build(B, resident_buffered=False)
            return fn, fn(img, *self.flat_params)

    def _build(self, B, resident_buffered):
        dims = self.layer_dims
        num_layers = len(dims)
        Kp = _round_up(dims[0][0], _LANE)
        Cp = _round_up(dims[-1][1], _LANE)
        dim_input, num_classes = self.dim_input, self.num_classes

        wbuf = 1 if resident_buffered else 2
        budget = int(self.vmem_bytes * 0.85)   # ~109 MiB on v5e/v6e, ~54 MiB on v7x

        def footprint(tm_):
            w_bytes = sum(_round_up(di, _LANE) * _round_up(do, _LANE) * 2
                          for di, do in dims) * wbuf
            b_bytes = sum(8 * _round_up(do, _LANE) * 4 for _, do in dims) * wbuf
            x_bytes = tm_ * Kp * 4 * 2            # double-buffered f32 input tile
            o_bytes = tm_ * Cp * 4 * 2            # double-buffered f32 output tile
            h_bytes = tm_ * max(_round_up(do, _LANE) for _, do in dims) * 8
            return w_bytes + b_bytes + x_bytes + o_bytes + h_bytes

        tm = _choose_tm(B, self.mxu_dim, self.two_tc)
        while tm > 128 and footprint(tm) > budget:
            tm //= 2                              # shrink only if VMEM budget overflows
        n_tiles = pl.cdiv(B, tm)
        Bp = n_tiles * tm
        vmem_limit = min(budget, max(32 << 20, int(footprint(tm) * 1.25) + (4 << 20)))
        # TODO(synk): for widths where resident weights alone blow the v7x budget,
        #             tile the width-x-width layers over an N grid axis instead.

        kernel = _make_fcnet_kernel(num_layers)

        in_specs = [pl.BlockSpec((tm, Kp), lambda i: (i, 0))]
        for d_in, d_out in dims:
            kpi, npi = _round_up(d_in, _LANE), _round_up(d_out, _LANE)
            in_specs.append(_resident_spec((kpi, npi), resident_buffered))
            in_specs.append(_resident_spec((1, npi), resident_buffered))
        out_spec = pl.BlockSpec((tm, Cp), lambda i: (i, 0))

        pallas_fn = pl.pallas_call(
            kernel,
            out_shape=jax.ShapeDtypeStruct((Bp, Cp), jnp.float32),
            grid=(n_tiles,),
            in_specs=in_specs,
            out_specs=out_spec,
            compiler_params=pltpu.CompilerParams(
                dimension_semantics=("parallel",),
                vmem_limit_bytes=vmem_limit,
            ),
        )

        def forward(img, *flat_params):
            # img.view(B, -1); stays f32 — the bf16 cast happens inside the kernel.
            x = img.reshape(img.shape[0], -1).astype(jnp.float32)
            if Bp != B or Kp != dim_input:
                x = jnp.pad(x, ((0, Bp - B), (0, Kp - dim_input)))
            out = pallas_fn(x, *flat_params)
            return out[:B, :num_classes]

        return jax.jit(forward)


# --------------------------- parameter creation ------------------------------ #
def init_linear(key, d_in, d_out):
    """Deterministic init mimicking torch.nn.Linear defaults (kaiming-uniform-ish)."""
    kw, kb = jax.random.split(key)
    bound = 1.0 / math.sqrt(d_in)
    # Stored as (d_in, d_out) so the kernel does x @ W directly.
    W = jax.random.uniform(kw, (d_in, d_out), jnp.float32, -bound, bound)
    b = jax.random.uniform(kb, (1, d_out), jnp.float32, -bound, bound)
    return W, b


def make_fcnet_params(key, dim_input, num_classes, num_fc, width):
    num_middle = num_fc - 2
    dims = [dim_input] + [width] * (num_middle + 1) + [num_classes]
    keys = jax.random.split(key, len(dims) - 1)
    return [init_linear(k, dims[i], dims[i + 1]) for i, k in enumerate(keys)]


# ------------------------------- reference ----------------------------------- #
def fcnet_reference(img, params):
    h = img.reshape(img.shape[0], -1).astype(jnp.float32)
    n = len(params)
    for i, (W, b) in enumerate(params):
        h = h @ W + b
        if i < n - 1:
            h = jnp.maximum(h, 0.0)
    return h


# ---------------------------------- main -------------------------------------- #
if __name__ == "__main__":
    # Small shapes consistent with the module's forward:
    #   img: NCHW (2, 4, 16, 16)  ->  flattened dim_input = 4*16*16 = 1024
    B, C, H, W = 2, 4, 16, 16
    dim_input = C * H * W
    num_classes = 10
    num_fc = 4          # -> num_middle = 2 hidden Linear(width, width) layers
    width = 32

    key = jax.random.PRNGKey(0)
    k_img, k_params = jax.random.split(key)

    img = jax.random.normal(k_img, (B, C, H, W), jnp.float32)
    params = make_fcnet_params(k_params, dim_input, num_classes, num_fc, width)

    model = FCNetPallas(params)          # one-time weight pad + bf16 cast (hoisted)
    out = model(img)
    out = jax.block_until_ready(out)

    ref = fcnet_reference(img, params)
    assert out.shape == (B, num_classes), out.shape
    # bf16 matmul operands with f32 accumulation -> loosened tolerance vs f32 reference.
    assert jnp.allclose(out, ref, atol=3e-2, rtol=3e-2), "mismatch vs JAX reference"

    print("KERNEL_OK")
</pallas_src>

<mosaic_0001>
module attributes {stable_mosaic.version = 11 : i64} {
  func.func @kernel(%arg0: i32, %arg1: memref<128x1024xf32, #tpu.memory_space<vmem>>, %arg2: memref<1024x128xbf16, #tpu.memory_space<vmem>>, %arg3: memref<1x128xf32, #tpu.memory_space<vmem>>, %arg4: memref<128x128xbf16, #tpu.memory_space<vmem>>, %arg5: memref<1x128xf32, #tpu.memory_space<vmem>>, %arg6: memref<128x128xbf16, #tpu.memory_space<vmem>>, %arg7: memref<1x128xf32, #tpu.memory_space<vmem>>, %arg8: memref<128x128xbf16, #tpu.memory_space<vmem>>, %arg9: memref<1x128xf32, #tpu.memory_space<vmem>>, %arg10: memref<128x128xf32, #tpu.memory_space<vmem>>) attributes {dimension_semantics = [#tpu.dimension_semantics<parallel>], iteration_bounds = array<i64: 1>, scalar_prefetch = 0 : i64, scratch_operands = 0 : i64, tpu.core_type = #tpu.core_type<tc>, window_params = [{transform_indices = @transform_0, window_bounds = array<i64: 128, 1024>}, {pipeline_mode = #tpu.pipeline_mode<synchronous>, transform_indices = @transform_1, window_bounds = array<i64: 1024, 128>}, {pipeline_mode = #tpu.pipeline_mode<synchronous>, transform_indices = @transform_2, window_bounds = array<i64: 1, 128>}, {pipeline_mode = #tpu.pipeline_mode<synchronous>, transform_indices = @transform_3, window_bounds = array<i64: 128, 128>}, {pipeline_mode = #tpu.pipeline_mode<synchronous>, transform_indices = @transform_4, window_bounds = array<i64: 1, 128>}, {pipeline_mode = #tpu.pipeline_mode<synchronous>, transform_indices = @transform_5, window_bounds = array<i64: 128, 128>}, {pipeline_mode = #tpu.pipeline_mode<synchronous>, transform_indices = @transform_6, window_bounds = array<i64: 1, 128>}, {pipeline_mode = #tpu.pipeline_mode<synchronous>, transform_indices = @transform_7, window_bounds = array<i64: 128, 128>}, {pipeline_mode = #tpu.pipeline_mode<synchronous>, transform_indices = @transform_8, window_bounds = array<i64: 1, 128>}, {transform_indices = @transform_9, window_bounds = array<i64: 128, 128>}]} {
    %c0 = arith.constant 0 : index
    %c0_0 = arith.constant 0 : index
    %0 = vector.load %arg1[%c0, %c0_0] : memref<128x1024xf32, #tpu.memory_space<vmem>>, vector<128x1024xf32>
    %1 = arith.truncf %0 : vector<128x1024xf32> to vector<128x1024xbf16>
    %c0_1 = arith.constant 0 : index
    %c0_2 = arith.constant 0 : index
    %2 = vector.load %arg2[%c0_1, %c0_2] : memref<1024x128xbf16, #tpu.memory_space<vmem>>, vector<1024x128xbf16>
    %cst = arith.constant dense<0.000000e+00> : vector<128x128xf32>
    %3 = tpu.matmul %1, %2, %cst {dimension_numbers = #tpu.dot_dimension_numbers<[1], [0], [0], [1], [0, 0, 1, 1], [], []>} : vector<128x1024xbf16>, vector<1024x128xbf16>, vector<128x128xf32> -> vector<128x128xf32>
    %c0_3 = arith.constant 0 : index
    %c0_4 = arith.constant 0 : index
    %4 = vector.load %arg3[%c0_3, %c0_4] : memref<1x128xf32, #tpu.memory_space<vmem>>, vector<1x128xf32>
    %5 = vector.broadcast %4 : vector<1x128xf32> to vector<128x128xf32>
    %6 = arith.addf %3, %5 : vector<128x128xf32>
    %cst_5 = arith.constant 0.000000e+00 : f32
    %7 = vector.broadcast %cst_5 : f32 to vector<128x128xf32>
    %8 = arith.maximumf %6, %7 : vector<128x128xf32>
    %9 = arith.truncf %8 : vector<128x128xf32> to vector<128x128xbf16>
    %c0_6 = arith.constant 0 : index
    %c0_7 = arith.constant 0 : index
    %10 = vector.load %arg4[%c0_6, %c0_7] : memref<128x128xbf16, #tpu.memory_space<vmem>>, vector<128x128xbf16>
    %cst_8 = arith.constant dense<0.000000e+00> : vector<128x128xf32>
    %11 = tpu.matmul %9, %10, %cst_8 {dimension_numbers = #tpu.dot_dimension_numbers<[1], [0], [0], [1], [0, 0, 1, 1], [], []>} : vector<128x128xbf16>, vector<128x128xbf16>, vector<128x128xf32> -> vector<128x128xf32>
    %c0_9 = arith.constant 0 : index
    %c0_10 = arith.constant 0 : index
    %12 = vector.load %arg5[%c0_9, %c0_10] : memref<1x128xf32, #tpu.memory_space<vmem>>, vector<1x128xf32>
    %13 = vector.broadcast %12 : vector<1x128xf32> to vector<128x128xf32>
    %14 = arith.addf %11, %13 : vector<128x128xf32>
    %cst_11 = arith.constant 0.000000e+00 : f32
    %15 = vector.broadcast %cst_11 : f32 to vector<128x128xf32>
    %16 = arith.maximumf %14, %15 : vector<128x128xf32>
    %17 = arith.truncf %16 : vector<128x128xf32> to vector<128x128xbf16>
    %c0_12 = arith.constant 0 : index
    %c0_13 = arith.constant 0 : index
    %18 = vector.load %arg6[%c0_12, %c0_13] : memref<128x128xbf16, #tpu.memory_space<vmem>>, vector<128x128xbf16>
    %cst_14 = arith.constant dense<0.000000e+00> : vector<128x128xf32>
    %19 = tpu.matmul %17, %18, %cst_14 {dimension_numbers = #tpu.dot_dimension_numbers<[1], [0], [0], [1], [0, 0, 1, 1], [], []>} : vector<128x128xbf16>, vector<128x128xbf16>, vector<128x128xf32> -> vector<128x128xf32>
    %c0_15 = arith.constant 0 : index
    %c0_16 = arith.constant 0 : index
    %20 = vector.load %arg7[%c0_15, %c0_16] : memref<1x128xf32, #tpu.memory_space<vmem>>, vector<1x128xf32>
    %21 = vector.broadcast %20 : vector<1x128xf32> to vector<128x128xf32>
    %22 = arith.addf %19, %21 : vector<128x128xf32>
    %cst_17 = arith.constant 0.000000e+00 : f32
    %23 = vector.broadcast %cst_17 : f32 to vector<128x128xf32>
    %24 = arith.maximumf %22, %23 : vector<128x128xf32>
    %25 = arith.truncf %24 : vector<128x128xf32> to vector<128x128xbf16>
    %c0_18 = arith.constant 0 : index
    %c0_19 = arith.constant 0 : index
    %26 = vector.load %arg8[%c0_18, %c0_19] : memref<128x128xbf16, #tpu.memory_space<vmem>>, vector<128x128xbf16>
    %cst_20 = arith.constant dense<0.000000e+00> : vector<128x128xf32>
    %27 = tpu.matmul %25, %26, %cst_20 {dimension_numbers = #tpu.dot_dimension_numbers<[1], [0], [0], [1], [0, 0, 1, 1], [], []>} : vector<128x128xbf16>, vector<128x128xbf16>, vector<128x128xf32> -> vector<128x128xf32>
    %c0_21 = arith.constant 0 : index
    %c0_22 = arith.constant 0 : index
    %28 = vector.load %arg9[%c0_21, %c0_22] : memref<1x128xf32, #tpu.memory_space<vmem>>, vector<1x128xf32>
    %29 = vector.broadcast %28 : vector<1x128xf32> to vector<128x128xf32>
    %30 = arith.addf %27, %29 : vector<128x128xf32>
    %c0_23 = arith.constant 0 : index
    %c0_24 = arith.constant 0 : index
    %31 = vector.load %arg10[%c0_23, %c0_24] : memref<128x128xf32, #tpu.memory_space<vmem>>, vector<128x128xf32>
    tpu.vector_store %arg10[%c0_23, %c0_24], %30 {strides = array<i32>} : memref<128x128xf32, #tpu.memory_space<vmem>>, vector<128x128xf32>,
    return
  }
  func.func @transform_0(%arg0: i32) -> (i32, i32) {
    %c0_i32 = arith.constant 0 : i32
    %c0_i32_0 = arith.constant 0 : i32
    return %arg0, %c0_i32 : i32, i32
  }
  func.func @transform_1(%arg0: i32) -> (i32, i32) {
    %c0_i32 = arith.constant 0 : i32
    %c0_i32_0 = arith.constant 0 : i32
    %c0_i32_1 = arith.constant 0 : i32
    return %c0_i32, %c0_i32_0 : i32, i32
  }
  func.func @transform_2(%arg0: i32) -> (i32, i32) {
    %c0_i32 = arith.constant 0 : i32
    %c0_i32_0 = arith.constant 0 : i32
    %c0_i32_1 = arith.constant 0 : i32
    return %c0_i32, %c0_i32_0 : i32, i32
  }
  func.func @transform_3(%arg0: i32) -> (i32, i32) {
    %c0_i32 = arith.constant 0 : i32
    %c0_i32_0 = arith.constant 0 : i32
    %c0_i32_1 = arith.constant 0 : i32
    return %c0_i32, %c0_i32_0 : i32, i32
  }
  func.func @transform_4(%arg0: i32) -> (i32, i32) {
    %c0_i32 = arith.constant 0 : i32
    %c0_i32_0 = arith.constant 0 : i32
    %c0_i32_1 = arith.constant 0 : i32
    return %c0_i32, %c0_i32_0 : i32, i32
  }
  func.func @transform_5(%arg0: i32) -> (i32, i32) {
    %c0_i32 = arith.constant 0 : i32
    %c0_i32_0 = arith.constant 0 : i32
    %c0_i32_1 = arith.constant 0 : i32
    return %c0_i32, %c0_i32_0 : i32, i32
  }
  func.func @transform_6(%arg0: i32) -> (i32, i32) {
    %c0_i32 = arith.constant 0 : i32
    %c0_i32_0 = arith.constant 0 : i32
    %c0_i32_1 = arith.constant 0 : i32
    return %c0_i32, %c0_i32_0 : i32, i32
  }
  func.func @transform_7(%arg0: i32) -> (i32, i32) {
    %c0_i32 = arith.constant 0 : i32
    %c0_i32_0 = arith.constant 0 : i32
    %c0_i32_1 = arith.constant 0 : i32
    return %c0_i32, %c0_i32_0 : i32, i32
  }
  func.func @transform_8(%arg0: i32) -> (i32, i32) {
    %c0_i32 = arith.constant 0 : i32
    %c0_i32_0 = arith.constant 0 : i32
    %c0_i32_1 = arith.constant 0 : i32
    return %c0_i32, %c0_i32_0 : i32, i32
  }
  func.func @transform_9(%arg0: i32) -> (i32, i32) {
    %c0_i32 = arith.constant 0 : i32
    %c0_i32_0 = arith.constant 0 : i32
    return %arg0, %c0_i32 : i32, i32
  }
}

module attributes {stable_mosaic.version = 11 : i64} {
  func.func @kernel(%arg0: i32, %arg1: memref<128x1024xf32, #tpu.memory_space<vmem>>, %arg2: memref<1024x128xbf16, #tpu.memory_space<vmem>>, %arg3: memref<1x128xf32, #tpu.memory_space<vmem>>, %arg4: memref<128x128xbf16, #tpu.memory_space<vmem>>, %arg5: memref<1x128xf32, #tpu.memory_space<vmem>>, %arg6: memref<128x128xbf16, #tpu.memory_space<vmem>>, %arg7: memref<1x128xf32, #tpu.memory_space<vmem>>, %arg8: memref<128x128xbf16, #tpu.memory_space<vmem>>, %arg9: memref<1x128xf32, #tpu.memory_space<vmem>>, %arg10: memref<128x128xf32, #tpu.memory_space<vmem>>) attributes {dimension_semantics = [#tpu.dimension_semantics<parallel>], iteration_bounds = array<i64: 1>, scalar_prefetch = 0 : i64, scratch_operands = 0 : i64, tpu.core_type = #tpu.core_type<tc>, window_params = [{transform_indices = @transform_0, window_bounds = array<i64: 128, 1024>}, {pipeline_mode = #tpu.pipeline_mode<synchronous>, transform_indices = @transform_1, window_bounds = array<i64: 1024, 128>}, {pipeline_mode = #tpu.pipeline_mode<synchronous>, transform_indices = @transform_2, window_bounds = array<i64: 1, 128>}, {pipeline_mode = #tpu.pipeline_mode<synchronous>, transform_indices = @transform_3, window_bounds = array<i64: 128, 128>}, {pipeline_mode = #tpu.pipeline_mode<synchronous>, transform_indices = @transform_4, window_bounds = array<i64: 1, 128>}, {pipeline_mode = #tpu.pipeline_mode<synchronous>, transform_indices = @transform_5, window_bounds = array<i64: 128, 128>}, {pipeline_mode = #tpu.pipeline_mode<synchronous>, transform_indices = @transform_6, window_bounds = array<i64: 1, 128>}, {pipeline_mode = #tpu.pipeline_mode<synchronous>, transform_indices = @transform_7, window_bounds = array<i64: 128, 128>}, {pipeline_mode = #tpu.pipeline_mode<synchronous>, transform_indices = @transform_8, window_bounds = array<i64: 1, 128>}, {transform_indices = @transform_9, window_bounds = array<i64: 128, 128>}]} {
    %c0 = arith.constant 0 : index
    %c0_0 = arith.constant 0 : index
    %0 = vector.load %arg1[%c0, %c0_0] : memref<128x1024xf32, #tpu.memory_space<vmem>>, vector<128x1024xf32>
    %1 = arith.truncf %0 : vector<128x1024xf32> to vector<128x1024xbf16>
    %c0_1 = arith.constant 0 : index
    %c0_2 = arith.constant 0 : index
    %2 = vector.load %arg2[%c0_1, %c0_2] : memref<1024x128xbf16, #tpu.memory_space<vmem>>, vector<1024x128xbf16>
    %cst = arith.constant dense<0.000000e+00> : vector<128x128xf32>
    %3 = tpu.matmul %1, %2, %cst {dimension_numbers = #tpu.dot_dimension_numbers<[1], [0], [0], [1], [0, 0, 1, 1], [], []>} : vector<128x1024xbf16>, vector<1024x128xbf16>, vector<128x128xf32> -> vector<128x128xf32>
    %c0_3 = arith.constant 0 : index
    %c0_4 = arith.constant 0 : index
    %4 = vector.load %arg3[%c0_3, %c0_4] : memref<1x128xf32, #tpu.memory_space<vmem>>, vector<1x128xf32>
    %5 = vector.broadcast %4 : vector<1x128xf32> to vector<128x128xf32>
    %6 = arith.addf %3, %5 : vector<128x128xf32>
    %cst_5 = arith.constant 0.000000e+00 : f32
    %7 = vector.broadcast %cst_5 : f32 to vector<128x128xf32>
    %8 = arith.maximumf %6, %7 : vector<128x128xf32>
    %9 = arith.truncf %8 : vector<128x128xf32> to vector<128x128xbf16>
    %c0_6 = arith.constant 0 : index
    %c0_7 = arith.constant 0 : index
    %10 = vector.load %arg4[%c0_6, %c0_7] : memref<128x128xbf16, #tpu.memory_space<vmem>>, vector<128x128xbf16>
    %cst_8 = arith.constant dense<0.000000e+00> : vector<128x128xf32>
    %11 = tpu.matmul %9, %10, %cst_8 {dimension_numbers = #tpu.dot_dimension_numbers<[1], [0], [0], [1], [0, 0, 1, 1], [], []>} : vector<128x128xbf16>, vector<128x128xbf16>, vector<128x128xf32> -> vector<128x128xf32>
    %c0_9 = arith.constant 0 : index
    %c0_10 = arith.constant 0 : index
    %12 = vector.load %arg5[%c0_9, %c0_10] : memref<1x128xf32, #tpu.memory_space<vmem>>, vector<1x128xf32>
    %13 = vector.broadcast %12 : vector<1x128xf32> to vector<128x128xf32>
    %14 = arith.addf %11, %13 : vector<128x128xf32>
    %cst_11 = arith.constant 0.000000e+00 : f32
    %15 = vector.broadcast %cst_11 : f32 to vector<128x128xf32>
    %16 = arith.maximumf %14, %15 : vector<128x128xf32>
    %17 = arith.truncf %16 : vector<128x128xf32> to vector<128x128xbf16>
    %c0_12 = arith.constant 0 : index
    %c0_13 = arith.constant 0 : index
    %18 = vector.load %arg6[%c0_12, %c0_13] : memref<128x128xbf16, #tpu.memory_space<vmem>>, vector<128x128xbf16>
    %cst_14 = arith.constant dense<0.000000e+00> : vector<128x128xf32>
    %19 = tpu.matmul %17, %18, %cst_14 {dimension_numbers = #tpu.dot_dimension_numbers<[1], [0], [0], [1], [0, 0, 1, 1], [], []>} : vector<128x128xbf16>, vector<128x128xbf16>, vector<128x128xf32> -> vector<128x128xf32>
    %c0_15 = arith.constant 0 : index
    %c0_16 = arith.constant 0 : index
    %20 = vector.load %arg7[%c0_15, %c0_16] : memref<1x128xf32, #tpu.memory_space<vmem>>, vector<1x128xf32>
    %21 = vector.broadcast %20 : vector<1x128xf32> to vector<128x128xf32>
    %22 = arith.addf %19, %21 : vector<128x128xf32>
    %cst_17 = arith.constant 0.000000e+00 : f32
    %23 = vector.broadcast %cst_17 : f32 to vector<128x128xf32>
    %24 = arith.maximumf %22, %23 : vector<128x128xf32>
    %25 = arith.truncf %24 : vector<128x128xf32> to vector<128x128xbf16>
    %c0_18 = arith.constant 0 : index
    %c0_19 = arith.constant 0 : index
    %26 = vector.load %arg8[%c0_18, %c0_19] : memref<128x128xbf16, #tpu.memory_space<vmem>>, vector<128x128xbf16>
    %cst_20 = arith.constant dense<0.000000e+00> : vector<128x128xf32>
    %27 = tpu.matmul %25, %26, %cst_20 {dimension_numbers = #tpu.dot_dimension_numbers<[1], [0], [0], [1], [0, 0, 1, 1], [], []>} : vector<128x128xbf16>, vector<128x128xbf16>, vector<128x128xf32> -> vector<128x128xf32>
    %c0_21 = arith.constant 0 : index
    %c0_22 = arith.constant 0 : index
    %28 = vector.load %arg9[%c0_21, %c0_22] : memref<1x128xf32, #tpu.memory_space<vmem>>, vector<1x128xf32>
    %29 = vector.broadcast %28 : vector<1x128xf32> to vector<128x128xf32>
    %30 = arith.addf %27, %29 : vector<128x128xf32>
    %c0_23 = arith.constant 0 : index
    %c0_24 = arith.constant 0 : index
    %31 = vector.load %arg10[%c0_23, %c0_24] : memref<128x128xf32, #tpu.memory_space<vmem>>, vector<128x128xf32>
    tpu.vector_store %arg10[%c0_23, %c0_24], %30 {strides = array<i32>} : memref<128x128xf32, #tpu.memory_space<vmem>>, vector<128x128xf32>,
    return
  }
  func.func @transform_0(%arg0: i32) -> (i32, i32) {
    %c0_i32 = arith.constant 0 : i32
    %c0_i32_0 = arith.constant 0 : i32
    return %arg0, %c0_i32 : i32, i32
  }
  func.func @transform_1(%arg0: i32) -> (i32, i32) {
    %c0_i32 = arith.constant 0 : i32
    %c0_i32_0 = arith.constant 0 : i32
    %c0_i32_1 = arith.constant 0 : i32
    return %c0_i32, %c0_i32_0 : i32, i32
  }
  func.func @transform_2(%arg0: i32) -> (i32, i32) {
    %c0_i32 = arith.constant 0 : i32
    %c0_i32_0 = arith.constant 0 : i32
    %c0_i32_1 = arith.constant 0 : i32
    return %c0_i32, %c0_i32_0 : i32, i32
  }
  func.func @transform_3(%arg0: i32) -> (i32, i32) {
    %c0_i32 = arith.constant 0 : i32
    %c0_i32_0 = arith.constant 0 : i32
    %c0_i32_1 = arith.constant 0 : i32
    return %c0_i32, %c0_i32_0 : i32, i32
  }
  func.func @transform_4(%arg0: i32) -> (i32, i32) {
    %c0_i32 = arith.constant 0 : i32
    %c0_i32_0 = arith.constant 0 : i32
    %c0_i32_1 = arith.constant 0 : i32
    return %c0_i32, %c0_i32_0 : i32, i32
  }
  func.func @transform_5(%arg0: i32) -> (i32, i32) {
    %c0_i32 = arith.constant 0 : i32
    %c0_i32_0 = arith.constant 0 : i32
    %c0_i32_1 = arith.constant 0 : i32
    return %c0_i32, %c0_i32_0 : i32, i32
  }
  func.func @transform_6(%arg0: i32) -> (i32, i32) {
    %c0_i32 = arith.constant 0 : i32
    %c0_i32_0 = arith.constant 0 : i32
    %c0_i32_1 = arith.constant 0 : i32
    return %c0_i32, %c0_i32_0 : i32, i32
  }
  func.func @transform_7(%arg0: i32) -> (i32, i32) {
    %c0_i32 = arith.constant 0 : i32
    %c0_i32_0 = arith.constant 0 : i32
    %c0_i32_1 = arith.constant 0 : i32
    return %c0_i32, %c0_i32_0 : i32, i32
  }
  func.func @transform_8(%arg0: i32) -> (i32, i32) {
    %c0_i32 = arith.constant 0 : i32
    %c0_i32_0 = arith.constant 0 : i32
    %c0_i32_1 = arith.constant 0 : i32
    return %c0_i32, %c0_i32_0 : i32, i32
  }
  func.func @transform_9(%arg0: i32) -> (i32, i32) {
    %c0_i32 = arith.constant 0 : i32
    %c0_i32_0 = arith.constant 0 : i32
    return %arg0, %c0_i32 : i32, i32
  }
}

</mosaic_0001>

<bundles_post_ra>
// kernel: forward.1
= control target key start
LH: loop header
LB: loop body
LE: loop exit
PB: predicated region body
PF: predicated region fallthrough
CT: control target
= control target key end

     0   :  { %s3166_s1 = inlined_call_operand.vmem [shape: bf16[1024,128], index: 1, kind: input, shape index: {}]   ;;  %s3167_s0 = inlined_call_operand.vmem [shape: f32[128,1024], index: 0, kind: input, shape index: {}]   ;;  %s3168_s3 = inlined_call_operand.vmem [shape: bf16[128,128], index: 3, kind: input, shape index: {}]   ;;  %s3169_s2 = inlined_call_operand.vmem [shape: f32[1,128], index: 2, kind: input, shape index: {}]   ;;  %s3170_s5 = inlined_call_operand.vmem [shape: bf16[128,128], index: 5, kind: input, shape index: {}]   ;;  %s3171_s7 = inlined_call_operand.vmem [shape: bf16[128,128], index: 7, kind: input, shape index: {}]   ;;  %s3172_s4 = inlined_call_operand.vmem [shape: f32[1,128], index: 4, kind: input, shape index: {}]   ;;  %s3173_s6 = inlined_call_operand.vmem [shape: f32[1,128], index: 6, kind: input, shape index: {}]   ;;  %s3174_s8 = inlined_call_operand.vmem [shape: f32[1,128], index: 8, kind: input, shape index: {}]   ;;  %s3175_s9 = inlined_call_operand.vmem [shape: f32[128,128], index: 9, kind: output, shape index: {}]  }
   0x1   :  { %v2236_v0 = vld [vmem:[%s3166_s1 + $0x40] sm:$0xff]   ;;  %v2240_v4 = vld [vmem:[%s3166_s1 + $0x48] sm:$0xff]   ;;  %v2244_v8 = vld [vmem:[%s3166_s1 + $0x50] sm:$0xff]  }
   0x2   :  { %v2237_v1 = vld [vmem:[%s3166_s1 + $0xc0] sm:$0xff]   ;;  %1820 = vmatprep.subr.bf16.mxu0 %v2236_v0  ;;  %v2241_v5 = vld [vmem:[%s3166_s1 + $0xc8] sm:$0xff]   ;;  %v2245_v9 = vld [vmem:[%s3166_s1 + $0xd0] sm:$0xff]  }
   0x3   :  { %v2238_v2 = vld [vmem:[%s3166_s1] sm:$0xff]   ;;  %1884 = vmatprep.subr.bf16.mxu1 %v2237_v1  ;;  %v2242_v6 = vld [vmem:[%s3166_s1 + $0x8] sm:$0xff]   ;;  %v2246_v10 = vld [vmem:[%s3166_s1 + $0x10] sm:$0xff]  }
   0x4   :  { %v2239_v3 = vld [vmem:[%s3166_s1 + $0x80] sm:$0xff]   ;;  %1821 = vmatpush3.bf16.msra.mxu0 %v2238_v2  ;;  %v2243_v7 = vld [vmem:[%s3166_s1 + $0x88] sm:$0xff]   ;;  %v2247_v11 = vld [vmem:[%s3166_s1 + $0x90] sm:$0xff]  }
   0x5   :  { %1885 = vmatpush3.bf16.msra.mxu1 %v2239_v3  ;;  %1822 = vmatprep.subr.bf16.mxu0 %v2240_v4  ;;  %v2248_v12 = vld [vmem:[%s3166_s1 + $0x58] sm:$0xff]   ;;  %v2252_v16 = vld [vmem:[%s3166_s1 + $0x60] sm:$0xff]   ;;  %v2256_v20 = vld [vmem:[%s3166_s1 + $0x68] sm:$0xff]  }
   0x6   :  { %1886 = vmatprep.subr.bf16.mxu1 %v2241_v5  ;;  %v2249_v13 = vld [vmem:[%s3166_s1 + $0xd8] sm:$0xff]   ;;  %v2253_v17 = vld [vmem:[%s3166_s1 + $0xe0] sm:$0xff]   ;;  %v2257_v21 = vld [vmem:[%s3166_s1 + $0xe8] sm:$0xff]  }
   0x7   :  { %v2250_v14 = vld [vmem:[%s3166_s1 + $0x18] sm:$0xff]   ;;  %v2254_v18 = vld [vmem:[%s3166_s1 + $0x20] sm:$0xff]   ;;  %v2258_v22 = vld [vmem:[%s3166_s1 + $0x28] sm:$0xff]  }
   0x8   :  { %1823 = vmatpush3.bf16.msra.mxu0 %v2242_v6  ;;  %v2251_v15 = vld [vmem:[%s3166_s1 + $0x98] sm:$0xff]   ;;  %v2255_v19 = vld [vmem:[%s3166_s1 + $0xa0] sm:$0xff]   ;;  %v2259_v23 = vld [vmem:[%s3166_s1 + $0xa8] sm:$0xff]  }
   0x9   :  { %1887 = vmatpush3.bf16.msra.mxu1 %v2243_v7  ;;  %1824 = vmatprep.subr.bf16.mxu0 %v2244_v8  ;;  %v2260_v24 = vld [vmem:[%s3166_s1 + $0x70] sm:$0xff]   ;;  %v2264_v28 = vld [vmem:[%s3166_s1 + $0x78] sm:$0xff]   ;;  %v34_v32 = vld [vmem:[%s3167_s0 + $0x8] sm:$0xff] }
   0xa   :  { %1888 = vmatprep.subr.bf16.mxu1 %v2245_v9  ;;  %v2261_v25 = vld [vmem:[%s3166_s1 + $0xf0] sm:$0xff]   ;;  %v2265_v29 = vld [vmem:[%s3166_s1 + $0xf8] sm:$0xff]   ;;  %v42_v33 = vld [vmem:[%s3167_s0 + $0x48] sm:$0xff] }
   0xb   :  { %v2262_v26 = vld [vmem:[%s3166_s1 + $0x30] sm:$0xff]   ;;  %v2266_v30 = vld [vmem:[%s3166_s1 + $0x38] sm:$0xff]   ;;  %v162_v35 = vpack.c.bf16 %v42_v33, %v34_v32  ;;  %v33_v37 = vld [vmem:[%s3167_s0] sm:$0xff] }
   0xc   :  { %1825 = vmatpush3.bf16.msra.mxu0 %v2246_v10  ;;  %v2263_v27 = vld [vmem:[%s3166_s1 + $0xb0] sm:$0xff]   ;;  %v2267_v31 = vld [vmem:[%s3166_s1 + $0xb8] sm:$0xff]   ;;  %v41_v38 = vld [vmem:[%s3167_s0 + $0x40] sm:$0xff] }
   0xd   :  { %1889 = vmatpush3.bf16.msra.mxu1 %v2247_v11  ;;  %1826 = vmatprep.subr.bf16.mxu0 %v2248_v12  ;;  %v36_v34 = vld [vmem:[%s3167_s0 + $0x18] sm:$0xff]  ;;  %v161_v40 = vpack.c.bf16 %v41_v38, %v33_v37  ;;  %v35_v41 = vld [vmem:[%s3167_s0 + $0x10] sm:$0xff]  ;;  %v2268_v44 = vld [vmem:[%s3166_s1 + $0x140] sm:$0xff]  }
   0xe   :  { %1890 = vmatprep.subr.bf16.mxu1 %v2249_v13  ;;  %v44_v36 = vld [vmem:[%s3167_s0 + $0x58] sm:$0xff]  ;;  %v43_v42 = vld [vmem:[%s3167_s0 + $0x50] sm:$0xff]  ;;  %776 = vmatprep.mubr.bf16.mxu0 %v162_v35  ;;  %v2269_v45 = vld [vmem:[%s3166_s1 + $0x100] sm:$0xff]  }
   0xf   :  { %v164_v39 = vpack.c.bf16 %v44_v36, %v36_v34  ;;  %v163_v43 = vpack.c.bf16 %v43_v42, %v35_v41  ;;  %v2270_v46 = vld [vmem:[%s3166_s1 + $0x1c0] sm:$0xff]   ;;  %v50_v48 = vld [vmem:[%s3167_s0 + $0x88] sm:$0xff]  ;;  %v52_v50 = vld [vmem:[%s3167_s0 + $0x98] sm:$0xff] }
  0x10   :  { %1827 = vmatpush3.bf16.msra.mxu0 %v2250_v14  ;;  %v2271_v47 = vld [vmem:[%s3166_s1 + $0x180] sm:$0xff]   ;;  %v58_v49 = vld [vmem:[%s3167_s0 + $0xc8] sm:$0xff]  ;;  %v60_v51 = vld [vmem:[%s3167_s0 + $0xd8] sm:$0xff] }
  0x11   :  { %1891 = vmatpush3.bf16.msra.mxu1 %v2251_v15  ;;  %1828 = vmatprep.subr.bf16.mxu0 %v2252_v16  ;;  %v170_v52 = vpack.c.bf16 %v58_v49, %v50_v48  ;;  %v172_v53 = vpack.c.bf16 %v60_v51, %v52_v50  ;;  %v49_v54 = vld [vmem:[%s3167_s0 + $0x80] sm:$0xff]  ;;  %v51_v56 = vld [vmem:[%s3167_s0 + $0x90] sm:$0xff]  ;;  %v2272_v60 = vld [vmem:[%s3166_s1 + $0x148] sm:$0xff]  }
  0x12   :  { %1892 = vmatprep.subr.bf16.mxu1 %v2253_v17  ;;  %873 = vmatprep.mubr.bf16.mxu1 %v164_v39  ;;  %v57_v55 = vld [vmem:[%s3167_s0 + $0xc0] sm:$0xff]  ;;  %v59_v58 = vld [vmem:[%s3167_s0 + $0xd0] sm:$0xff]  ;;  %v2273_v61 = vld [vmem:[%s3166_s1 + $0x108] sm:$0xff]  }
  0x13   :  { %v169_v57 = vpack.c.bf16 %v57_v55, %v49_v54  ;;  %v171_v59 = vpack.c.bf16 %v59_v58, %v51_v56  ;;  %v2274_v62 = vld [vmem:[%s3166_s1 + $0x1c8] sm:$0xff]   ;;  %v68_v3 = vld [vmem:[%s3167_s0 + $0x118] sm:$0xff]  ;;  %v65_v5 = vld [vmem:[%s3167_s0 + $0x100] sm:$0xff] }
  0x14   :  { %1829 = vmatpush3.bf16.msra.mxu0 %v2254_v18  ;;  %v2275_v63 = vld [vmem:[%s3166_s1 + $0x188] sm:$0xff]   ;;  %v76_v4 = vld [vmem:[%s3167_s0 + $0x158] sm:$0xff]  ;;  %v73_v7 = vld [vmem:[%s3167_s0 + $0x140] sm:$0xff] }
  0x15   :  { %1893 = vmatpush3.bf16.msra.mxu1 %v2255_v19  ;;  %1830 = vmatprep.subr.bf16.mxu0 %v2256_v20  ;;  %v66_v0 = vld [vmem:[%s3167_s0 + $0x108] sm:$0xff]  ;;  %v180_v6 = vpack.c.bf16 %v76_v4, %v68_v3  ;;  %v67_v8 = vld [vmem:[%s3167_s0 + $0x110] sm:$0xff]  ;;  %v177_v10 = vpack.c.bf16 %v73_v7, %v65_v5  ;;  %v84_v18 = vld [vmem:[%s3167_s0 + $0x198] sm:$0xff] }
  0x16   :  { %1894 = vmatprep.subr.bf16.mxu1 %v2257_v21  ;;  %v74_v1 = vld [vmem:[%s3167_s0 + $0x148] sm:$0xff]  ;;  %v75_v9 = vld [vmem:[%s3167_s0 + $0x150] sm:$0xff]  ;;  %v92_v20 = vld [vmem:[%s3167_s0 + $0x1d8] sm:$0xff] }
  0x17   :  { %v178_v2 = vpack.c.bf16 %v74_v1, %v66_v0  ;;  %v2276_v11 = vld [vmem:[%s3166_s1 + $0x150] sm:$0xff]   ;;  %v179_v12 = vpack.c.bf16 %v75_v9, %v67_v8  ;;  %v82_v16 = vld [vmem:[%s3167_s0 + $0x188] sm:$0xff]  ;;  %v81_v21 = vld [vmem:[%s3167_s0 + $0x180] sm:$0xff] }
  0x18   :  { %1831 = vmatpush3.bf16.msra.mxu0 %v2258_v22  ;;  %v2277_v13 = vld [vmem:[%s3166_s1 + $0x110] sm:$0xff]   ;;  %v90_v17 = vld [vmem:[%s3167_s0 + $0x1c8] sm:$0xff]  ;;  %v89_v22 = vld [vmem:[%s3167_s0 + $0x1c0] sm:$0xff] }
  0x19   :  { %1895 = vmatpush3.bf16.msra.mxu1 %v2259_v23  ;;  %1832 = vmatprep.subr.bf16.mxu0 %v2260_v24  ;;  %v2278_v14 = vld [vmem:[%s3166_s1 + $0x1d0] sm:$0xff]   ;;  %v186_v19 = vpack.c.bf16 %v90_v17, %v82_v16  ;;  %v188_v23 = vpack.c.bf16 %v92_v20, %v84_v18  ;;  %v98_v32 = vld [vmem:[%s3167_s0 + $0x208] sm:$0xff]  ;;  %v100_v34 = vld [vmem:[%s3167_s0 + $0x218] sm:$0xff] }
  0x1a   :  { %1896 = vmatprep.subr.bf16.mxu1 %v2261_v25  ;;  %v2279_v15 = vld [vmem:[%s3166_s1 + $0x190] sm:$0xff]   ;;  %v106_v33 = vld [vmem:[%s3167_s0 + $0x248] sm:$0xff]  ;;  %v108_v35 = vld [vmem:[%s3167_s0 + $0x258] sm:$0xff] }
  0x1b   :  { %v83_v24 = vld [vmem:[%s3167_s0 + $0x190] sm:$0xff]  ;;  %v194_v36 = vpack.c.bf16 %v106_v33, %v98_v32  ;;  %v196_v37 = vpack.c.bf16 %v108_v35, %v100_v34  ;;  %v97_v38 = vld [vmem:[%s3167_s0 + $0x200] sm:$0xff]  ;;  %v114_v48 = vld [vmem:[%s3167_s0 + $0x288] sm:$0xff] }
  0x1c   :  { %1833 = vmatpush3.bf16.msra.mxu0 %v2262_v26  ;;  %v91_v25 = vld [vmem:[%s3167_s0 + $0x1d0] sm:$0xff]  ;;  %v2280_v26 = vld [vmem:[%s3166_s1 + $0x158] sm:$0xff]   ;;  %v105_v39 = vld [vmem:[%s3167_s0 + $0x240] sm:$0xff] }
  0x1d   :  { %1897 = vmatpush3.bf16.msra.mxu1 %v2263_v27  ;;  %1834 = vmatprep.subr.bf16.mxu0 %v2264_v28  ;;  %v185_v27 = vpack.c.bf16 %v89_v22, %v81_v21  ;;  %v2281_v28 = vld [vmem:[%s3166_s1 + $0x118] sm:$0xff]   ;;  %v107_v41 = vld [vmem:[%s3167_s0 + $0x250] sm:$0xff]  ;;  %v2284_v42 = vld [vmem:[%s3166_s1 + $0x160] sm:$0xff]  }
  0x1e   :  { %1898 = vmatprep.subr.bf16.mxu1 %v2265_v29  ;;  %v187_v29 = vpack.c.bf16 %v91_v25, %v83_v24  ;;  %v122_v49 = vld [vmem:[%s3167_s0 + $0x2c8] sm:$0xff]  ;;  %v116_v51 = vld [vmem:[%s3167_s0 + $0x298] sm:$0xff]  ;;  %v113_v54 = vld [vmem:[%s3167_s0 + $0x280] sm:$0xff] }
  0x1f   :  { %v202_v50 = vpack.c.bf16 %v122_v49, %v114_v48  ;;  %v121_v55 = vld [vmem:[%s3167_s0 + $0x2c0] sm:$0xff]  ;;  %v115_v56 = vld [vmem:[%s3167_s0 + $0x290] sm:$0xff]  ;;  %v2288_v58 = vld [vmem:[%s3166_s1 + $0x168] sm:$0xff]  }
  0x20   :  { %1835 = vmatpush3.bf16.msra.mxu0 %v2266_v30  ;;  %v2282_v30 = vld [vmem:[%s3166_s1 + $0x1d8] sm:$0xff]   ;;  %v138_v0 = vld [vmem:[%s3167_s0 + $0x348] sm:$0xff]  ;;  %v137_v7 = vld [vmem:[%s3167_s0 + $0x340] sm:$0xff] }
  0x21   :  { %1899 = vmatpush3.bf16.msra.mxu1 %v2267_v31  ;;  %1948 = vmatprep.subr.bf16.mxu0 %v2268_v44  ;;  %v2283_v31 = vld [vmem:[%s3166_s1 + $0x198] sm:$0xff]   ;;  %v193_v44 = vpack.c.bf16 %v105_v39, %v97_v38  ;;  %v2292_v8 = vld [vmem:[%s3166_s1 + $0x170] sm:$0xff]   ;;  %v37_v38 = vld [vmem:[%s3167_s0 + $0x20] sm:$0xff] }
  0x22   :  { %2012 = vmatprep.subr.bf16.mxu1 %v2270_v46  ;;  %v132_v1 = vld [vmem:[%s3167_s0 + $0x318] sm:$0xff]  ;;  %v131_v9 = vld [vmem:[%s3167_s0 + $0x310] sm:$0xff]  ;;  %v45_v39 = vld [vmem:[%s3167_s0 + $0x60] sm:$0xff] }
  0x23   :  { %777 = vmatmul.mubr.bf16.vlgmr.msra.gmra.mrb[0].mxu0 %v161_v40  ;;  %v99_v40 = vld [vmem:[%s3167_s0 + $0x210] sm:$0xff]  ;;  %v140_v4 = vld [vmem:[%s3167_s0 + $0x358] sm:$0xff] }
  0x24   :  { %874 = vmatmul.mubr.bf16.vlgmr.msra.gmra.mrb[0].mxu1 %v163_v43  ;;  %1949 = vmatpush3.bf16.msra.mxu0 %v2269_v45  ;;  %v2285_v43 = vld [vmem:[%s3166_s1 + $0x120] sm:$0xff]   ;;  %v195_v46 = vpack.c.bf16 %v107_v41, %v99_v40  ;;  %v212_v5 = vpack.c.bf16 %v140_v4, %v132_v1  ;;  %v148_v16 = vld [vmem:[%s3167_s0 + $0x398] sm:$0xff]  ;;  %v39_v40 = vld [vmem:[%s3167_s0 + $0x30] sm:$0xff] }
  0x25   :  { %2013 = vmatpush3.bf16.msra.mxu1 %v2271_v47  ;;  %784 = vmatprep.mubr.bf16.mxu0 %v170_v52  ;;  %v2286_v45 = vld [vmem:[%s3166_s1 + $0x1e0] sm:$0xff]   ;;  %v124_v52 = vld [vmem:[%s3167_s0 + $0x2d8] sm:$0xff]  ;;  %v47_v41 = vld [vmem:[%s3167_s0 + $0x70] sm:$0xff] }
  0x26   :  { %881 = vmatprep.mubr.bf16.mxu1 %v172_v53  ;;  %1950 = vmatprep.subr.bf16.mxu0 %v2272_v60  ;;  %v2287_v47 = vld [vmem:[%s3166_s1 + $0x1a0] sm:$0xff]   ;;  %v204_v53 = vpack.c.bf16 %v124_v52, %v116_v51  ;;  %v2290_v60 = vld [vmem:[%s3166_s1 + $0x1e8] sm:$0xff]   ;;  %v156_v17 = vld [vmem:[%s3167_s0 + $0x3d8] sm:$0xff] }
  0x27   :  { %2014 = vmatprep.subr.bf16.mxu1 %v2274_v62  ;;  %v201_v62 = vpack.c.bf16 %v121_v55, %v113_v54  ;;  %v220_v21 = vpack.c.bf16 %v156_v17, %v148_v16  ;;  %v2296_v22 = vld [vmem:[%s3166_s1 + $0x178] sm:$0xff]   ;;  %v61_v51 = vld [vmem:[%s3167_s0 + $0xe0] sm:$0xff]  ;;  %v55_v52 = vld [vmem:[%s3167_s0 + $0xb0] sm:$0xff] }
  0x28   :  { %1951 = vmatpush3.bf16.msra.mxu0 %v2273_v61  ;;  %v2291_v61 = vld [vmem:[%s3166_s1 + $0x1a8] sm:$0xff]   ;;  %v2297_v24 = vld [vmem:[%s3166_s1 + $0x138] sm:$0xff]   ;;  %v79_v1 = vld [vmem:[%s3167_s0 + $0x170] sm:$0xff] }
  0x29   :  { %2015 = vmatpush3.bf16.msra.mxu1 %v2275_v63  ;;  %1952 = vmatprep.subr.bf16.mxu0 %v2276_v11  ;;  %v130_v63 = vld [vmem:[%s3167_s0 + $0x308] sm:$0xff]  ;;  %v2293_v11 = vld [vmem:[%s3166_s1 + $0x130] sm:$0xff]   ;;  %v2298_v25 = vld [vmem:[%s3166_s1 + $0x1f8] sm:$0xff]  }
  0x2a   :  { %2016 = vmatprep.subr.bf16.mxu1 %v2278_v14  ;;  %v210_v3 = vpack.c.bf16 %v138_v0, %v130_v63  ;;  %v146_v14 = vld [vmem:[%s3167_s0 + $0x388] sm:$0xff]  ;;  %v40_v32 = vld [vmem:[%s3167_s0 + $0x38] sm:$0xff]  ;;  %v77_v63 = vld [vmem:[%s3167_s0 + $0x160] sm:$0xff] }
  0x2b   :  { %785 = vmatmul.mubr.bf16.gmra.mrb[4].mxu0 %v169_v57  ;;  %v123_v57 = vld [vmem:[%s3167_s0 + $0x2d0] sm:$0xff]  ;;  %v48_v33 = vld [vmem:[%s3167_s0 + $0x78] sm:$0xff]  ;;  %v70_v54 = vld [vmem:[%s3167_s0 + $0x128] sm:$0xff] }
  0x2c   :  { %882 = vmatmul.mubr.bf16.gmra.mrb[4].mxu1 %v171_v59  ;;  %792 = vmatprep.mubr.bf16.mxu0 %v178_v2  ;;  %v2289_v59 = vld [vmem:[%s3166_s1 + $0x128] sm:$0xff]   ;;  %v203_v2 = vpack.c.bf16 %v123_v57, %v115_v56  ;;  %v72_v56 = vld [vmem:[%s3167_s0 + $0x138] sm:$0xff]  ;;  %v71_v0 = vld [vmem:[%s3167_s0 + $0x130] sm:$0xff] }
  0x2d   :  { %889 = vmatprep.mubr.bf16.mxu1 %v180_v6  ;;  %1953 = vmatpush3.bf16.msra.mxu0 %v2277_v13  ;;  %v129_v6 = vld [vmem:[%s3167_s0 + $0x300] sm:$0xff]  ;;  %v2295_v13 = vld [vmem:[%s3166_s1 + $0x1b0] sm:$0xff]   ;;  %v78_v55 = vld [vmem:[%s3167_s0 + $0x168] sm:$0xff] }
  0x2e   :  { %2017 = vmatpush3.bf16.msra.mxu1 %v2279_v15  ;;  %1954 = vmatprep.subr.bf16.mxu0 %v2280_v26  ;;  %v154_v15 = vld [vmem:[%s3167_s0 + $0x3c8] sm:$0xff]  ;;  %v209_v18 = vpack.c.bf16 %v137_v7, %v129_v6  ;;  %v153_v26 = vld [vmem:[%s3167_s0 + $0x3c0] sm:$0xff]  ;;  %v80_v57 = vld [vmem:[%s3167_s0 + $0x178] sm:$0xff]  ;;  %v183_v7 = vpack.c.bf16 %v79_v1, %v71_v0 }
  0x2f   :  { %2018 = vmatprep.subr.bf16.mxu1 %v2282_v30  ;;  %v218_v20 = vpack.c.bf16 %v154_v15, %v146_v14  ;;  %v38_v30 = vld [vmem:[%s3167_s0 + $0x28] sm:$0xff]  ;;  %v88_v4 = vld [vmem:[%s3167_s0 + $0x1b8] sm:$0xff]  ;;  %v2300_v0 = vld [vmem:[%s3168_s3] sm:$0xff]  }
  0x30   :  { %v102_v14 = vld [vmem:[%s3167_s0 + $0x228] sm:$0xff]  ;;  %v104_v16 = vld [vmem:[%s3167_s0 + $0x238] sm:$0xff] }
  0x31   :  { %1955 = vmatpush3.bf16.msra.mxu0 %v2281_v28  ;;  %v2299_v28 = vld [vmem:[%s3166_s1 + $0x1b8] sm:$0xff]   ;;  %v110_v15 = vld [vmem:[%s3167_s0 + $0x268] sm:$0xff] }
  0x32   :  { %2019 = vmatpush3.bf16.msra.mxu1 %v2283_v31  ;;  %1956 = vmatprep.subr.bf16.mxu0 %v2284_v42  ;;  %v46_v31 = vld [vmem:[%s3167_s0 + $0x68] sm:$0xff]  ;;  %v112_v17 = vld [vmem:[%s3167_s0 + $0x278] sm:$0xff] }
  0x33   :  { %793 = vmatmul.mubr.bf16.gmra.mrb[8].mxu0 %v177_v10  ;;  %2020 = vmatprep.subr.bf16.mxu1 %v2286_v45  ;;  %v139_v10 = vld [vmem:[%s3167_s0 + $0x350] sm:$0xff]  ;;  %v54_v42 = vld [vmem:[%s3167_s0 + $0xa8] sm:$0xff]  ;;  %v64_v45 = vld [vmem:[%s3167_s0 + $0xf8] sm:$0xff] }
  0x34   :  { %890 = vmatmul.mubr.bf16.gmra.mrb[8].mxu1 %v179_v12  ;;  %800 = vmatprep.mubr.bf16.mxu0 %v186_v19  ;;  %v2294_v12 = vld [vmem:[%s3166_s1 + $0x1f0] sm:$0xff]   ;;  %v211_v19 = vpack.c.bf16 %v139_v10, %v131_v9  ;;  %v85_v10 = vld [vmem:[%s3167_s0 + $0x1a0] sm:$0xff]  ;;  %v2301_v1 = vld [vmem:[%s3168_s3 + $0x8] sm:$0xff]  }
  0x35   :  { %897 = vmatprep.mubr.bf16.mxu1 %v188_v23  ;;  %1957 = vmatpush3.bf16.msra.mxu0 %v2285_v43  ;;  %v145_v23 = vld [vmem:[%s3167_s0 + $0x380] sm:$0xff]  ;;  %v62_v43 = vld [vmem:[%s3167_s0 + $0xe8] sm:$0xff] }
  0x36   :  { %2021 = vmatpush3.bf16.msra.mxu1 %v2287_v47  ;;  %1958 = vmatprep.subr.bf16.mxu0 %v2288_v58  ;;  %v217_v34 = vpack.c.bf16 %v153_v26, %v145_v23  ;;  %v167_v47 = vpack.c.bf16 %v47_v41, %v39_v40  ;;  %v174_v48 = vpack.c.bf16 %v62_v43, %v54_v42  ;;  %v109_v23 = vld [vmem:[%s3167_s0 + $0x260] sm:$0xff]  ;;  %v118_v26 = vld [vmem:[%s3167_s0 + $0x2a8] sm:$0xff]  ;;  %v136_v40 = vld [vmem:[%s3167_s0 + $0x338] sm:$0xff] }
  0x37   :  { %2022 = vmatprep.subr.bf16.mxu1 %v2290_v60  ;;  %v182_v60 = vpack.c.bf16 %v78_v55, %v70_v54  ;;  %v144_v41 = vld [vmem:[%s3167_s0 + $0x378] sm:$0xff] }
  0x39   :  { %1959 = vmatpush3.bf16.msra.mxu0 %v2289_v59 }
  0x3a   :  { %2023 = vmatpush3.bf16.msra.mxu1 %v2291_v61  ;;  %1960 = vmatprep.subr.bf16.mxu0 %v2292_v8  ;;  %v184_v61 = vpack.c.bf16 %v80_v57, %v72_v56 }
  0x3b   :  { %801 = vmatmul.mubr.bf16.gmra.mrb[12].mxu0 %v185_v27  ;;  %2024 = vmatprep.subr.bf16.mxu1 %v2294_v12  ;;  %v147_v27 = vld [vmem:[%s3167_s0 + $0x390] sm:$0xff] }
  0x3c   :  { %898 = vmatmul.mubr.bf16.gmra.mrb[12].mxu1 %v187_v29  ;;  %808 = vmatprep.mubr.bf16.mxu0 %v194_v36  ;;  %v155_v29 = vld [vmem:[%s3167_s0 + $0x3d0] sm:$0xff]  ;;  %v166_v36 = vpack.c.bf16 %v46_v31, %v38_v30 }
  0x3d   :  { %905 = vmatprep.mubr.bf16.mxu1 %v196_v37  ;;  %1961 = vmatpush3.bf16.msra.mxu0 %v2293_v11  ;;  %v219_v35 = vpack.c.bf16 %v155_v29, %v147_v27  ;;  %v168_v37 = vpack.c.bf16 %v48_v33, %v40_v32  ;;  %v93_v11 = vld [vmem:[%s3167_s0 + $0x1e0] sm:$0xff]  ;;  %v87_v12 = vld [vmem:[%s3167_s0 + $0x1b0] sm:$0xff]  ;;  %v126_v27 = vld [vmem:[%s3167_s0 + $0x2e8] sm:$0xff] }
  0x3e   :  { %2025 = vmatpush3.bf16.msra.mxu1 %v2295_v13  ;;  %1962 = vmatprep.subr.bf16.mxu0 %v2296_v22  ;;  %v95_v13 = vld [vmem:[%s3167_s0 + $0x1f0] sm:$0xff]  ;;  %v101_v22 = vld [vmem:[%s3167_s0 + $0x220] sm:$0xff]  ;;  %v128_v29 = vld [vmem:[%s3167_s0 + $0x2f8] sm:$0xff]  ;;  %v206_v32 = vpack.c.bf16 %v126_v27, %v118_v26 }
  0x3f   :  { %2026 = vmatprep.subr.bf16.mxu1 %v2298_v25  ;;  %v111_v25 = vld [vmem:[%s3167_s0 + $0x270] sm:$0xff]  ;;  %v197_v30 = vpack.c.bf16 %v109_v23, %v101_v22  ;;  %v2309_v27 = vld [vmem:[%s3170_s5 + $0x8] sm:$0xff]  }
  0x41   :  { %1963 = vmatpush3.bf16.msra.mxu0 %v2297_v24  ;;  %v103_v24 = vld [vmem:[%s3167_s0 + $0x230] sm:$0xff] }
  0x42   :  { %2027 = vmatpush3.bf16.msra.mxu1 %v2299_v28  ;;  %v120_v28 = vld [vmem:[%s3167_s0 + $0x2b8] sm:$0xff]  ;;  %v199_v31 = vpack.c.bf16 %v111_v25, %v103_v24  ;;  %2124 = vmatprep.subr.bf16.mxu0 %v2300_v0  ;;  %v2308_v24 = vld [vmem:[%s3170_s5] sm:$0xff]  }
  0x43   :  { %809 = vmatmul.mubr.bf16.gmra.mrb[16].mxu0 %v193_v44  ;;  %v56_v44 = vld [vmem:[%s3167_s0 + $0xb8] sm:$0xff]  ;;  %v208_v33 = vpack.c.bf16 %v128_v29, %v120_v28  ;;  %2156 = vmatprep.subr.bf16.mxu1 %v2308_v24 }
  0x44   :  { %906 = vmatmul.mubr.bf16.gmra.mrb[16].mxu1 %v195_v46  ;;  %816 = vmatprep.mubr.bf16.mxu0 %v202_v50  ;;  %v165_v46 = vpack.c.bf16 %v45_v39, %v37_v38  ;;  %v176_v49 = vpack.c.bf16 %v64_v45, %v56_v44  ;;  %v53_v50 = vld [vmem:[%s3167_s0 + $0xa0] sm:$0xff]  ;;  %v134_v38 = vld [vmem:[%s3167_s0 + $0x328] sm:$0xff]  ;;  %v216_v45 = vpack.c.bf16 %v144_v41, %v136_v40 }
  0x45   :  { %913 = vmatprep.mubr.bf16.mxu1 %v204_v53  ;;  %v63_v53 = vld [vmem:[%s3167_s0 + $0xf0] sm:$0xff]  ;;  %v173_v58 = vpack.c.bf16 %v61_v51, %v53_v50  ;;  %v142_v39 = vld [vmem:[%s3167_s0 + $0x368] sm:$0xff] }
  0x46   :  { %v175_v59 = vpack.c.bf16 %v63_v53, %v55_v52  ;;  %v214_v44 = vpack.c.bf16 %v142_v39, %v134_v38  ;;  %v150_v50 = vld [vmem:[%s3167_s0 + $0x3a8] sm:$0xff]  ;;  %v152_v52 = vld [vmem:[%s3167_s0 + $0x3b8] sm:$0xff] }
  0x47   :  { %v158_v51 = vld [vmem:[%s3167_s0 + $0x3e8] sm:$0xff]  ;;  %v160_v53 = vld [vmem:[%s3167_s0 + $0x3f8] sm:$0xff] }
  0x48   :  { %v222_v56 = vpack.c.bf16 %v158_v51, %v150_v50  ;;  %v224_v57 = vpack.c.bf16 %v160_v53, %v152_v52 }
  0x4b   :  { %817 = vmatmul.mubr.bf16.gmra.mrb[20].mxu0 %v201_v62  ;;  %v69_v62 = vld [vmem:[%s3167_s0 + $0x120] sm:$0xff] }
  0x4c   :  { %914 = vmatmul.mubr.bf16.gmra.mrb[20].mxu1 %v203_v2  ;;  %824 = vmatprep.mubr.bf16.mxu0 %v210_v3  ;;  %v86_v2 = vld [vmem:[%s3167_s0 + $0x1a8] sm:$0xff]  ;;  %v181_v6 = vpack.c.bf16 %v77_v63, %v69_v62 }
  0x4d   :  { %921 = vmatprep.mubr.bf16.mxu1 %v212_v5  ;;  %v94_v3 = vld [vmem:[%s3167_s0 + $0x1e8] sm:$0xff]  ;;  %v96_v5 = vld [vmem:[%s3167_s0 + $0x1f8] sm:$0xff] }
  0x4e   :  { %v190_v8 = vpack.c.bf16 %v94_v3, %v86_v2  ;;  %v192_v9 = vpack.c.bf16 %v96_v5, %v88_v4  ;;  %v2302_v2 = vld [vmem:[%s3168_s3 + $0x10] sm:$0xff]   ;;  %v2303_v3 = vld [vmem:[%s3168_s3 + $0x18] sm:$0xff]   ;;  %v2304_v4 = vld [vmem:[%s3168_s3 + $0x20] sm:$0xff]  }
  0x4f   :  { %v2305_v5 = vld [vmem:[%s3168_s3 + $0x28] sm:$0xff]  }
  0x53   :  { %825 = vmatmul.mubr.bf16.gmra.mrb[24].mxu0 %v209_v18  ;;  %v189_v18 = vpack.c.bf16 %v93_v11, %v85_v10  ;;  %v2977_v10 = vld [vmem:[%s3169_s2] ss:$0 sm:$0xff] }
  0x54   :  { %922 = vmatmul.mubr.bf16.gmra.mrb[24].mxu1 %v211_v19  ;;  %832 = vmatprep.mubr.bf16.mxu0 %v218_v20  ;;  %v191_v19 = vpack.c.bf16 %v95_v13, %v87_v12  ;;  %v198_v20 = vpack.c.bf16 %v110_v15, %v102_v14 }
  0x55   :  { %929 = vmatprep.mubr.bf16.mxu1 %v220_v21  ;;  %v200_v21 = vpack.c.bf16 %v112_v17, %v104_v16 }
  0x5b   :  { %833 = vmatmul.mubr.bf16.gmra.mrb[28].mxu0 %v217_v34  ;;  %v117_v34 = vld [vmem:[%s3167_s0 + $0x2a0] sm:$0xff] }
  0x5c   :  { %930 = vmatmul.mubr.bf16.gmra.mrb[28].mxu1 %v219_v35  ;;  %970 = vmatprep.mubr.bf16.mxu0 %v166_v36  ;;  %v125_v35 = vld [vmem:[%s3167_s0 + $0x2e0] sm:$0xff]  ;;  %v119_v36 = vld [vmem:[%s3167_s0 + $0x2b0] sm:$0xff] }
  0x5d   :  { %1067 = vmatprep.mubr.bf16.mxu1 %v168_v37  ;;  %v127_v37 = vld [vmem:[%s3167_s0 + $0x2f0] sm:$0xff]  ;;  %v205_v42 = vpack.c.bf16 %v125_v35, %v117_v34 }
  0x5e   :  { %v207_v43 = vpack.c.bf16 %v127_v37, %v119_v36 }
  0x63   :  { %971 = vmatmul.mubr.bf16.vlgmr.msra.gmra.mrb[32].mxu0 %v165_v46  ;;  %v133_v46 = vld [vmem:[%s3167_s0 + $0x320] sm:$0xff] }
  0x64   :  { %1068 = vmatmul.mubr.bf16.vlgmr.msra.gmra.mrb[32].mxu1 %v167_v47  ;;  %978 = vmatprep.mubr.bf16.mxu0 %v174_v48  ;;  %v141_v47 = vld [vmem:[%s3167_s0 + $0x360] sm:$0xff]  ;;  %v135_v48 = vld [vmem:[%s3167_s0 + $0x330] sm:$0xff] }
  0x65   :  { %1075 = vmatprep.mubr.bf16.mxu1 %v176_v49  ;;  %v143_v49 = vld [vmem:[%s3167_s0 + $0x370] sm:$0xff]  ;;  %v213_v54 = vpack.c.bf16 %v141_v47, %v133_v46  ;;  %2125 = vmatpush3.bf16.msra.mxu0 %v2300_v0 }
  0x66   :  { %v215_v55 = vpack.c.bf16 %v143_v49, %v135_v48  ;;  %2126 = vmatprep.subr.bf16.mxu0 %v2301_v1  ;;  %2157 = vmatpush3.bf16.msra.mxu1 %v2308_v24 }
  0x67   :  { %2158 = vmatprep.subr.bf16.mxu1 %v2309_v27 }
  0x69   :  { %2127 = vmatpush3.bf16.msra.mxu0 %v2301_v1 }
  0x6a   :  { %2128 = vmatprep.subr.bf16.mxu0 %v2302_v2  ;;  %2159 = vmatpush3.bf16.msra.mxu1 %v2309_v27 }
  0x6b   :  { %979 = vmatmul.mubr.bf16.gmra.mrb[36].mxu0 %v173_v58  ;;  %v149_v58 = vld [vmem:[%s3167_s0 + $0x3a0] sm:$0xff] }
  0x6c   :  { %1076 = vmatmul.mubr.bf16.gmra.mrb[36].mxu1 %v175_v59  ;;  %986 = vmatprep.mubr.bf16.mxu0 %v182_v60  ;;  %v157_v59 = vld [vmem:[%s3167_s0 + $0x3e0] sm:$0xff]  ;;  %v151_v60 = vld [vmem:[%s3167_s0 + $0x3b0] sm:$0xff] }
  0x6d   :  { %1083 = vmatprep.mubr.bf16.mxu1 %v184_v61  ;;  %v159_v61 = vld [vmem:[%s3167_s0 + $0x3f0] sm:$0xff]  ;;  %v221_v62 = vpack.c.bf16 %v157_v59, %v149_v58  ;;  %2129 = vmatpush3.bf16.msra.mxu0 %v2302_v2 }
  0x6e   :  { %v223_v63 = vpack.c.bf16 %v159_v61, %v151_v60  ;;  %2130 = vmatprep.subr.bf16.mxu0 %v2303_v3  ;;  %v2313_v61 = vld [vmem:[%s3170_s5 + $0x28] sm:$0xff]  }
  0x71   :  { %2131 = vmatpush3.bf16.msra.mxu0 %v2303_v3 }
  0x72   :  { %2132 = vmatprep.subr.bf16.mxu0 %v2304_v4 }
  0x73   :  { %987 = vmatmul.mubr.bf16.gmra.mrb[40].mxu0 %v181_v6  ;;  %v2306_v6 = vld [vmem:[%s3168_s3 + $0x30] sm:$0xff]  }
  0x74   :  { %1084 = vmatmul.mubr.bf16.gmra.mrb[40].mxu1 %v183_v7  ;;  %994 = vmatprep.mubr.bf16.mxu0 %v190_v8  ;;  %v2307_v7 = vld [vmem:[%s3168_s3 + $0x38] sm:$0xff]  }
  0x75   :  { %1091 = vmatprep.mubr.bf16.mxu1 %v192_v9  ;;  %2133 = vmatpush3.bf16.msra.mxu0 %v2304_v4 }
  0x76   :  { %2134 = vmatprep.subr.bf16.mxu0 %v2305_v5 }
  0x79   :  { %2135 = vmatpush3.bf16.msra.mxu0 %v2305_v5 }
  0x7a   :  { %2136 = vmatprep.subr.bf16.mxu0 %v2306_v6 }
  0x7b   :  { %995 = vmatmul.mubr.bf16.gmra.mrb[44].mxu0 %v189_v18 }
  0x7c   :  { %1092 = vmatmul.mubr.bf16.gmra.mrb[44].mxu1 %v191_v19  ;;  %1002 = vmatprep.mubr.bf16.mxu0 %v198_v20 }
  0x7d   :  { %1099 = vmatprep.mubr.bf16.mxu1 %v200_v21  ;;  %2137 = vmatpush3.bf16.msra.mxu0 %v2306_v6 }
  0x7e   :  { %2138 = vmatprep.subr.bf16.mxu0 %v2307_v7 }
  0x81   :  { %2139 = vmatpush3.bf16.msra.mxu0 %v2307_v7 }
  0x83   :  { %1003 = vmatmul.mubr.bf16.gmra.mrb[48].mxu0 %v197_v30 }
  0x84   :  { %1100 = vmatmul.mubr.bf16.gmra.mrb[48].mxu1 %v199_v31  ;;  %1010 = vmatprep.mubr.bf16.mxu0 %v206_v32 }
  0x85   :  { %1107 = vmatprep.mubr.bf16.mxu1 %v208_v33  ;;  %v2310_v33 = vld [vmem:[%s3170_s5 + $0x10] sm:$0xff]  }
  0x86   :  { %2160 = vmatprep.subr.bf16.mxu1 %v2310_v33 }
  0x87   :  { %2161 = vmatpush3.bf16.msra.mxu1 %v2310_v33 }
  0x8b   :  { %1011 = vmatmul.mubr.bf16.gmra.mrb[52].mxu0 %v205_v42 }
  0x8c   :  { %1108 = vmatmul.mubr.bf16.gmra.mrb[52].mxu1 %v207_v43  ;;  %1018 = vmatprep.mubr.bf16.mxu0 %v214_v44  ;;  %v2311_v43 = vld [vmem:[%s3170_s5 + $0x18] sm:$0xff]  }
  0x8d   :  { %1115 = vmatprep.mubr.bf16.mxu1 %v216_v45  ;;  %2162 = vmatprep.subr.bf16.mxu1 %v2311_v43 }
  0x8e   :  { %2163 = vmatpush3.bf16.msra.mxu1 %v2311_v43 }
  0x93   :  { %1019 = vmatmul.mubr.bf16.gmra.mrb[56].mxu0 %v213_v54  ;;  %v2312_v54 = vld [vmem:[%s3170_s5 + $0x20] sm:$0xff]  }
  0x94   :  { %1116 = vmatmul.mubr.bf16.gmra.mrb[56].mxu1 %v215_v55  ;;  %1026 = vmatprep.mubr.bf16.mxu0 %v222_v56 }
  0x95   :  { %1123 = vmatprep.mubr.bf16.mxu1 %v224_v57  ;;  %2164 = vmatprep.subr.bf16.mxu1 %v2312_v54 }
  0x96   :  { %2165 = vmatpush3.bf16.msra.mxu1 %v2312_v54 }
  0x97   :  { %2166 = vmatprep.subr.bf16.mxu1 %v2313_v61 }
  0x9a   :  { %2167 = vmatpush3.bf16.msra.mxu1 %v2313_v61 }
  0x9b   :  { %1027 = vmatmul.mubr.bf16.gmra.mrb[60].mxu0 %v221_v62 }
  0x9c   :  { %1124 = vmatmul.mubr.bf16.gmra.mrb[60].mxu1 %v223_v63 }
  0xf6   :  { %v1836_v8 = vpop.f32.mrb[0].mxu0 }
  0xf7   :  { %v1900_v9 = vpop.f32.mrb[0].mxu1  ;;  %v1837_v11 = vpop.f32.mrb[1].mxu0 }
  0xf8   :  { %v1838_v12 = vadd.f32 %v1837_v11, %v1836_v8  ;;  %v1901_v13 = vpop.f32.mrb[1].mxu1  ;;  %v1839_v14 = vpop.f32.mrb[2].mxu0 }
  0xf9   :  { %v1902_v15 = vadd.f32 %v1901_v13, %v1900_v9  ;;  %v1903_v16 = vpop.f32.mrb[2].mxu1  ;;  %v1840_v17 = vpop.f32.mrb[3].mxu0 }
  0xfa   :  { %v779_v18 = vadd.f32 %v1838_v12, %v2977_v10  ;;  %v1841_v19 = vadd.f32 %v1840_v17, %v1839_v14  ;;  %v1904_v20 = vpop.f32.mrb[3].mxu1 }
  0xfb   :  { %v1905_v21 = vadd.f32 %v1904_v20, %v1903_v16 }
  0xfc   :  { %v2980_v22 = vadd.f32 %v1902_v15, %v779_v18  ;;  %v782_v23 = vadd.f32 %v1841_v19, %v2977_v10 }
  0xfe   :  { %v2986_v25 = vadd.f32 %v1905_v21, %v782_v23  ;;  %v1842_v26 = vpop.f32.mrb[4].mxu0 }
  0xff   :  { %v1906_v28 = vpop.f32.mrb[4].mxu1  ;;  %v1843_v29 = vpop.f32.mrb[5].mxu0 }
 0x100   :  { %v1844_v30 = vadd.f32 %v1843_v29, %v1842_v26  ;;  %v1907_v31 = vpop.f32.mrb[5].mxu1  ;;  %v1845_v32 = vpop.f32.mrb[6].mxu0 }
 0x101   :  { %v1908_v34 = vadd.f32 %v1907_v31, %v1906_v28  ;;  %v1909_v35 = vpop.f32.mrb[6].mxu1  ;;  %v1846_v36 = vpop.f32.mrb[7].mxu0 }
 0x102   :  { %v787_v37 = vadd.f32 %v1844_v30, %v2977_v10  ;;  %v1847_v38 = vadd.f32 %v1846_v36, %v1845_v32  ;;  %v1910_v39 = vpop.f32.mrb[7].mxu1 }
 0x103   :  { %v1911_v40 = vadd.f32 %v1910_v39, %v1909_v35 }
 0x104   :  { %v2995_v41 = vadd.f32 %v1908_v34, %v787_v37  ;;  %v790_v42 = vadd.f32 %v1847_v38, %v2977_v10 }
 0x106   :  { %v3001_v44 = vadd.f32 %v1911_v40, %v790_v42  ;;  %v1848_v45 = vpop.f32.mrb[8].mxu0 }
 0x107   :  { %v1912_v46 = vpop.f32.mrb[8].mxu1  ;;  %v1849_v47 = vpop.f32.mrb[9].mxu0 }
 0x108   :  { %v1850_v48 = vadd.f32 %v1849_v47, %v1848_v45  ;;  %v1913_v49 = vpop.f32.mrb[9].mxu1  ;;  %v1851_v50 = vpop.f32.mrb[10].mxu0 }
 0x109   :  { %v1914_v51 = vadd.f32 %v1913_v49, %v1912_v46  ;;  %v1915_v52 = vpop.f32.mrb[10].mxu1  ;;  %v1852_v53 = vpop.f32.mrb[11].mxu0 }
 0x10a   :  { %v795_v55 = vadd.f32 %v1850_v48, %v2977_v10  ;;  %v1853_v56 = vadd.f32 %v1852_v53, %v1851_v50  ;;  %v1916_v57 = vpop.f32.mrb[11].mxu1 }
 0x10b   :  { %v1917_v58 = vadd.f32 %v1916_v57, %v1915_v52 }
 0x10c   :  { %v3007_v59 = vadd.f32 %v1914_v51, %v795_v55  ;;  %v798_v60 = vadd.f32 %v1853_v56, %v2977_v10 }
 0x10e   :  { %v3013_v62 = vadd.f32 %v1917_v58, %v798_v60  ;;  %v1854_v63 = vpop.f32.mrb[12].mxu0 }
 0x10f   :  { %v1918_v0 = vpop.f32.mrb[12].mxu1  ;;  %v1855_v1 = vpop.f32.mrb[13].mxu0 }
 0x110   :  { %v1856_v2 = vadd.f32 %v1855_v1, %v1854_v63  ;;  %v1919_v3 = vpop.f32.mrb[13].mxu1  ;;  %v1857_v4 = vpop.f32.mrb[14].mxu0 }
 0x111   :  { %v1920_v5 = vadd.f32 %v1919_v3, %v1918_v0  ;;  %v1921_v6 = vpop.f32.mrb[14].mxu1  ;;  %v1858_v7 = vpop.f32.mrb[15].mxu0 }
 0x112   :  { %v803_v8 = vadd.f32 %v1856_v2, %v2977_v10  ;;  %v1859_v9 = vadd.f32 %v1858_v7, %v1857_v4  ;;  %v1922_v11 = vpop.f32.mrb[15].mxu1 }
 0x113   :  { %v1923_v12 = vadd.f32 %v1922_v11, %v1921_v6 }
 0x114   :  { %v3016_v13 = vadd.f32 %v1920_v5, %v803_v8  ;;  %v806_v14 = vadd.f32 %v1859_v9, %v2977_v10 }
 0x116   :  { %v3019_v15 = vadd.f32 %v1923_v12, %v806_v14  ;;  %v1860_v16 = vpop.f32.mrb[16].mxu0 }
 0x117   :  { %v1924_v17 = vpop.f32.mrb[16].mxu1  ;;  %v1861_v18 = vpop.f32.mrb[17].mxu0 }
 0x118   :  { %v1862_v19 = vadd.f32 %v1861_v18, %v1860_v16  ;;  %v1925_v20 = vpop.f32.mrb[17].mxu1  ;;  %v1863_v21 = vpop.f32.mrb[18].mxu0 }
 0x119   :  { %v1926_v23 = vadd.f32 %v1925_v20, %v1924_v17  ;;  %v1927_v24 = vpop.f32.mrb[18].mxu1  ;;  %v1864_v26 = vpop.f32.mrb[19].mxu0 }
 0x11a   :  { %v811_v27 = vadd.f32 %v1862_v19, %v2977_v10  ;;  %v1865_v28 = vadd.f32 %v1864_v26, %v1863_v21  ;;  %v1928_v29 = vpop.f32.mrb[19].mxu1 }
 0x11b   :  { %v1929_v30 = vadd.f32 %v1928_v29, %v1927_v24 }
 0x11c   :  { %v3022_v31 = vadd.f32 %v1926_v23, %v811_v27  ;;  %v814_v32 = vadd.f32 %v1865_v28, %v2977_v10 }
 0x11e   :  { %v3025_v33 = vadd.f32 %v1929_v30, %v814_v32  ;;  %v1866_v34 = vpop.f32.mrb[20].mxu0 }
 0x11f   :  { %v1930_v35 = vpop.f32.mrb[20].mxu1  ;;  %v1867_v36 = vpop.f32.mrb[21].mxu0 }
 0x120   :  { %v1868_v37 = vadd.f32 %v1867_v36, %v1866_v34  ;;  %v1931_v38 = vpop.f32.mrb[21].mxu1  ;;  %v1869_v39 = vpop.f32.mrb[22].mxu0 }
 0x121   :  { %v1932_v40 = vadd.f32 %v1931_v38, %v1930_v35  ;;  %v1933_v42 = vpop.f32.mrb[22].mxu1  ;;  %v1870_v43 = vpop.f32.mrb[23].mxu0 }
 0x122   :  { %v819_v45 = vadd.f32 %v1868_v37, %v2977_v10  ;;  %v1871_v46 = vadd.f32 %v1870_v43, %v1869_v39  ;;  %v1934_v47 = vpop.f32.mrb[23].mxu1 }
 0x123   :  { %v1935_v48 = vadd.f32 %v1934_v47, %v1933_v42 }
 0x124   :  { %v3028_v49 = vadd.f32 %v1932_v40, %v819_v45  ;;  %v822_v50 = vadd.f32 %v1871_v46, %v2977_v10 }
 0x126   :  { %v3031_v51 = vadd.f32 %v1935_v48, %v822_v50  ;;  %v1872_v52 = vpop.f32.mrb[24].mxu0 }
 0x127   :  { %v1936_v53 = vpop.f32.mrb[24].mxu1  ;;  %v1873_v54 = vpop.f32.mrb[25].mxu0 }
 0x128   :  { %v1874_v55 = vadd.f32 %v1873_v54, %v1872_v52  ;;  %v1937_v56 = vpop.f32.mrb[25].mxu1  ;;  %v1875_v57 = vpop.f32.mrb[26].mxu0 }
 0x129   :  { %v1938_v58 = vadd.f32 %v1937_v56, %v1936_v53  ;;  %v1939_v60 = vpop.f32.mrb[26].mxu1  ;;  %v1876_v61 = vpop.f32.mrb[27].mxu0 }
 0x12a   :  { %v827_v63 = vadd.f32 %v1874_v55, %v2977_v10  ;;  %v1877_v0 = vadd.f32 %v1876_v61, %v1875_v57  ;;  %v1940_v1 = vpop.f32.mrb[27].mxu1 }
 0x12b   :  { %v1941_v2 = vadd.f32 %v1940_v1, %v1939_v60 }
 0x12c   :  { %v3034_v3 = vadd.f32 %v1938_v58, %v827_v63  ;;  %v830_v4 = vadd.f32 %v1877_v0, %v2977_v10 }
 0x12e   :  { %v3037_v5 = vadd.f32 %v1941_v2, %v830_v4  ;;  %v1878_v6 = vpop.f32.mrb[28].mxu0 }
 0x12f   :  { %v1942_v7 = vpop.f32.mrb[28].mxu1  ;;  %v1879_v8 = vpop.f32.mrb[29].mxu0 }
 0x130   :  { %v1880_v9 = vadd.f32 %v1879_v8, %v1878_v6  ;;  %v1943_v11 = vpop.f32.mrb[29].mxu1  ;;  %v1881_v12 = vpop.f32.mrb[30].mxu0 }
 0x131   :  { %v1944_v14 = vadd.f32 %v1943_v11, %v1942_v7  ;;  %v1945_v16 = vpop.f32.mrb[30].mxu1  ;;  %v1882_v17 = vpop.f32.mrb[31].mxu0 }
 0x132   :  { %v835_v18 = vadd.f32 %v1880_v9, %v2977_v10  ;;  %v1883_v19 = vadd.f32 %v1882_v17, %v1881_v12  ;;  %v1946_v20 = vpop.f32.mrb[31].mxu1 }
 0x133   :  { %v1947_v21 = vadd.f32 %v1946_v20, %v1945_v16 }
 0x134   :  { %v3040_v23 = vadd.f32 %v1944_v14, %v835_v18  ;;  %v838_v24 = vadd.f32 %v1883_v19, %v2977_v10 }
 0x136   :  { %v3043_v26 = vadd.f32 %v1947_v21, %v838_v24  ;;  %v1964_v27 = vpop.f32.mrb[32].mxu0 }
 0x137   :  { %v2028_v28 = vpop.f32.mrb[32].mxu1  ;;  %v1965_v29 = vpop.f32.mrb[33].mxu0 }
 0x138   :  { %v1966_v30 = vadd.f32 %v1965_v29, %v1964_v27  ;;  %v2029_v32 = vpop.f32.mrb[33].mxu1  ;;  %v1967_v34 = vpop.f32.mrb[34].mxu0 }
 0x139   :  { %v2030_v35 = vadd.f32 %v2029_v32, %v2028_v28  ;;  %v2031_v36 = vpop.f32.mrb[34].mxu1  ;;  %v1968_v37 = vpop.f32.mrb[35].mxu0 }
 0x13a   :  { %v973_v38 = vadd.f32 %v1966_v30, %v2980_v22  ;;  %v1969_v39 = vadd.f32 %v1968_v37, %v1967_v34  ;;  %v2032_v40 = vpop.f32.mrb[35].mxu1 }
 0x13b   :  { %v2033_v42 = vadd.f32 %v2032_v40, %v2031_v36 }
 0x13c   :  { %v1070_v43 = vadd.f32 %v2030_v35, %v973_v38  ;;  %v976_v45 = vadd.f32 %v1969_v39, %v2986_v25 }
 0x13e   :  { %v1073_v10 = vadd.f32 %v2033_v42, %v976_v45  ;;  %v1970_v46 = vpop.f32.mrb[36].mxu0  ;;  %v1132_v50 = vmax.f32 %v1070_v43, 0.0 }
 0x13f   :  { %v2034_v47 = vpop.f32.mrb[36].mxu1  ;;  %v1971_v48 = vpop.f32.mrb[37].mxu0 }
 0x140   :  { %v1133_v52 = vmax.f32 %v1073_v10, 0.0  ;;  %v1972_v53 = vadd.f32 %v1971_v48, %v1970_v46  ;;  %v2035_v54 = vpop.f32.mrb[37].mxu1  ;;  %v1973_v55 = vpop.f32.mrb[38].mxu0 }
 0x141   :  { %v2036_v56 = vadd.f32 %v2035_v54, %v2034_v47  ;;  %v2037_v57 = vpop.f32.mrb[38].mxu1  ;;  %v1974_v58 = vpop.f32.mrb[39].mxu0 }
 0x142   :  { %v981_v22 = vadd.f32 %v1972_v53, %v2995_v41  ;;  %v1975_v60 = vadd.f32 %v1974_v58, %v1973_v55  ;;  %v2038_v61 = vpop.f32.mrb[39].mxu1  ;;  %v1148_v63 = vpack.c.bf16 %v1133_v52, %v1132_v50 }
 0x143   :  { %v2039_v0 = vadd.f32 %v2038_v61, %v2037_v57 }
 0x144   :  { %v1078_v1 = vadd.f32 %v2036_v56, %v981_v22  ;;  %v984_v25 = vadd.f32 %v1975_v60, %v3001_v44  ;;  %2140 = vmatprep.mubr.bf16.mxu0 %v1148_v63 }
 0x146   :  { %v1081_v2 = vadd.f32 %v2039_v0, %v984_v25  ;;  %v1976_v4 = vpop.f32.mrb[40].mxu0  ;;  %v1134_v8 = vmax.f32 %v1078_v1, 0.0 }
 0x147   :  { %v2040_v6 = vpop.f32.mrb[40].mxu1  ;;  %v1977_v7 = vpop.f32.mrb[41].mxu0 }
 0x148   :  { %v1135_v9 = vmax.f32 %v1081_v2, 0.0  ;;  %v1978_v11 = vadd.f32 %v1977_v7, %v1976_v4  ;;  %v2041_v12 = vpop.f32.mrb[41].mxu1  ;;  %v1979_v14 = vpop.f32.mrb[42].mxu0 }
 0x149   :  { %v2042_v16 = vadd.f32 %v2041_v12, %v2040_v6  ;;  %v2043_v17 = vpop.f32.mrb[42].mxu1  ;;  %v1980_v41 = vpop.f32.mrb[43].mxu0 }
 0x14a   :  { %v1149_v18 = vpack.c.bf16 %v1135_v9, %v1134_v8  ;;  %v989_v19 = vadd.f32 %v1978_v11, %v3007_v59  ;;  %v1981_v20 = vadd.f32 %v1980_v41, %v1979_v14  ;;  %v2044_v21 = vpop.f32.mrb[43].mxu1 }
 0x14b   :  { %v2045_v24 = vadd.f32 %v2044_v21, %v2043_v17 }
 0x14c   :  { %v1086_v44 = vadd.f32 %v2042_v16, %v989_v19  ;;  %v992_v27 = vadd.f32 %v1981_v20, %v3013_v62  ;;  %2141 = vmatmul.mubr.bf16.vlgmr.msra.gmra.mrb[64].mxu0 %v1149_v18 }
 0x14e   :  { %v1089_v28 = vadd.f32 %v2045_v24, %v992_v27  ;;  %v1982_v29 = vpop.f32.mrb[44].mxu0  ;;  %v1136_v34 = vmax.f32 %v1086_v44, 0.0 }
 0x14f   :  { %v2046_v30 = vpop.f32.mrb[44].mxu1  ;;  %v1983_v32 = vpop.f32.mrb[45].mxu0 }
 0x150   :  { %v1137_v35 = vmax.f32 %v1089_v28, 0.0  ;;  %v1984_v36 = vadd.f32 %v1983_v32, %v1982_v29  ;;  %v2047_v37 = vpop.f32.mrb[45].mxu1  ;;  %v1985_v38 = vpop.f32.mrb[46].mxu0 }
 0x151   :  { %v2048_v39 = vadd.f32 %v2047_v37, %v2046_v30  ;;  %v2049_v40 = vpop.f32.mrb[46].mxu1  ;;  %v1986_v42 = vpop.f32.mrb[47].mxu0 }
 0x152   :  { %v997_v59 = vadd.f32 %v1984_v36, %v3016_v13  ;;  %v1987_v43 = vadd.f32 %v1986_v42, %v1985_v38  ;;  %v2050_v45 = vpop.f32.mrb[47].mxu1  ;;  %v1150_v10 = vpack.c.bf16 %v1137_v35, %v1136_v34 }
 0x153   :  { %v2051_v46 = vadd.f32 %v2050_v45, %v2049_v40 }
 0x154   :  { %v1094_v62 = vadd.f32 %v2048_v39, %v997_v59  ;;  %v1000_v47 = vadd.f32 %v1987_v43, %v3019_v15  ;;  %2144 = vmatprep.mubr.bf16.mxu0 %v1150_v10 }
 0x156   :  { %v1097_v48 = vadd.f32 %v2051_v46, %v1000_v47  ;;  %v1988_v50 = vpop.f32.mrb[48].mxu0  ;;  %v1138_v54 = vmax.f32 %v1094_v62, 0.0 }
 0x157   :  { %v2052_v52 = vpop.f32.mrb[48].mxu1  ;;  %v1989_v53 = vpop.f32.mrb[49].mxu0 }
 0x158   :  { %v1139_v55 = vmax.f32 %v1097_v48, 0.0  ;;  %v1990_v56 = vadd.f32 %v1989_v53, %v1988_v50  ;;  %v2053_v57 = vpop.f32.mrb[49].mxu1  ;;  %v1991_v58 = vpop.f32.mrb[50].mxu0 }
 0x159   :  { %v2054_v22 = vadd.f32 %v2053_v57, %v2052_v52  ;;  %v2055_v60 = vpop.f32.mrb[50].mxu1  ;;  %v1992_v13 = vpop.f32.mrb[51].mxu0 }
 0x15a   :  { %v1005_v61 = vadd.f32 %v1990_v56, %v3022_v31  ;;  %v1993_v63 = vadd.f32 %v1992_v13, %v1991_v58  ;;  %v2056_v0 = vpop.f32.mrb[51].mxu1  ;;  %v1151_v1 = vpack.c.bf16 %v1139_v55, %v1138_v54 }
 0x15b   :  { %v2057_v25 = vadd.f32 %v2056_v0, %v2055_v60 }
 0x15c   :  { %v1102_v15 = vadd.f32 %v2054_v22, %v1005_v61  ;;  %v1008_v2 = vadd.f32 %v1993_v63, %v3025_v33  ;;  %2145 = vmatmul.mubr.bf16.gmra.mrb[68].mxu0 %v1151_v1 }
 0x15e   :  { %v1105_v4 = vadd.f32 %v2057_v25, %v1008_v2  ;;  %v1994_v6 = vpop.f32.mrb[52].mxu0  ;;  %v1140_v9 = vmax.f32 %v1102_v15, 0.0  ;;  %v2314_v2 = vld [vmem:[%s3170_s5 + $0x30] sm:$0xff]  }
 0x15f   :  { %v2058_v7 = vpop.f32.mrb[52].mxu1  ;;  %v1995_v8 = vpop.f32.mrb[53].mxu0  ;;  %2168 = vmatprep.subr.bf16.mxu1 %v2314_v2 }
 0x160   :  { %v1141_v11 = vmax.f32 %v1105_v4, 0.0  ;;  %v1996_v12 = vadd.f32 %v1995_v8, %v1994_v6  ;;  %v2059_v14 = vpop.f32.mrb[53].mxu1  ;;  %v1997_v16 = vpop.f32.mrb[54].mxu0  ;;  %2169 = vmatpush3.bf16.msra.mxu1 %v2314_v2  ;;  %v2317_v4 = vld [vmem:[%s3171_s7 + $0x8] sm:$0xff]   ;;  %v2318_v6 = vld [vmem:[%s3171_s7 + $0x10] sm:$0xff]   ;;  %v2320_v8 = vld [vmem:[%s3171_s7 + $0x20] sm:$0xff]  }
 0x161   :  { %v2060_v17 = vadd.f32 %v2059_v14, %v2058_v7  ;;  %v2061_v41 = vpop.f32.mrb[54].mxu1  ;;  %v1998_v31 = vpop.f32.mrb[55].mxu0  ;;  %v2319_v7 = vld [vmem:[%s3171_s7 + $0x18] sm:$0xff]  }
 0x162   :  { %v1013_v18 = vadd.f32 %v1996_v12, %v3028_v49  ;;  %v1999_v19 = vadd.f32 %v1998_v31, %v1997_v16  ;;  %v2062_v20 = vpop.f32.mrb[55].mxu1  ;;  %v1152_v21 = vpack.c.bf16 %v1141_v11, %v1140_v9  ;;  %v2321_v9 = vld [vmem:[%s3171_s7 + $0x28] sm:$0xff]   ;;  %v3088_v11 = vld [vmem:[%s3172_s4] ss:$0 sm:$0xff] }
 0x163   :  { %v2063_v24 = vadd.f32 %v2062_v20, %v2061_v41 }
 0x164   :  { %v1110_v33 = vadd.f32 %v2060_v17, %v1013_v18  ;;  %v1016_v44 = vadd.f32 %v1999_v19, %v3031_v51  ;;  %2148 = vmatprep.mubr.bf16.mxu0 %v1152_v21 }
 0x166   :  { %v1113_v27 = vadd.f32 %v2063_v24, %v1016_v44  ;;  %v2000_v28 = vpop.f32.mrb[56].mxu0  ;;  %v1142_v32 = vmax.f32 %v1110_v33, 0.0 }
 0x167   :  { %v2064_v29 = vpop.f32.mrb[56].mxu1  ;;  %v2001_v30 = vpop.f32.mrb[57].mxu0 }
 0x168   :  { %v1143_v34 = vmax.f32 %v1113_v27, 0.0  ;;  %v2002_v35 = vadd.f32 %v2001_v30, %v2000_v28  ;;  %v2065_v36 = vpop.f32.mrb[57].mxu1  ;;  %v2003_v37 = vpop.f32.mrb[58].mxu0 }
 0x169   :  { %v2066_v38 = vadd.f32 %v2065_v36, %v2064_v29  ;;  %v2067_v39 = vpop.f32.mrb[58].mxu1  ;;  %v2004_v49 = vpop.f32.mrb[59].mxu0 }
 0x16a   :  { %v1021_v40 = vadd.f32 %v2002_v35, %v3034_v3  ;;  %v2005_v42 = vadd.f32 %v2004_v49, %v2003_v37  ;;  %v2068_v59 = vpop.f32.mrb[59].mxu1  ;;  %v1153_v43 = vpack.c.bf16 %v1143_v34, %v1142_v32 }
 0x16b   :  { %v2069_v45 = vadd.f32 %v2068_v59, %v2067_v39 }
 0x16c   :  { %v1118_v51 = vadd.f32 %v2066_v38, %v1021_v40  ;;  %v1024_v10 = vadd.f32 %v2005_v42, %v3037_v5  ;;  %2149 = vmatmul.mubr.bf16.gmra.mrb[72].mxu0 %v1153_v43 }
 0x16e   :  { %v1121_v46 = vadd.f32 %v2069_v45, %v1024_v10  ;;  %v2006_v62 = vpop.f32.mrb[60].mxu0  ;;  %v1144_v50 = vmax.f32 %v1118_v51, 0.0 }
 0x16f   :  { %v2070_v47 = vpop.f32.mrb[60].mxu1  ;;  %v2007_v48 = vpop.f32.mrb[61].mxu0 }
 0x170   :  { %v1145_v52 = vmax.f32 %v1121_v46, 0.0  ;;  %v2008_v53 = vadd.f32 %v2007_v48, %v2006_v62  ;;  %v2071_v54 = vpop.f32.mrb[61].mxu1  ;;  %v2009_v55 = vpop.f32.mrb[62].mxu0 }
 0x171   :  { %v2072_v56 = vadd.f32 %v2071_v54, %v2070_v47  ;;  %v2073_v57 = vpop.f32.mrb[62].mxu1  ;;  %v2010_v3 = vpop.f32.mrb[63].mxu0 }
 0x172   :  { %v1029_v58 = vadd.f32 %v2008_v53, %v3040_v23  ;;  %v2011_v22 = vadd.f32 %v2010_v3, %v2009_v55  ;;  %v2074_v60 = vpop.f32.mrb[63].mxu1  ;;  %v1154_v13 = vpack.c.bf16 %v1145_v52, %v1144_v50  ;;  %v2315_v23 = vld [vmem:[%s3170_s5 + $0x38] sm:$0xff]  }
 0x173   :  { %v2075_v61 = vadd.f32 %v2074_v60, %v2073_v57  ;;  %2170 = vmatprep.subr.bf16.mxu1 %v2315_v23 }
 0x174   :  { %v1126_v5 = vadd.f32 %v2072_v56, %v1029_v58  ;;  %v1032_v63 = vadd.f32 %v2011_v22, %v3043_v26  ;;  %2152 = vmatprep.mubr.bf16.mxu0 %v1154_v13  ;;  %2171 = vmatpush3.bf16.msra.mxu1 %v2315_v23  ;;  %v2316_v26 = vld [vmem:[%s3171_s7] sm:$0xff]   ;;  %v2322_v23 = vld [vmem:[%s3171_s7 + $0x30] sm:$0xff]  }
 0x175   :  { %2188 = vmatprep.subr.bf16.mxu0 %v2316_v26  ;;  %2220 = vmatprep.subr.bf16.mxu1 %v2316_v26 }
 0x176   :  { %v1129_v0 = vadd.f32 %v2075_v61, %v1032_v63  ;;  %v1146_v1 = vmax.f32 %v1126_v5, 0.0  ;;  %2189 = vmatpush3.bf16.msra.mxu0 %v2316_v26 }
 0x177   :  { %2190 = vmatprep.subr.bf16.mxu0 %v2317_v4 }
 0x178   :  { %v1147_v25 = vmax.f32 %v1129_v0, 0.0 }
 0x17a   :  { %v1155_v15 = vpack.c.bf16 %v1147_v25, %v1146_v1  ;;  %2191 = vmatpush3.bf16.msra.mxu0 %v2317_v4 }
 0x17b   :  { %2192 = vmatprep.subr.bf16.mxu0 %v2318_v6 }
 0x17c   :  { %2153 = vmatmul.mubr.bf16.gmra.mrb[76].mxu0 %v1155_v15 }
 0x17e   :  { %2193 = vmatpush3.bf16.msra.mxu0 %v2318_v6 }
 0x17f   :  { %2194 = vmatprep.subr.bf16.mxu0 %v2319_v7 }
 0x182   :  { %2195 = vmatpush3.bf16.msra.mxu0 %v2319_v7 }
 0x183   :  { %2196 = vmatprep.subr.bf16.mxu0 %v2320_v8 }
 0x186   :  { %2197 = vmatpush3.bf16.msra.mxu0 %v2320_v8 }
 0x187   :  { %2198 = vmatprep.subr.bf16.mxu0 %v2321_v9 }
 0x18a   :  { %2199 = vmatpush3.bf16.msra.mxu0 %v2321_v9 }
 0x18b   :  { %2200 = vmatprep.subr.bf16.mxu0 %v2322_v23 }
 0x18e   :  { %2201 = vmatpush3.bf16.msra.mxu0 %v2322_v23 }
 0x21f   :  { %v2142_v12 = vpop.f32.mrb[64].mxu0 }
 0x220   :  { %v1270_v14 = vadd.f32 %v2142_v12, %v3088_v11  ;;  %v1261_v16 = vpop.f32.mrb[65].mxu0 }
 0x221   :  { %v1262_v17 = vadd.f32 %v3088_v11, %v1261_v16  ;;  %v2143_v41 = vpop.f32.mrb[66].mxu0 }
 0x222   :  { %v1273_v31 = vadd.f32 %v2143_v41, %v3088_v11  ;;  %v1264_v18 = vpop.f32.mrb[67].mxu0  ;;  %v1326_v20 = vmax.f32 %v1270_v14, 0.0 }
 0x223   :  { %v1265_v19 = vadd.f32 %v3088_v11, %v1264_v18  ;;  %v1324_v24 = vmax.f32 %v1262_v17, 0.0 }
 0x224   :  { %v1327_v21 = vmax.f32 %v1273_v31, 0.0 }
 0x225   :  { %v1325_v33 = vmax.f32 %v1265_v19, 0.0 }
 0x226   :  { %v1341_v44 = vpack.c.bf16 %v1327_v21, %v1326_v20 }
 0x227   :  { %v1340_v27 = vpack.c.bf16 %v1325_v33, %v1324_v24 }
 0x229   :  { %2172 = vmatprep.mubr.bf16.mxu1 %v1340_v27 }
 0x22a   :  { %2173 = vmatmul.mubr.bf16.vlgmr.msra.gmra.mrb[64].mxu1 %v1341_v44 }
 0x22b   :  { %2228 = vmatpush3.bf16.msra.mxu1 %v2316_v26  ;;  %v2323_v26 = vld [vmem:[%s3171_s7 + $0x38] sm:$0xff]  }
 0x22c   :  { %2221 = vmatprep.subr.bf16.mxu1 %v2317_v4  ;;  %2202 = vmatprep.subr.bf16.mxu0 %v2323_v26 }
 0x22d   :  { %2203 = vmatpush3.bf16.msra.mxu0 %v2323_v26 }
 0x22f   :  { %v2146_v28 = vpop.f32.mrb[68].mxu0  ;;  %2229 = vmatpush3.bf16.msra.mxu1 %v2317_v4  ;;  %v1802_v4 = vld [vmem:[%s3173_s6] ss:$0 sm:$0xff] }
 0x230   :  { %v1286_v29 = vadd.f32 %v2146_v28, %v3088_v11  ;;  %v1277_v30 = vpop.f32.mrb[69].mxu0  ;;  %2222 = vmatprep.subr.bf16.mxu1 %v2318_v6 }
 0x231   :  { %v1278_v32 = vadd.f32 %v3088_v11, %v1277_v30  ;;  %v2147_v34 = vpop.f32.mrb[70].mxu0 }
 0x232   :  { %v1289_v35 = vadd.f32 %v2147_v34, %v3088_v11  ;;  %v1280_v36 = vpop.f32.mrb[71].mxu0  ;;  %v1330_v38 = vmax.f32 %v1286_v29, 0.0 }
 0x233   :  { %v1281_v37 = vadd.f32 %v3088_v11, %v1280_v36  ;;  %2230 = vmatpush3.bf16.msra.mxu1 %v2318_v6  ;;  %v1328_v49 = vmax.f32 %v1278_v32, 0.0 }
 0x234   :  { %v1331_v39 = vmax.f32 %v1289_v35, 0.0  ;;  %2223 = vmatprep.subr.bf16.mxu1 %v2319_v7 }
 0x235   :  { %v1329_v40 = vmax.f32 %v1281_v37, 0.0 }
 0x236   :  { %v1343_v42 = vpack.c.bf16 %v1331_v39, %v1330_v38 }
 0x237   :  { %v1342_v59 = vpack.c.bf16 %v1329_v40, %v1328_v49  ;;  %2231 = vmatpush3.bf16.msra.mxu1 %v2319_v7 }
 0x238   :  { %2224 = vmatprep.subr.bf16.mxu1 %v2320_v8 }
 0x239   :  { %2176 = vmatprep.mubr.bf16.mxu1 %v1342_v59 }
 0x23a   :  { %2177 = vmatmul.mubr.bf16.gmra.mrb[68].mxu1 %v1343_v42 }
 0x23b   :  { %2232 = vmatpush3.bf16.msra.mxu1 %v2320_v8 }
 0x23c   :  { %2225 = vmatprep.subr.bf16.mxu1 %v2321_v9 }
 0x23f   :  { %v2150_v43 = vpop.f32.mrb[72].mxu0  ;;  %2233 = vmatpush3.bf16.msra.mxu1 %v2321_v9 }
 0x240   :  { %v1302_v45 = vadd.f32 %v2150_v43, %v3088_v11  ;;  %v1293_v51 = vpop.f32.mrb[73].mxu0  ;;  %2226 = vmatprep.subr.bf16.mxu1 %v2322_v23 }
 0x241   :  { %v1294_v10 = vadd.f32 %v3088_v11, %v1293_v51  ;;  %v2151_v46 = vpop.f32.mrb[74].mxu0 }
 0x242   :  { %v1305_v62 = vadd.f32 %v2151_v46, %v3088_v11  ;;  %v1296_v47 = vpop.f32.mrb[75].mxu0  ;;  %v1334_v50 = vmax.f32 %v1302_v45, 0.0 }
 0x243   :  { %v1297_v48 = vadd.f32 %v3088_v11, %v1296_v47  ;;  %v1332_v53 = vmax.f32 %v1294_v10, 0.0  ;;  %2234 = vmatpush3.bf16.msra.mxu1 %v2322_v23 }
 0x244   :  { %v1335_v52 = vmax.f32 %v1305_v62, 0.0  ;;  %2227 = vmatprep.subr.bf16.mxu1 %v2323_v26 }
 0x245   :  { %v1333_v54 = vmax.f32 %v1297_v48, 0.0 }
 0x246   :  { %v1345_v55 = vpack.c.bf16 %v1335_v52, %v1334_v50 }
 0x247   :  { %v1344_v56 = vpack.c.bf16 %v1333_v54, %v1332_v53  ;;  %2235 = vmatpush3.bf16.msra.mxu1 %v2323_v26 }
 0x249   :  { %2180 = vmatprep.mubr.bf16.mxu1 %v1344_v56 }
 0x24a   :  { %2181 = vmatmul.mubr.bf16.gmra.mrb[72].mxu1 %v1345_v55 }
 0x24f   :  { %v2154_v57 = vpop.f32.mrb[76].mxu0 }
 0x250   :  { %v1318_v3 = vadd.f32 %v2154_v57, %v3088_v11  ;;  %v1309_v58 = vpop.f32.mrb[77].mxu0 }
 0x251   :  { %v1310_v22 = vadd.f32 %v3088_v11, %v1309_v58  ;;  %v2155_v60 = vpop.f32.mrb[78].mxu0 }
 0x252   :  { %v1321_v13 = vadd.f32 %v2155_v60, %v3088_v11  ;;  %v1312_v61 = vpop.f32.mrb[79].mxu0  ;;  %v1338_v63 = vmax.f32 %v1318_v3, 0.0 }
 0x253   :  { %v1313_v5 = vadd.f32 %v3088_v11, %v1312_v61  ;;  %v1336_v1 = vmax.f32 %v1310_v22, 0.0 }
 0x254   :  { %v1339_v0 = vmax.f32 %v1321_v13, 0.0 }
 0x255   :  { %v1337_v25 = vmax.f32 %v1313_v5, 0.0 }
 0x256   :  { %v1347_v15 = vpack.c.bf16 %v1339_v0, %v1338_v63  ;;  %v1811_v0 = vld [vmem:[%s3174_s8] ss:$0 sm:$0xff] }
 0x257   :  { %v1346_v2 = vpack.c.bf16 %v1337_v25, %v1336_v1 }
 0x259   :  { %2184 = vmatprep.mubr.bf16.mxu1 %v1346_v2 }
 0x25a   :  { %2185 = vmatmul.mubr.bf16.gmra.mrb[76].mxu1 %v1347_v15 }
 0x2fd   :  { %v2174_v6 = vpop.f32.mrb[64].mxu1 }
 0x2fe   :  { %v1462_v7 = vadd.f32 %v2174_v6, %v1802_v4  ;;  %v1453_v8 = vpop.f32.mrb[65].mxu1 }
 0x2ff   :  { %v1454_v9 = vadd.f32 %v1802_v4, %v1453_v8  ;;  %v2175_v11 = vpop.f32.mrb[66].mxu1 }
 0x300   :  { %v1465_v12 = vadd.f32 %v2175_v11, %v1802_v4  ;;  %v1456_v14 = vpop.f32.mrb[67].mxu1  ;;  %v1518_v17 = vmax.f32 %v1462_v7, 0.0 }
 0x301   :  { %v1457_v16 = vadd.f32 %v1802_v4, %v1456_v14  ;;  %v1516_v31 = vmax.f32 %v1454_v9, 0.0 }
 0x302   :  { %v1519_v41 = vmax.f32 %v1465_v12, 0.0 }
 0x303   :  { %v1517_v18 = vmax.f32 %v1457_v16, 0.0 }
 0x304   :  { %v1533_v19 = vpack.c.bf16 %v1519_v41, %v1518_v17 }
 0x305   :  { %v1532_v20 = vpack.c.bf16 %v1517_v18, %v1516_v31 }
 0x307   :  { %2204 = vmatprep.mubr.bf16.mxu0 %v1532_v20 }
 0x308   :  { %2205 = vmatmul.mubr.bf16.vlgmr.msra.gmra.mrb[80].mxu0 %v1533_v19 }
 0x30d   :  { %v2178_v21 = vpop.f32.mrb[68].mxu1 }
 0x30e   :  { %v1478_v24 = vadd.f32 %v2178_v21, %v1802_v4  ;;  %v1469_v33 = vpop.f32.mrb[69].mxu1 }
 0x30f   :  { %v1470_v44 = vadd.f32 %v1802_v4, %v1469_v33  ;;  %v2179_v27 = vpop.f32.mrb[70].mxu1 }
 0x310   :  { %v1481_v28 = vadd.f32 %v2179_v27, %v1802_v4  ;;  %v1472_v29 = vpop.f32.mrb[71].mxu1  ;;  %v1522_v32 = vmax.f32 %v1478_v24, 0.0 }
 0x311   :  { %v1473_v30 = vadd.f32 %v1802_v4, %v1472_v29  ;;  %v1520_v35 = vmax.f32 %v1470_v44, 0.0 }
 0x312   :  { %v1523_v34 = vmax.f32 %v1481_v28, 0.0 }
 0x313   :  { %v1521_v36 = vmax.f32 %v1473_v30, 0.0 }
 0x314   :  { %v1535_v37 = vpack.c.bf16 %v1523_v34, %v1522_v32 }
 0x315   :  { %v1534_v38 = vpack.c.bf16 %v1521_v36, %v1520_v35 }
 0x317   :  { %2208 = vmatprep.mubr.bf16.mxu0 %v1534_v38 }
 0x318   :  { %2209 = vmatmul.mubr.bf16.gmra.mrb[84].mxu0 %v1535_v37 }
 0x31d   :  { %v2182_v39 = vpop.f32.mrb[72].mxu1 }
 0x31e   :  { %v1494_v49 = vadd.f32 %v2182_v39, %v1802_v4  ;;  %v1485_v40 = vpop.f32.mrb[73].mxu1 }
 0x31f   :  { %v1486_v42 = vadd.f32 %v1802_v4, %v1485_v40  ;;  %v2183_v59 = vpop.f32.mrb[74].mxu1 }
 0x320   :  { %v1497_v43 = vadd.f32 %v2183_v59, %v1802_v4  ;;  %v1488_v45 = vpop.f32.mrb[75].mxu1  ;;  %v1526_v10 = vmax.f32 %v1494_v49, 0.0 }
 0x321   :  { %v1489_v51 = vadd.f32 %v1802_v4, %v1488_v45  ;;  %v1524_v62 = vmax.f32 %v1486_v42, 0.0 }
 0x322   :  { %v1527_v46 = vmax.f32 %v1497_v43, 0.0 }
 0x323   :  { %v1525_v47 = vmax.f32 %v1489_v51, 0.0 }
 0x324   :  { %v1537_v48 = vpack.c.bf16 %v1527_v46, %v1526_v10 }
 0x325   :  { %v1536_v50 = vpack.c.bf16 %v1525_v47, %v1524_v62 }
 0x327   :  { %2212 = vmatprep.mubr.bf16.mxu1 %v1536_v50 }
 0x328   :  { %2213 = vmatmul.mubr.bf16.vlgmr.msra.gmra.mrb[80].mxu1 %v1537_v48 }
 0x32d   :  { %v2186_v52 = vpop.f32.mrb[76].mxu1 }
 0x32e   :  { %v1510_v53 = vadd.f32 %v2186_v52, %v1802_v4  ;;  %v1501_v54 = vpop.f32.mrb[77].mxu1 }
 0x32f   :  { %v1502_v55 = vadd.f32 %v1802_v4, %v1501_v54  ;;  %v2187_v56 = vpop.f32.mrb[78].mxu1 }
 0x330   :  { %v1513_v57 = vadd.f32 %v2187_v56, %v1802_v4  ;;  %v1504_v3 = vpop.f32.mrb[79].mxu1  ;;  %v1530_v22 = vmax.f32 %v1510_v53, 0.0 }
 0x331   :  { %v1505_v58 = vadd.f32 %v1802_v4, %v1504_v3  ;;  %v1528_v13 = vmax.f32 %v1502_v55, 0.0 }
 0x332   :  { %v1531_v60 = vmax.f32 %v1513_v57, 0.0 }
 0x333   :  { %v1529_v61 = vmax.f32 %v1505_v58, 0.0 }
 0x334   :  { %v1539_v5 = vpack.c.bf16 %v1531_v60, %v1530_v22 }
 0x335   :  { %v1538_v63 = vpack.c.bf16 %v1529_v61, %v1528_v13 }
 0x337   :  { %2216 = vmatprep.mubr.bf16.mxu1 %v1538_v63 }
 0x338   :  { %2217 = vmatmul.mubr.bf16.gmra.mrb[84].mxu1 %v1539_v5 }
 0x3db   :  { %v2206_v1 = vpop.f32.mrb[80].mxu0 }
 0x3dc   :  { %v1654_v25 = vadd.f32 %v2206_v1, %v1811_v0  ;;  %v1645_v15 = vpop.f32.mrb[81].mxu0 }
 0x3dd   :  { %v1646_v2 = vadd.f32 %v1811_v0, %v1645_v15  ;;  %v2207_v23 = vpop.f32.mrb[82].mxu0 }
 0x3de   :  { %1710 = vst [vmem:[%s3175_s9 + $0x10] sm:$0xff] %v1654_v25  ;;  %v1657_v26 = vadd.f32 %v2207_v23, %v1811_v0  ;;  %v1648_v4 = vpop.f32.mrb[83].mxu0 }
 0x3df   :  { %1708 = vst [vmem:[%s3175_s9] sm:$0xff] %v1646_v2  ;;  %v1649_v6 = vadd.f32 %v1811_v0, %v1648_v4 }
 0x3e0   :  { %1711 = vst [vmem:[%s3175_s9 + $0x18] sm:$0xff] %v1657_v26 }
 0x3e1   :  { %1709 = vst [vmem:[%s3175_s9 + $0x8] sm:$0xff] %v1649_v6 }
 0x3eb   :  { %v2210_v7 = vpop.f32.mrb[84].mxu0 }
 0x3ec   :  { %v1670_v8 = vadd.f32 %v2210_v7, %v1811_v0  ;;  %v1661_v9 = vpop.f32.mrb[85].mxu0 }
 0x3ed   :  { %v1662_v11 = vadd.f32 %v1811_v0, %v1661_v9  ;;  %v2211_v12 = vpop.f32.mrb[86].mxu0 }
 0x3ee   :  { %1714 = vst [vmem:[%s3175_s9 + $0x30] sm:$0xff] %v1670_v8  ;;  %v1673_v14 = vadd.f32 %v2211_v12, %v1811_v0  ;;  %v1664_v16 = vpop.f32.mrb[87].mxu0 }
 0x3ef   :  { %1712 = vst [vmem:[%s3175_s9 + $0x20] sm:$0xff] %v1662_v11  ;;  %v1665_v17 = vadd.f32 %v1811_v0, %v1664_v16 }
 0x3f0   :  { %1715 = vst [vmem:[%s3175_s9 + $0x38] sm:$0xff] %v1673_v14 }
 0x3f1   :  { %1713 = vst [vmem:[%s3175_s9 + $0x28] sm:$0xff] %v1665_v17 }
 0x3fb   :  { %v2214_v41 = vpop.f32.mrb[80].mxu1 }
 0x3fc   :  { %v1686_v31 = vadd.f32 %v2214_v41, %v1811_v0  ;;  %v1677_v18 = vpop.f32.mrb[81].mxu1 }
 0x3fd   :  { %v1678_v19 = vadd.f32 %v1811_v0, %v1677_v18  ;;  %v2215_v20 = vpop.f32.mrb[82].mxu1 }
 0x3fe   :  { %1718 = vst [vmem:[%s3175_s9 + $0x50] sm:$0xff] %v1686_v31  ;;  %v1689_v21 = vadd.f32 %v2215_v20, %v1811_v0  ;;  %v1680_v24 = vpop.f32.mrb[83].mxu1 }
 0x3ff   :  { %1716 = vst [vmem:[%s3175_s9 + $0x40] sm:$0xff] %v1678_v19  ;;  %v1681_v33 = vadd.f32 %v1811_v0, %v1680_v24 }
 0x400   :  { %1719 = vst [vmem:[%s3175_s9 + $0x58] sm:$0xff] %v1689_v21 }
 0x401   :  { %1717 = vst [vmem:[%s3175_s9 + $0x48] sm:$0xff] %v1681_v33 }
 0x40b   :  { %v2218_v44 = vpop.f32.mrb[84].mxu1 }
 0x40c   :  { %v1702_v27 = vadd.f32 %v2218_v44, %v1811_v0  ;;  %v1693_v28 = vpop.f32.mrb[85].mxu1 }
 0x40d   :  { %v1694_v29 = vadd.f32 %v1811_v0, %v1693_v28  ;;  %v2219_v30 = vpop.f32.mrb[86].mxu1 }
 0x40e   :  { %1722 = vst [vmem:[%s3175_s9 + $0x70] sm:$0xff] %v1702_v27  ;;  %v1705_v32 = vadd.f32 %v2219_v30, %v1811_v0  ;;  %v1696_v34 = vpop.f32.mrb[87].mxu1 }
 0x40f   :  { %1720 = vst [vmem:[%s3175_s9 + $0x60] sm:$0xff] %v1694_v29  ;;  %v1697_v35 = vadd.f32 %v1811_v0, %v1696_v34 }
 0x410   :  { %1723 = vst [vmem:[%s3175_s9 + $0x78] sm:$0xff] %v1705_v32 }
 0x411   :  { %1721 = vst [vmem:[%s3175_s9 + $0x68] sm:$0xff] %v1697_v35 }

// kernel: forward.1
= control target key start
LH: loop header
LB: loop body
LE: loop exit
PB: predicated region body
PF: predicated region fallthrough
CT: control target
= control target key end

     0   :  { %s3166_s1 = inlined_call_operand.vmem [shape: bf16[1024,128], index: 1, kind: input, shape index: {}]   ;;  %s3167_s0 = inlined_call_operand.vmem [shape: f32[128,1024], index: 0, kind: input, shape index: {}]   ;;  %s3168_s3 = inlined_call_operand.vmem [shape: bf16[128,128], index: 3, kind: input, shape index: {}]   ;;  %s3169_s2 = inlined_call_operand.vmem [shape: f32[1,128], index: 2, kind: input, shape index: {}]   ;;  %s3170_s5 = inlined_call_operand.vmem [shape: bf16[128,128], index: 5, kind: input, shape index: {}]   ;;  %s3171_s7 = inlined_call_operand.vmem [shape: bf16[128,128], index: 7, kind: input, shape index: {}]   ;;  %s3172_s4 = inlined_call_operand.vmem [shape: f32[1,128], index: 4, kind: input, shape index: {}]   ;;  %s3173_s6 = inlined_call_operand.vmem [shape: f32[1,128], index: 6, kind: input, shape index: {}]   ;;  %s3174_s8 = inlined_call_operand.vmem [shape: f32[1,128], index: 8, kind: input, shape index: {}]   ;;  %s3175_s9 = inlined_call_operand.vmem [shape: f32[128,128], index: 9, kind: output, shape index: {}]  }
   0x1   :  { %v2236_v0 = vld [vmem:[%s3166_s1 + $0x40] sm:$0xff]   ;;  %v2240_v4 = vld [vmem:[%s3166_s1 + $0x48] sm:$0xff]   ;;  %v2244_v8 = vld [vmem:[%s3166_s1 + $0x50] sm:$0xff]  }
   0x2   :  { %v2237_v1 = vld [vmem:[%s3166_s1 + $0xc0] sm:$0xff]   ;;  %1820 = vmatprep.subr.bf16.mxu0 %v2236_v0  ;;  %v2241_v5 = vld [vmem:[%s3166_s1 + $0xc8] sm:$0xff]   ;;  %v2245_v9 = vld [vmem:[%s3166_s1 + $0xd0] sm:$0xff]  }
   0x3   :  { %v2238_v2 = vld [vmem:[%s3166_s1] sm:$0xff]   ;;  %1884 = vmatprep.subr.bf16.mxu1 %v2237_v1  ;;  %v2242_v6 = vld [vmem:[%s3166_s1 + $0x8] sm:$0xff]   ;;  %v2246_v10 = vld [vmem:[%s3166_s1 + $0x10] sm:$0xff]  }
   0x4   :  { %v2239_v3 = vld [vmem:[%s3166_s1 + $0x80] sm:$0xff]   ;;  %1821 = vmatpush3.bf16.msra.mxu0 %v2238_v2  ;;  %v2243_v7 = vld [vmem:[%s3166_s1 + $0x88] sm:$0xff]   ;;  %v2247_v11 = vld [vmem:[%s3166_s1 + $0x90] sm:$0xff]  }
   0x5   :  { %1885 = vmatpush3.bf16.msra.mxu1 %v2239_v3  ;;  %1822 = vmatprep.subr.bf16.mxu0 %v2240_v4  ;;  %v2248_v12 = vld [vmem:[%s3166_s1 + $0x58] sm:$0xff]   ;;  %v2252_v16 = vld [vmem:[%s3166_s1 + $0x60] sm:$0xff]   ;;  %v2256_v20 = vld [vmem:[%s3166_s1 + $0x68] sm:$0xff]  }
   0x6   :  { %1886 = vmatprep.subr.bf16.mxu1 %v2241_v5  ;;  %v2249_v13 = vld [vmem:[%s3166_s1 + $0xd8] sm:$0xff]   ;;  %v2253_v17 = vld [vmem:[%s3166_s1 + $0xe0] sm:$0xff]   ;;  %v2257_v21 = vld [vmem:[%s3166_s1 + $0xe8] sm:$0xff]  }
   0x7   :  { %v2250_v14 = vld [vmem:[%s3166_s1 + $0x18] sm:$0xff]   ;;  %v2254_v18 = vld [vmem:[%s3166_s1 + $0x20] sm:$0xff]   ;;  %v2258_v22 = vld [vmem:[%s3166_s1 + $0x28] sm:$0xff]  }
   0x8   :  { %1823 = vmatpush3.bf16.msra.mxu0 %v2242_v6  ;;  %v2251_v15 = vld [vmem:[%s3166_s1 + $0x98] sm:$0xff]   ;;  %v2255_v19 = vld [vmem:[%s3166_s1 + $0xa0] sm:$0xff]   ;;  %v2259_v23 = vld [vmem:[%s3166_s1 + $0xa8] sm:$0xff]  }
   0x9   :  { %1887 = vmatpush3.bf16.msra.mxu1 %v2243_v7  ;;  %1824 = vmatprep.subr.bf16.mxu0 %v2244_v8  ;;  %v2260_v24 = vld [vmem:[%s3166_s1 + $0x70] sm:$0xff]   ;;  %v2264_v28 = vld [vmem:[%s3166_s1 + $0x78] sm:$0xff]   ;;  %v34_v32 = vld [vmem:[%s3167_s0 + $0x8] sm:$0xff] }
   0xa   :  { %1888 = vmatprep.subr.bf16.mxu1 %v2245_v9  ;;  %v2261_v25 = vld [vmem:[%s3166_s1 + $0xf0] sm:$0xff]   ;;  %v2265_v29 = vld [vmem:[%s3166_s1 + $0xf8] sm:$0xff]   ;;  %v42_v33 = vld [vmem:[%s3167_s0 + $0x48] sm:$0xff] }
   0xb   :  { %v2262_v26 = vld [vmem:[%s3166_s1 + $0x30] sm:$0xff]   ;;  %v2266_v30 = vld [vmem:[%s3166_s1 + $0x38] sm:$0xff]   ;;  %v162_v35 = vpack.c.bf16 %v42_v33, %v34_v32  ;;  %v33_v37 = vld [vmem:[%s3167_s0] sm:$0xff] }
   0xc   :  { %1825 = vmatpush3.bf16.msra.mxu0 %v2246_v10  ;;  %v2263_v27 = vld [vmem:[%s3166_s1 + $0xb0] sm:$0xff]   ;;  %v2267_v31 = vld [vmem:[%s3166_s1 + $0xb8] sm:$0xff]   ;;  %v41_v38 = vld [vmem:[%s3167_s0 + $0x40] sm:$0xff] }
   0xd   :  { %1889 = vmatpush3.bf16.msra.mxu1 %v2247_v11  ;;  %1826 = vmatprep.subr.bf16.mxu0 %v2248_v12  ;;  %v36_v34 = vld [vmem:[%s3167_s0 + $0x18] sm:$0xff]  ;;  %v161_v40 = vpack.c.bf16 %v41_v38, %v33_v37  ;;  %v35_v41 = vld [vmem:[%s3167_s0 + $0x10] sm:$0xff]  ;;  %v2268_v44 = vld [vmem:[%s3166_s1 + $0x140] sm:$0xff]  }
   0xe   :  { %1890 = vmatprep.subr.bf16.mxu1 %v2249_v13  ;;  %v44_v36 = vld [vmem:[%s3167_s0 + $0x58] sm:$0xff]  ;;  %v43_v42 = vld [vmem:[%s3167_s0 + $0x50] sm:$0xff]  ;;  %776 = vmatprep.mubr.bf16.mxu0 %v162_v35  ;;  %v2269_v45 = vld [vmem:[%s3166_s1 + $0x100] sm:$0xff]  }
   0xf   :  { %v164_v39 = vpack.c.bf16 %v44_v36, %v36_v34  ;;  %v163_v43 = vpack.c.bf16 %v43_v42, %v35_v41  ;;  %v2270_v46 = vld [vmem:[%s3166_s1 + $0x1c0] sm:$0xff]   ;;  %v50_v48 = vld [vmem:[%s3167_s0 + $0x88] sm:$0xff]  ;;  %v52_v50 = vld [vmem:[%s3167_s0 + $0x98] sm:$0xff] }
  0x10   :  { %1827 = vmatpush3.bf16.msra.mxu0 %v2250_v14  ;;  %v2271_v47 = vld [vmem:[%s3166_s1 + $0x180] sm:$0xff]   ;;  %v58_v49 = vld [vmem:[%s3167_s0 + $0xc8] sm:$0xff]  ;;  %v60_v51 = vld [vmem:[%s3167_s0 + $0xd8] sm:$0xff] }
  0x11   :  { %1891 = vmatpush3.bf16.msra.mxu1 %v2251_v15  ;;  %1828 = vmatprep.subr.bf16.mxu0 %v2252_v16  ;;  %v170_v52 = vpack.c.bf16 %v58_v49, %v50_v48  ;;  %v172_v53 = vpack.c.bf16 %v60_v51, %v52_v50  ;;  %v49_v54 = vld [vmem:[%s3167_s0 + $0x80] sm:$0xff]  ;;  %v51_v56 = vld [vmem:[%s3167_s0 + $0x90] sm:$0xff]  ;;  %v2272_v60 = vld [vmem:[%s3166_s1 + $0x148] sm:$0xff]  }
  0x12   :  { %1892 = vmatprep.subr.bf16.mxu1 %v2253_v17  ;;  %873 = vmatprep.mubr.bf16.mxu1 %v164_v39  ;;  %v57_v55 = vld [vmem:[%s3167_s0 + $0xc0] sm:$0xff]  ;;  %v59_v58 = vld [vmem:[%s3167_s0 + $0xd0] sm:$0xff]  ;;  %v2273_v61 = vld [vmem:[%s3166_s1 + $0x108] sm:$0xff]  }
  0x13   :  { %v169_v57 = vpack.c.bf16 %v57_v55, %v49_v54  ;;  %v171_v59 = vpack.c.bf16 %v59_v58, %v51_v56  ;;  %v2274_v62 = vld [vmem:[%s3166_s1 + $0x1c8] sm:$0xff]   ;;  %v68_v3 = vld [vmem:[%s3167_s0 + $0x118] sm:$0xff]  ;;  %v65_v5 = vld [vmem:[%s3167_s0 + $0x100] sm:$0xff] }
  0x14   :  { %1829 = vmatpush3.bf16.msra.mxu0 %v2254_v18  ;;  %v2275_v63 = vld [vmem:[%s3166_s1 + $0x188] sm:$0xff]   ;;  %v76_v4 = vld [vmem:[%s3167_s0 + $0x158] sm:$0xff]  ;;  %v73_v7 = vld [vmem:[%s3167_s0 + $0x140] sm:$0xff] }
  0x15   :  { %1893 = vmatpush3.bf16.msra.mxu1 %v2255_v19  ;;  %1830 = vmatprep.subr.bf16.mxu0 %v2256_v20  ;;  %v66_v0 = vld [vmem:[%s3167_s0 + $0x108] sm:$0xff]  ;;  %v180_v6 = vpack.c.bf16 %v76_v4, %v68_v3  ;;  %v67_v8 = vld [vmem:[%s3167_s0 + $0x110] sm:$0xff]  ;;  %v177_v10 = vpack.c.bf16 %v73_v7, %v65_v5  ;;  %v84_v18 = vld [vmem:[%s3167_s0 + $0x198] sm:$0xff] }
  0x16   :  { %1894 = vmatprep.subr.bf16.mxu1 %v2257_v21  ;;  %v74_v1 = vld [vmem:[%s3167_s0 + $0x148] sm:$0xff]  ;;  %v75_v9 = vld [vmem:[%s3167_s0 + $0x150] sm:$0xff]  ;;  %v92_v20 = vld [vmem:[%s3167_s0 + $0x1d8] sm:$0xff] }
  0x17   :  { %v178_v2 = vpack.c.bf16 %v74_v1, %v66_v0  ;;  %v2276_v11 = vld [vmem:[%s3166_s1 + $0x150] sm:$0xff]   ;;  %v179_v12 = vpack.c.bf16 %v75_v9, %v67_v8  ;;  %v82_v16 = vld [vmem:[%s3167_s0 + $0x188] sm:$0xff]  ;;  %v81_v21 = vld [vmem:[%s3167_s0 + $0x180] sm:$0xff] }
  0x18   :  { %1831 = vmatpush3.bf16.msra.mxu0 %v2258_v22  ;;  %v2277_v13 = vld [vmem:[%s3166_s1 + $0x110] sm:$0xff]   ;;  %v90_v17 = vld [vmem:[%s3167_s0 + $0x1c8] sm:$0xff]  ;;  %v89_v22 = vld [vmem:[%s3167_s0 + $0x1c0] sm:$0xff] }
  0x19   :  { %1895 = vmatpush3.bf16.msra.mxu1 %v2259_v23  ;;  %1832 = vmatprep.subr.bf16.mxu0 %v2260_v24  ;;  %v2278_v14 = vld [vmem:[%s3166_s1 + $0x1d0] sm:$0xff]   ;;  %v186_v19 = vpack.c.bf16 %v90_v17, %v82_v16  ;;  %v188_v23 = vpack.c.bf16 %v92_v20, %v84_v18  ;;  %v98_v32 = vld [vmem:[%s3167_s0 + $0x208] sm:$0xff]  ;;  %v100_v34 = vld [vmem:[%s3167_s0 + $0x218] sm:$0xff] }
  0x1a   :  { %1896 = vmatprep.subr.bf16.mxu1 %v2261_v25  ;;  %v2279_v15 = vld [vmem:[%s3166_s1 + $0x190] sm:$0xff]   ;;  %v106_v33 = vld [vmem:[%s3167_s0 + $0x248] sm:$0xff]  ;;  %v108_v35 = vld [vmem:[%s3167_s0 + $0x258] sm:$0xff] }
  0x1b   :  { %v83_v24 = vld [vmem:[%s3167_s0 + $0x190] sm:$0xff]  ;;  %v194_v36 = vpack.c.bf16 %v106_v33, %v98_v32  ;;  %v196_v37 = vpack.c.bf16 %v108_v35, %v100_v34  ;;  %v97_v38 = vld [vmem:[%s3167_s0 + $0x200] sm:$0xff]  ;;  %v114_v48 = vld [vmem:[%s3167_s0 + $0x288] sm:$0xff] }
  0x1c   :  { %1833 = vmatpush3.bf16.msra.mxu0 %v2262_v26  ;;  %v91_v25 = vld [vmem:[%s3167_s0 + $0x1d0] sm:$0xff]  ;;  %v2280_v26 = vld [vmem:[%s3166_s1 + $0x158] sm:$0xff]   ;;  %v105_v39 = vld [vmem:[%s3167_s0 + $0x240] sm:$0xff] }
  0x1d   :  { %1897 = vmatpush3.bf16.msra.mxu1 %v2263_v27  ;;  %1834 = vmatprep.subr.bf16.mxu0 %v2264_v28  ;;  %v185_v27 = vpack.c.bf16 %v89_v22, %v81_v21  ;;  %v2281_v28 = vld [vmem:[%s3166_s1 + $0x118] sm:$0xff]   ;;  %v107_v41 = vld [vmem:[%s3167_s0 + $0x250] sm:$0xff]  ;;  %v2284_v42 = vld [vmem:[%s3166_s1 + $0x160] sm:$0xff]  }
  0x1e   :  { %1898 = vmatprep.subr.bf16.mxu1 %v2265_v29  ;;  %v187_v29 = vpack.c.bf16 %v91_v25, %v83_v24  ;;  %v122_v49 = vld [vmem:[%s3167_s0 + $0x2c8] sm:$0xff]  ;;  %v116_v51 = vld [vmem:[%s3167_s0 + $0x298] sm:$0xff]  ;;  %v113_v54 = vld [vmem:[%s3167_s0 + $0x280] sm:$0xff] }
  0x1f   :  { %v202_v50 = vpack.c.bf16 %v122_v49, %v114_v48  ;;  %v121_v55 = vld [vmem:[%s3167_s0 + $0x2c0] sm:$0xff]  ;;  %v115_v56 = vld [vmem:[%s3167_s0 + $0x290] sm:$0xff]  ;;  %v2288_v58 = vld [vmem:[%s3166_s1 + $0x168] sm:$0xff]  }
  0x20   :  { %1835 = vmatpush3.bf16.msra.mxu0 %v2266_v30  ;;  %v2282_v30 = vld [vmem:[%s3166_s1 + $0x1d8] sm:$0xff]   ;;  %v138_v0 = vld [vmem:[%s3167_s0 + $0x348] sm:$0xff]  ;;  %v137_v7 = vld [vmem:[%s3167_s0 + $0x340] sm:$0xff] }
  0x21   :  { %1899 = vmatpush3.bf16.msra.mxu1 %v2267_v31  ;;  %1948 = vmatprep.subr.bf16.mxu0 %v2268_v44  ;;  %v2283_v31 = vld [vmem:[%s3166_s1 + $0x198] sm:$0xff]   ;;  %v193_v44 = vpack.c.bf16 %v105_v39, %v97_v38  ;;  %v2292_v8 = vld [vmem:[%s3166_s1 + $0x170] sm:$0xff]   ;;  %v37_v38 = vld [vmem:[%s3167_s0 + $0x20] sm:$0xff] }
  0x22   :  { %2012 = vmatprep.subr.bf16.mxu1 %v2270_v46  ;;  %v132_v1 = vld [vmem:[%s3167_s0 + $0x318] sm:$0xff]  ;;  %v131_v9 = vld [vmem:[%s3167_s0 + $0x310] sm:$0xff]  ;;  %v45_v39 = vld [vmem:[%s3167_s0 + $0x60] sm:$0xff] }
  0x23   :  { %777 = vmatmul.mubr.bf16.vlgmr.msra.gmra.mrb[0].mxu0 %v161_v40  ;;  %v99_v40 = vld [vmem:[%s3167_s0 + $0x210] sm:$0xff]  ;;  %v140_v4 = vld [vmem:[%s3167_s0 + $0x358] sm:$0xff] }
  0x24   :  { %874 = vmatmul.mubr.bf16.vlgmr.msra.gmra.mrb[0].mxu1 %v163_v43  ;;  %1949 = vmatpush3.bf16.msra.mxu0 %v2269_v45  ;;  %v2285_v43 = vld [vmem:[%s3166_s1 + $0x120] sm:$0xff]   ;;  %v195_v46 = vpack.c.bf16 %v107_v41, %v99_v40  ;;  %v212_v5 = vpack.c.bf16 %v140_v4, %v132_v1  ;;  %v148_v16 = vld [vmem:[%s3167_s0 + $0x398] sm:$0xff]  ;;  %v39_v40 = vld [vmem:[%s3167_s0 + $0x30] sm:$0xff] }
  0x25   :  { %2013 = vmatpush3.bf16.msra.mxu1 %v2271_v47  ;;  %784 = vmatprep.mubr.bf16.mxu0 %v170_v52  ;;  %v2286_v45 = vld [vmem:[%s3166_s1 + $0x1e0] sm:$0xff]   ;;  %v124_v52 = vld [vmem:[%s3167_s0 + $0x2d8] sm:$0xff]  ;;  %v47_v41 = vld [vmem:[%s3167_s0 + $0x70] sm:$0xff] }
  0x26   :  { %881 = vmatprep.mubr.bf16.mxu1 %v172_v53  ;;  %1950 = vmatprep.subr.bf16.mxu0 %v2272_v60  ;;  %v2287_v47 = vld [vmem:[%s3166_s1 + $0x1a0] sm:$0xff]   ;;  %v204_v53 = vpack.c.bf16 %v124_v52, %v116_v51  ;;  %v2290_v60 = vld [vmem:[%s3166_s1 + $0x1e8] sm:$0xff]   ;;  %v156_v17 = vld [vmem:[%s3167_s0 + $0x3d8] sm:$0xff] }
  0x27   :  { %2014 = vmatprep.subr.bf16.mxu1 %v2274_v62  ;;  %v201_v62 = vpack.c.bf16 %v121_v55, %v113_v54  ;;  %v220_v21 = vpack.c.bf16 %v156_v17, %v148_v16  ;;  %v2296_v22 = vld [vmem:[%s3166_s1 + $0x178] sm:$0xff]   ;;  %v61_v51 = vld [vmem:[%s3167_s0 + $0xe0] sm:$0xff]  ;;  %v55_v52 = vld [vmem:[%s3167_s0 + $0xb0] sm:$0xff] }
  0x28   :  { %1951 = vmatpush3.bf16.msra.mxu0 %v2273_v61  ;;  %v2291_v61 = vld [vmem:[%s3166_s1 + $0x1a8] sm:$0xff]   ;;  %v2297_v24 = vld [vmem:[%s3166_s1 + $0x138] sm:$0xff]   ;;  %v79_v1 = vld [vmem:[%s3167_s0 + $0x170] sm:$0xff] }
  0x29   :  { %2015 = vmatpush3.bf16.msra.mxu1 %v2275_v63  ;;  %1952 = vmatprep.subr.bf16.mxu0 %v2276_v11  ;;  %v130_v63 = vld [vmem:[%s3167_s0 + $0x308] sm:$0xff]  ;;  %v2293_v11 = vld [vmem:[%s3166_s1 + $0x130] sm:$0xff]   ;;  %v2298_v25 = vld [vmem:[%s3166_s1 + $0x1f8] sm:$0xff]  }
  0x2a   :  { %2016 = vmatprep.subr.bf16.mxu1 %v2278_v14  ;;  %v210_v3 = vpack.c.bf16 %v138_v0, %v130_v63  ;;  %v146_v14 = vld [vmem:[%s3167_s0 + $0x388] sm:$0xff]  ;;  %v40_v32 = vld [vmem:[%s3167_s0 + $0x38] sm:$0xff]  ;;  %v77_v63 = vld [vmem:[%s3167_s0 + $0x160] sm:$0xff] }
  0x2b   :  { %785 = vmatmul.mubr.bf16.gmra.mrb[4].mxu0 %v169_v57  ;;  %v123_v57 = vld [vmem:[%s3167_s0 + $0x2d0] sm:$0xff]  ;;  %v48_v33 = vld [vmem:[%s3167_s0 + $0x78] sm:$0xff]  ;;  %v70_v54 = vld [vmem:[%s3167_s0 + $0x128] sm:$0xff] }
  0x2c   :  { %882 = vmatmul.mubr.bf16.gmra.mrb[4].mxu1 %v171_v59  ;;  %792 = vmatprep.mubr.bf16.mxu0 %v178_v2  ;;  %v2289_v59 = vld [vmem:[%s3166_s1 + $0x128] sm:$0xff]   ;;  %v203_v2 = vpack.c.bf16 %v123_v57, %v115_v56  ;;  %v72_v56 = vld [vmem:[%s3167_s0 + $0x138] sm:$0xff]  ;;  %v71_v0 = vld [vmem:[%s3167_s0 + $0x130] sm:$0xff] }
  0x2d   :  { %889 = vmatprep.mubr.bf16.mxu1 %v180_v6  ;;  %1953 = vmatpush3.bf16.msra.mxu0 %v2277_v13  ;;  %v129_v6 = vld [vmem:[%s3167_s0 + $0x300] sm:$0xff]  ;;  %v2295_v13 = vld [vmem:[%s3166_s1 + $0x1b0] sm:$0xff]   ;;  %v78_v55 = vld [vmem:[%s3167_s0 + $0x168] sm:$0xff] }
  0x2e   :  { %2017 = vmatpush3.bf16.msra.mxu1 %v2279_v15  ;;  %1954 = vmatprep.subr.bf16.mxu0 %v2280_v26  ;;  %v154_v15 = vld [vmem:[%s3167_s0 + $0x3c8] sm:$0xff]  ;;  %v209_v18 = vpack.c.bf16 %v137_v7, %v129_v6  ;;  %v153_v26 = vld [vmem:[%s3167_s0 + $0x3c0] sm:$0xff]  ;;  %v80_v57 = vld [vmem:[%s3167_s0 + $0x178] sm:$0xff]  ;;  %v183_v7 = vpack.c.bf16 %v79_v1, %v71_v0 }
  0x2f   :  { %2018 = vmatprep.subr.bf16.mxu1 %v2282_v30  ;;  %v218_v20 = vpack.c.bf16 %v154_v15, %v146_v14  ;;  %v38_v30 = vld [vmem:[%s3167_s0 + $0x28] sm:$0xff]  ;;  %v88_v4 = vld [vmem:[%s3167_s0 + $0x1b8] sm:$0xff]  ;;  %v2300_v0 = vld [vmem:[%s3168_s3] sm:$0xff]  }
  0x30   :  { %v102_v14 = vld [vmem:[%s3167_s0 + $0x228] sm:$0xff]  ;;  %v104_v16 = vld [vmem:[%s3167_s0 + $0x238] sm:$0xff] }
  0x31   :  { %1955 = vmatpush3.bf16.msra.mxu0 %v2281_v28  ;;  %v2299_v28 = vld [vmem:[%s3166_s1 + $0x1b8] sm:$0xff]   ;;  %v110_v15 = vld [vmem:[%s3167_s0 + $0x268] sm:$0xff] }
  0x32   :  { %2019 = vmatpush3.bf16.msra.mxu1 %v2283_v31  ;;  %1956 = vmatprep.subr.bf16.mxu0 %v2284_v42  ;;  %v46_v31 = vld [vmem:[%s3167_s0 + $0x68] sm:$0xff]  ;;  %v112_v17 = vld [vmem:[%s3167_s0 + $0x278] sm:$0xff] }
  0x33   :  { %793 = vmatmul.mubr.bf16.gmra.mrb[8].mxu0 %v177_v10  ;;  %2020 = vmatprep.subr.bf16.mxu1 %v2286_v45  ;;  %v139_v10 = vld [vmem:[%s3167_s0 + $0x350] sm:$0xff]  ;;  %v54_v42 = vld [vmem:[%s3167_s0 + $0xa8] sm:$0xff]  ;;  %v64_v45 = vld [vmem:[%s3167_s0 + $0xf8] sm:$0xff] }
  0x34   :  { %890 = vmatmul.mubr.bf16.gmra.mrb[8].mxu1 %v179_v12  ;;  %800 = vmatprep.mubr.bf16.mxu0 %v186_v19  ;;  %v2294_v12 = vld [vmem:[%s3166_s1 + $0x1f0] sm:$0xff]   ;;  %v211_v19 = vpack.c.bf16 %v139_v10, %v131_v9  ;;  %v85_v10 = vld [vmem:[%s3167_s0 + $0x1a0] sm:$0xff]  ;;  %v2301_v1 = vld [vmem:[%s3168_s3 + $0x8] sm:$0xff]  }
  0x35   :  { %897 = vmatprep.mubr.bf16.mxu1 %v188_v23  ;;  %1957 = vmatpush3.bf16.msra.mxu0 %v2285_v43  ;;  %v145_v23 = vld [vmem:[%s3167_s0 + $0x380] sm:$0xff]  ;;  %v62_v43 = vld [vmem:[%s3167_s0 + $0xe8] sm:$0xff] }
  0x36   :  { %2021 = vmatpush3.bf16.msra.mxu1 %v2287_v47  ;;  %1958 = vmatprep.subr.bf16.mxu0 %v2288_v58  ;;  %v217_v34 = vpack.c.bf16 %v153_v26, %v145_v23  ;;  %v167_v47 = vpack.c.bf16 %v47_v41, %v39_v40  ;;  %v174_v48 = vpack.c.bf16 %v62_v43, %v54_v42  ;;  %v109_v23 = vld [vmem:[%s3167_s0 + $0x260] sm:$0xff]  ;;  %v118_v26 = vld [vmem:[%s3167_s0 + $0x2a8] sm:$0xff]  ;;  %v136_v40 = vld [vmem:[%s3167_s0 + $0x338] sm:$0xff] }
  0x37   :  { %2022 = vmatprep.subr.bf16.mxu1 %v2290_v60  ;;  %v182_v60 = vpack.c.bf16 %v78_v55, %v70_v54  ;;  %v144_v41 = vld [vmem:[%s3167_s0 + $0x378] sm:$0xff] }
  0x39   :  { %1959 = vmatpush3.bf16.msra.mxu0 %v2289_v59 }
  0x3a   :  { %2023 = vmatpush3.bf16.msra.mxu1 %v2291_v61  ;;  %1960 = vmatprep.subr.bf16.mxu0 %v2292_v8  ;;  %v184_v61 = vpack.c.bf16 %v80_v57, %v72_v56 }
  0x3b   :  { %801 = vmatmul.mubr.bf16.gmra.mrb[12].mxu0 %v185_v27  ;;  %2024 = vmatprep.subr.bf16.mxu1 %v2294_v12  ;;  %v147_v27 = vld [vmem:[%s3167_s0 + $0x390] sm:$0xff] }
  0x3c   :  { %898 = vmatmul.mubr.bf16.gmra.mrb[12].mxu1 %v187_v29  ;;  %808 = vmatprep.mubr.bf16.mxu0 %v194_v36  ;;  %v155_v29 = vld [vmem:[%s3167_s0 + $0x3d0] sm:$0xff]  ;;  %v166_v36 = vpack.c.bf16 %v46_v31, %v38_v30 }
  0x3d   :  { %905 = vmatprep.mubr.bf16.mxu1 %v196_v37  ;;  %1961 = vmatpush3.bf16.msra.mxu0 %v2293_v11  ;;  %v219_v35 = vpack.c.bf16 %v155_v29, %v147_v27  ;;  %v168_v37 = vpack.c.bf16 %v48_v33, %v40_v32  ;;  %v93_v11 = vld [vmem:[%s3167_s0 + $0x1e0] sm:$0xff]  ;;  %v87_v12 = vld [vmem:[%s3167_s0 + $0x1b0] sm:$0xff]  ;;  %v126_v27 = vld [vmem:[%s3167_s0 + $0x2e8] sm:$0xff] }
  0x3e   :  { %2025 = vmatpush3.bf16.msra.mxu1 %v2295_v13  ;;  %1962 = vmatprep.subr.bf16.mxu0 %v2296_v22  ;;  %v95_v13 = vld [vmem:[%s3167_s0 + $0x1f0] sm:$0xff]  ;;  %v101_v22 = vld [vmem:[%s3167_s0 + $0x220] sm:$0xff]  ;;  %v128_v29 = vld [vmem:[%s3167_s0 + $0x2f8] sm:$0xff]  ;;  %v206_v32 = vpack.c.bf16 %v126_v27, %v118_v26 }
  0x3f   :  { %2026 = vmatprep.subr.bf16.mxu1 %v2298_v25  ;;  %v111_v25 = vld [vmem:[%s3167_s0 + $0x270] sm:$0xff]  ;;  %v197_v30 = vpack.c.bf16 %v109_v23, %v101_v22  ;;  %v2309_v27 = vld [vmem:[%s3170_s5 + $0x8] sm:$0xff]  }
  0x41   :  { %1963 = vmatpush3.bf16.msra.mxu0 %v2297_v24  ;;  %v103_v24 = vld [vmem:[%s3167_s0 + $0x230] sm:$0xff] }
  0x42   :  { %2027 = vmatpush3.bf16.msra.mxu1 %v2299_v28  ;;  %v120_v28 = vld [vmem:[%s3167_s0 + $0x2b8] sm:$0xff]  ;;  %v199_v31 = vpack.c.bf16 %v111_v25, %v103_v24  ;;  %2124 = vmatprep.subr.bf16.mxu0 %v2300_v0  ;;  %v2308_v24 = vld [vmem:[%s3170_s5] sm:$0xff]  }
  0x43   :  { %809 = vmatmul.mubr.bf16.gmra.mrb[16].mxu0 %v193_v44  ;;  %v56_v44 = vld [vmem:[%s3167_s0 + $0xb8] sm:$0xff]  ;;  %v208_v33 = vpack.c.bf16 %v128_v29, %v120_v28  ;;  %2156 = vmatprep.subr.bf16.mxu1 %v2308_v24 }
  0x44   :  { %906 = vmatmul.mubr.bf16.gmra.mrb[16].mxu1 %v195_v46  ;;  %816 = vmatprep.mubr.bf16.mxu0 %v202_v50  ;;  %v165_v46 = vpack.c.bf16 %v45_v39, %v37_v38  ;;  %v176_v49 = vpack.c.bf16 %v64_v45, %v56_v44  ;;  %v53_v50 = vld [vmem:[%s3167_s0 + $0xa0] sm:$0xff]  ;;  %v134_v38 = vld [vmem:[%s3167_s0 + $0x328] sm:$0xff]  ;;  %v216_v45 = vpack.c.bf16 %v144_v41, %v136_v40 }
  0x45   :  { %913 = vmatprep.mubr.bf16.mxu1 %v204_v53  ;;  %v63_v53 = vld [vmem:[%s3167_s0 + $0xf0] sm:$0xff]  ;;  %v173_v58 = vpack.c.bf16 %v61_v51, %v53_v50  ;;  %v142_v39 = vld [vmem:[%s3167_s0 + $0x368] sm:$0xff] }
  0x46   :  { %v175_v59 = vpack.c.bf16 %v63_v53, %v55_v52  ;;  %v214_v44 = vpack.c.bf16 %v142_v39, %v134_v38  ;;  %v150_v50 = vld [vmem:[%s3167_s0 + $0x3a8] sm:$0xff]  ;;  %v152_v52 = vld [vmem:[%s3167_s0 + $0x3b8] sm:$0xff] }
  0x47   :  { %v158_v51 = vld [vmem:[%s3167_s0 + $0x3e8] sm:$0xff]  ;;  %v160_v53 = vld [vmem:[%s3167_s0 + $0x3f8] sm:$0xff] }
  0x48   :  { %v222_v56 = vpack.c.bf16 %v158_v51, %v150_v50  ;;  %v224_v57 = vpack.c.bf16 %v160_v53, %v152_v52 }
  0x4b   :  { %817 = vmatmul.mubr.bf16.gmra.mrb[20].mxu0 %v201_v62  ;;  %v69_v62 = vld [vmem:[%s3167_s0 + $0x120] sm:$0xff] }
  0x4c   :  { %914 = vmatmul.mubr.bf16.gmra.mrb[20].mxu1 %v203_v2  ;;  %824 = vmatprep.mubr.bf16.mxu0 %v210_v3  ;;  %v86_v2 = vld [vmem:[%s3167_s0 + $0x1a8] sm:$0xff]  ;;  %v181_v6 = vpack.c.bf16 %v77_v63, %v69_v62 }
  0x4d   :  { %921 = vmatprep.mubr.bf16.mxu1 %v212_v5  ;;  %v94_v3 = vld [vmem:[%s3167_s0 + $0x1e8] sm:$0xff]  ;;  %v96_v5 = vld [vmem:[%s3167_s0 + $0x1f8] sm:$0xff] }
  0x4e   :  { %v190_v8 = vpack.c.bf16 %v94_v3, %v86_v2  ;;  %v192_v9 = vpack.c.bf16 %v96_v5, %v88_v4  ;;  %v2302_v2 = vld [vmem:[%s3168_s3 + $0x10] sm:$0xff]   ;;  %v2303_v3 = vld [vmem:[%s3168_s3 + $0x18] sm:$0xff]   ;;  %v2304_v4 = vld [vmem:[%s3168_s3 + $0x20] sm:$0xff]  }
  0x4f   :  { %v2305_v5 = vld [vmem:[%s3168_s3 + $0x28] sm:$0xff]  }
  0x53   :  { %825 = vmatmul.mubr.bf16.gmra.mrb[24].mxu0 %v209_v18  ;;  %v189_v18 = vpack.c.bf16 %v93_v11, %v85_v10  ;;  %v2977_v10 = vld [vmem:[%s3169_s2] ss:$0 sm:$0xff] }
  0x54   :  { %922 = vmatmul.mubr.bf16.gmra.mrb[24].mxu1 %v211_v19  ;;  %832 = vmatprep.mubr.bf16.mxu0 %v218_v20  ;;  %v191_v19 = vpack.c.bf16 %v95_v13, %v87_v12  ;;  %v198_v20 = vpack.c.bf16 %v110_v15, %v102_v14 }
  0x55   :  { %929 = vmatprep.mubr.bf16.mxu1 %v220_v21  ;;  %v200_v21 = vpack.c.bf16 %v112_v17, %v104_v16 }
  0x5b   :  { %833 = vmatmul.mubr.bf16.gmra.mrb[28].mxu0 %v217_v34  ;;  %v117_v34 = vld [vmem:[%s3167_s0 + $0x2a0] sm:$0xff] }
  0x5c   :  { %930 = vmatmul.mubr.bf16.gmra.mrb[28].mxu1 %v219_v35  ;;  %970 = vmatprep.mubr.bf16.mxu0 %v166_v36  ;;  %v125_v35 = vld [vmem:[%s3167_s0 + $0x2e0] sm:$0xff]  ;;  %v119_v36 = vld [vmem:[%s3167_s0 + $0x2b0] sm:$0xff] }
  0x5d   :  { %1067 = vmatprep.mubr.bf16.mxu1 %v168_v37  ;;  %v127_v37 = vld [vmem:[%s3167_s0 + $0x2f0] sm:$0xff]  ;;  %v205_v42 = vpack.c.bf16 %v125_v35, %v117_v34 }
  0x5e   :  { %v207_v43 = vpack.c.bf16 %v127_v37, %v119_v36 }
  0x63   :  { %971 = vmatmul.mubr.bf16.vlgmr.msra.gmra.mrb[32].mxu0 %v165_v46  ;;  %v133_v46 = vld [vmem:[%s3167_s0 + $0x320] sm:$0xff] }
  0x64   :  { %1068 = vmatmul.mubr.bf16.vlgmr.msra.gmra.mrb[32].mxu1 %v167_v47  ;;  %978 = vmatprep.mubr.bf16.mxu0 %v174_v48  ;;  %v141_v47 = vld [vmem:[%s3167_s0 + $0x360] sm:$0xff]  ;;  %v135_v48 = vld [vmem:[%s3167_s0 + $0x330] sm:$0xff] }
  0x65   :  { %1075 = vmatprep.mubr.bf16.mxu1 %v176_v49  ;;  %v143_v49 = vld [vmem:[%s3167_s0 + $0x370] sm:$0xff]  ;;  %v213_v54 = vpack.c.bf16 %v141_v47, %v133_v46  ;;  %2125 = vmatpush3.bf16.msra.mxu0 %v2300_v0 }
  0x66   :  { %v215_v55 = vpack.c.bf16 %v143_v49, %v135_v48  ;;  %2126 = vmatprep.subr.bf16.mxu0 %v2301_v1  ;;  %2157 = vmatpush3.bf16.msra.mxu1 %v2308_v24 }
  0x67   :  { %2158 = vmatprep.subr.bf16.mxu1 %v2309_v27 }
  0x69   :  { %2127 = vmatpush3.bf16.msra.mxu0 %v2301_v1 }
  0x6a   :  { %2128 = vmatprep.subr.bf16.mxu0 %v2302_v2  ;;  %2159 = vmatpush3.bf16.msra.mxu1 %v2309_v27 }
  0x6b   :  { %979 = vmatmul.mubr.bf16.gmra.mrb[36].mxu0 %v173_v58  ;;  %v149_v58 = vld [vmem:[%s3167_s0 + $0x3a0] sm:$0xff] }
  0x6c   :  { %1076 = vmatmul.mubr.bf16.gmra.mrb[36].mxu1 %v175_v59  ;;  %986 = vmatprep.mubr.bf16.mxu0 %v182_v60  ;;  %v157_v59 = vld [vmem:[%s3167_s0 + $0x3e0] sm:$0xff]  ;;  %v151_v60 = vld [vmem:[%s3167_s0 + $0x3b0] sm:$0xff] }
  0x6d   :  { %1083 = vmatprep.mubr.bf16.mxu1 %v184_v61  ;;  %v159_v61 = vld [vmem:[%s3167_s0 + $0x3f0] sm:$0xff]  ;;  %v221_v62 = vpack.c.bf16 %v157_v59, %v149_v58  ;;  %2129 = vmatpush3.bf16.msra.mxu0 %v2302_v2 }
  0x6e   :  { %v223_v63 = vpack.c.bf16 %v159_v61, %v151_v60  ;;  %2130 = vmatprep.subr.bf16.mxu0 %v2303_v3  ;;  %v2313_v61 = vld [vmem:[%s3170_s5 + $0x28] sm:$0xff]  }
  0x71   :  { %2131 = vmatpush3.bf16.msra.mxu0 %v2303_v3 }
  0x72   :  { %2132 = vmatprep.subr.bf16.mxu0 %v2304_v4 }
  0x73   :  { %987 = vmatmul.mubr.bf16.gmra.mrb[40].mxu0 %v181_v6  ;;  %v2306_v6 = vld [vmem:[%s3168_s3 + $0x30] sm:$0xff]  }
  0x74   :  { %1084 = vmatmul.mubr.bf16.gmra.mrb[40].mxu1 %v183_v7  ;;  %994 = vmatprep.mubr.bf16.mxu0 %v190_v8  ;;  %v2307_v7 = vld [vmem:[%s3168_s3 + $0x38] sm:$0xff]  }
  0x75   :  { %1091 = vmatprep.mubr.bf16.mxu1 %v192_v9  ;;  %2133 = vmatpush3.bf16.msra.mxu0 %v2304_v4 }
  0x76   :  { %2134 = vmatprep.subr.bf16.mxu0 %v2305_v5 }
  0x79   :  { %2135 = vmatpush3.bf16.msra.mxu0 %v2305_v5 }
  0x7a   :  { %2136 = vmatprep.subr.bf16.mxu0 %v2306_v6 }
  0x7b   :  { %995 = vmatmul.mubr.bf16.gmra.mrb[44].mxu0 %v189_v18 }
  0x7c   :  { %1092 = vmatmul.mubr.bf16.gmra.mrb[44].mxu1 %v191_v19  ;;  %1002 = vmatprep.mubr.bf16.mxu0 %v198_v20 }
  0x7d   :  { %1099 = vmatprep.mubr.bf16.mxu1 %v200_v21  ;;  %2137 = vmatpush3.bf16.msra.mxu0 %v2306_v6 }
  0x7e   :  { %2138 = vmatprep.subr.bf16.mxu0 %v2307_v7 }
  0x81   :  { %2139 = vmatpush3.bf16.msra.mxu0 %v2307_v7 }
  0x83   :  { %1003 = vmatmul.mubr.bf16.gmra.mrb[48].mxu0 %v197_v30 }
  0x84   :  { %1100 = vmatmul.mubr.bf16.gmra.mrb[48].mxu1 %v199_v31  ;;  %1010 = vmatprep.mubr.bf16.mxu0 %v206_v32 }
  0x85   :  { %1107 = vmatprep.mubr.bf16.mxu1 %v208_v33  ;;  %v2310_v33 = vld [vmem:[%s3170_s5 + $0x10] sm:$0xff]  }
  0x86   :  { %2160 = vmatprep.subr.bf16.mxu1 %v2310_v33 }
  0x87   :  { %2161 = vmatpush3.bf16.msra.mxu1 %v2310_v33 }
  0x8b   :  { %1011 = vmatmul.mubr.bf16.gmra.mrb[52].mxu0 %v205_v42 }
  0x8c   :  { %1108 = vmatmul.mubr.bf16.gmra.mrb[52].mxu1 %v207_v43  ;;  %1018 = vmatprep.mubr.bf16.mxu0 %v214_v44  ;;  %v2311_v43 = vld [vmem:[%s3170_s5 + $0x18] sm:$0xff]  }
  0x8d   :  { %1115 = vmatprep.mubr.bf16.mxu1 %v216_v45  ;;  %2162 = vmatprep.subr.bf16.mxu1 %v2311_v43 }
  0x8e   :  { %2163 = vmatpush3.bf16.msra.mxu1 %v2311_v43 }
  0x93   :  { %1019 = vmatmul.mubr.bf16.gmra.mrb[56].mxu0 %v213_v54  ;;  %v2312_v54 = vld [vmem:[%s3170_s5 + $0x20] sm:$0xff]  }
  0x94   :  { %1116 = vmatmul.mubr.bf16.gmra.mrb[56].mxu1 %v215_v55  ;;  %1026 = vmatprep.mubr.bf16.mxu0 %v222_v56 }
  0x95   :  { %1123 = vmatprep.mubr.bf16.mxu1 %v224_v57  ;;  %2164 = vmatprep.subr.bf16.mxu1 %v2312_v54 }
  0x96   :  { %2165 = vmatpush3.bf16.msra.mxu1 %v2312_v54 }
  0x97   :  { %2166 = vmatprep.subr.bf16.mxu1 %v2313_v61 }
  0x9a   :  { %2167 = vmatpush3.bf16.msra.mxu1 %v2313_v61 }
  0x9b   :  { %1027 = vmatmul.mubr.bf16.gmra.mrb[60].mxu0 %v221_v62 }
  0x9c   :  { %1124 = vmatmul.mubr.bf16.gmra.mrb[60].mxu1 %v223_v63 }
  0xf6   :  { %v1836_v8 = vpop.f32.mrb[0].mxu0 }
  0xf7   :  { %v1900_v9 = vpop.f32.mrb[0].mxu1  ;;  %v1837_v11 = vpop.f32.mrb[1].mxu0 }
  0xf8   :  { %v1838_v12 = vadd.f32 %v1837_v11, %v1836_v8  ;;  %v1901_v13 = vpop.f32.mrb[1].mxu1  ;;  %v1839_v14 = vpop.f32.mrb[2].mxu0 }
  0xf9   :  { %v1902_v15 = vadd.f32 %v1901_v13, %v1900_v9  ;;  %v1903_v16 = vpop.f32.mrb[2].mxu1  ;;  %v1840_v17 = vpop.f32.mrb[3].mxu0 }
  0xfa   :  { %v779_v18 = vadd.f32 %v1838_v12, %v2977_v10  ;;  %v1841_v19 = vadd.f32 %v1840_v17, %v1839_v14  ;;  %v1904_v20 = vpop.f32.mrb[3].mxu1 }
  0xfb   :  { %v1905_v21 = vadd.f32 %v1904_v20, %v1903_v16 }
  0xfc   :  { %v2980_v22 = vadd.f32 %v1902_v15, %v779_v18  ;;  %v782_v23 = vadd.f32 %v1841_v19, %v2977_v10 }
  0xfe   :  { %v2986_v25 = vadd.f32 %v1905_v21, %v782_v23  ;;  %v1842_v26 = vpop.f32.mrb[4].mxu0 }
  0xff   :  { %v1906_v28 = vpop.f32.mrb[4].mxu1  ;;  %v1843_v29 = vpop.f32.mrb[5].mxu0 }
 0x100   :  { %v1844_v30 = vadd.f32 %v1843_v29, %v1842_v26  ;;  %v1907_v31 = vpop.f32.mrb[5].mxu1  ;;  %v1845_v32 = vpop.f32.mrb[6].mxu0 }
 0x101   :  { %v1908_v34 = vadd.f32 %v1907_v31, %v1906_v28  ;;  %v1909_v35 = vpop.f32.mrb[6].mxu1  ;;  %v1846_v36 = vpop.f32.mrb[7].mxu0 }
 0x102   :  { %v787_v37 = vadd.f32 %v1844_v30, %v2977_v10  ;;  %v1847_v38 = vadd.f32 %v1846_v36, %v1845_v32  ;;  %v1910_v39 = vpop.f32.mrb[7].mxu1 }
 0x103   :  { %v1911_v40 = vadd.f32 %v1910_v39, %v1909_v35 }
 0x104   :  { %v2995_v41 = vadd.f32 %v1908_v34, %v787_v37  ;;  %v790_v42 = vadd.f32 %v1847_v38, %v2977_v10 }
 0x106   :  { %v3001_v44 = vadd.f32 %v1911_v40, %v790_v42  ;;  %v1848_v45 = vpop.f32.mrb[8].mxu0 }
 0x107   :  { %v1912_v46 = vpop.f32.mrb[8].mxu1  ;;  %v1849_v47 = vpop.f32.mrb[9].mxu0 }
 0x108   :  { %v1850_v48 = vadd.f32 %v1849_v47, %v1848_v45  ;;  %v1913_v49 = vpop.f32.mrb[9].mxu1  ;;  %v1851_v50 = vpop.f32.mrb[10].mxu0 }
 0x109   :  { %v1914_v51 = vadd.f32 %v1913_v49, %v1912_v46  ;;  %v1915_v52 = vpop.f32.mrb[10].mxu1  ;;  %v1852_v53 = vpop.f32.mrb[11].mxu0 }
 0x10a   :  { %v795_v55 = vadd.f32 %v1850_v48, %v2977_v10  ;;  %v1853_v56 = vadd.f32 %v1852_v53, %v1851_v50  ;;  %v1916_v57 = vpop.f32.mrb[11].mxu1 }
 0x10b   :  { %v1917_v58 = vadd.f32 %v1916_v57, %v1915_v52 }
 0x10c   :  { %v3007_v59 = vadd.f32 %v1914_v51, %v795_v55  ;;  %v798_v60 = vadd.f32 %v1853_v56, %v2977_v10 }
 0x10e   :  { %v3013_v62 = vadd.f32 %v1917_v58, %v798_v60  ;;  %v1854_v63 = vpop.f32.mrb[12].mxu0 }
 0x10f   :  { %v1918_v0 = vpop.f32.mrb[12].mxu1  ;;  %v1855_v1 = vpop.f32.mrb[13].mxu0 }
 0x110   :  { %v1856_v2 = vadd.f32 %v1855_v1, %v1854_v63  ;;  %v1919_v3 = vpop.f32.mrb[13].mxu1  ;;  %v1857_v4 = vpop.f32.mrb[14].mxu0 }
 0x111   :  { %v1920_v5 = vadd.f32 %v1919_v3, %v1918_v0  ;;  %v1921_v6 = vpop.f32.mrb[14].mxu1  ;;  %v1858_v7 = vpop.f32.mrb[15].mxu0 }
 0x112   :  { %v803_v8 = vadd.f32 %v1856_v2, %v2977_v10  ;;  %v1859_v9 = vadd.f32 %v1858_v7, %v1857_v4  ;;  %v1922_v11 = vpop.f32.mrb[15].mxu1 }
 0x113   :  { %v1923_v12 = vadd.f32 %v1922_v11, %v1921_v6 }
 0x114   :  { %v3016_v13 = vadd.f32 %v1920_v5, %v803_v8  ;;  %v806_v14 = vadd.f32 %v1859_v9, %v2977_v10 }
 0x116   :  { %v3019_v15 = vadd.f32 %v1923_v12, %v806_v14  ;;  %v1860_v16 = vpop.f32.mrb[16].mxu0 }
 0x117   :  { %v1924_v17 = vpop.f32.mrb[16].mxu1  ;;  %v1861_v18 = vpop.f32.mrb[17].mxu0 }
 0x118   :  { %v1862_v19 = vadd.f32 %v1861_v18, %v1860_v16  ;;  %v1925_v20 = vpop.f32.mrb[17].mxu1  ;;  %v1863_v21 = vpop.f32.mrb[18].mxu0 }
 0x119   :  { %v1926_v23 = vadd.f32 %v1925_v20, %v1924_v17  ;;  %v1927_v24 = vpop.f32.mrb[18].mxu1  ;;  %v1864_v26 = vpop.f32.mrb[19].mxu0 }
 0x11a   :  { %v811_v27 = vadd.f32 %v1862_v19, %v2977_v10  ;;  %v1865_v28 = vadd.f32 %v1864_v26, %v1863_v21  ;;  %v1928_v29 = vpop.f32.mrb[19].mxu1 }
 0x11b   :  { %v1929_v30 = vadd.f32 %v1928_v29, %v1927_v24 }
 0x11c   :  { %v3022_v31 = vadd.f32 %v1926_v23, %v811_v27  ;;  %v814_v32 = vadd.f32 %v1865_v28, %v2977_v10 }
 0x11e   :  { %v3025_v33 = vadd.f32 %v1929_v30, %v814_v32  ;;  %v1866_v34 = vpop.f32.mrb[20].mxu0 }
 0x11f   :  { %v1930_v35 = vpop.f32.mrb[20].mxu1  ;;  %v1867_v36 = vpop.f32.mrb[21].mxu0 }
 0x120   :  { %v1868_v37 = vadd.f32 %v1867_v36, %v1866_v34  ;;  %v1931_v38 = vpop.f32.mrb[21].mxu1  ;;  %v1869_v39 = vpop.f32.mrb[22].mxu0 }
 0x121   :  { %v1932_v40 = vadd.f32 %v1931_v38, %v1930_v35  ;;  %v1933_v42 = vpop.f32.mrb[22].mxu1  ;;  %v1870_v43 = vpop.f32.mrb[23].mxu0 }
 0x122   :  { %v819_v45 = vadd.f32 %v1868_v37, %v2977_v10  ;;  %v1871_v46 = vadd.f32 %v1870_v43, %v1869_v39  ;;  %v1934_v47 = vpop.f32.mrb[23].mxu1 }
 0x123   :  { %v1935_v48 = vadd.f32 %v1934_v47, %v1933_v42 }
 0x124   :  { %v3028_v49 = vadd.f32 %v1932_v40, %v819_v45  ;;  %v822_v50 = vadd.f32 %v1871_v46, %v2977_v10 }
 0x126   :  { %v3031_v51 = vadd.f32 %v1935_v48, %v822_v50  ;;  %v1872_v52 = vpop.f32.mrb[24].mxu0 }
 0x127   :  { %v1936_v53 = vpop.f32.mrb[24].mxu1  ;;  %v1873_v54 = vpop.f32.mrb[25].mxu0 }
 0x128   :  { %v1874_v55 = vadd.f32 %v1873_v54, %v1872_v52  ;;  %v1937_v56 = vpop.f32.mrb[25].mxu1  ;;  %v1875_v57 = vpop.f32.mrb[26].mxu0 }
 0x129   :  { %v1938_v58 = vadd.f32 %v1937_v56, %v1936_v53  ;;  %v1939_v60 = vpop.f32.mrb[26].mxu1  ;;  %v1876_v61 = vpop.f32.mrb[27].mxu0 }
 0x12a   :  { %v827_v63 = vadd.f32 %v1874_v55, %v2977_v10  ;;  %v1877_v0 = vadd.f32 %v1876_v61, %v1875_v57  ;;  %v1940_v1 = vpop.f32.mrb[27].mxu1 }
 0x12b   :  { %v1941_v2 = vadd.f32 %v1940_v1, %v1939_v60 }
 0x12c   :  { %v3034_v3 = vadd.f32 %v1938_v58, %v827_v63  ;;  %v830_v4 = vadd.f32 %v1877_v0, %v2977_v10 }
 0x12e   :  { %v3037_v5 = vadd.f32 %v1941_v2, %v830_v4  ;;  %v1878_v6 = vpop.f32.mrb[28].mxu0 }
 0x12f   :  { %v1942_v7 = vpop.f32.mrb[28].mxu1  ;;  %v1879_v8 = vpop.f32.mrb[29].mxu0 }
 0x130   :  { %v1880_v9 = vadd.f32 %v1879_v8, %v1878_v6  ;;  %v1943_v11 = vpop.f32.mrb[29].mxu1  ;;  %v1881_v12 = vpop.f32.mrb[30].mxu0 }
 0x131   :  { %v1944_v14 = vadd.f32 %v1943_v11, %v1942_v7  ;;  %v1945_v16 = vpop.f32.mrb[30].mxu1  ;;  %v1882_v17 = vpop.f32.mrb[31].mxu0 }
 0x132   :  { %v835_v18 = vadd.f32 %v1880_v9, %v2977_v10  ;;  %v1883_v19 = vadd.f32 %v1882_v17, %v1881_v12  ;;  %v1946_v20 = vpop.f32.mrb[31].mxu1 }
 0x133   :  { %v1947_v21 = vadd.f32 %v1946_v20, %v1945_v16 }
 0x134   :  { %v3040_v23 = vadd.f32 %v1944_v14, %v835_v18  ;;  %v838_v24 = vadd.f32 %v1883_v19, %v2977_v10 }
 0x136   :  { %v3043_v26 = vadd.f32 %v1947_v21, %v838_v24  ;;  %v1964_v27 = vpop.f32.mrb[32].mxu0 }
 0x137   :  { %v2028_v28 = vpop.f32.mrb[32].mxu1  ;;  %v1965_v29 = vpop.f32.mrb[33].mxu0 }
 0x138   :  { %v1966_v30 = vadd.f32 %v1965_v29, %v1964_v27  ;;  %v2029_v32 = vpop.f32.mrb[33].mxu1  ;;  %v1967_v34 = vpop.f32.mrb[34].mxu0 }
 0x139   :  { %v2030_v35 = vadd.f32 %v2029_v32, %v2028_v28  ;;  %v2031_v36 = vpop.f32.mrb[34].mxu1  ;;  %v1968_v37 = vpop.f32.mrb[35].mxu0 }
 0x13a   :  { %v973_v38 = vadd.f32 %v1966_v30, %v2980_v22  ;;  %v1969_v39 = vadd.f32 %v1968_v37, %v1967_v34  ;;  %v2032_v40 = vpop.f32.mrb[35].mxu1 }
 0x13b   :  { %v2033_v42 = vadd.f32 %v2032_v40, %v2031_v36 }
 0x13c   :  { %v1070_v43 = vadd.f32 %v2030_v35, %v973_v38  ;;  %v976_v45 = vadd.f32 %v1969_v39, %v2986_v25 }
 0x13e   :  { %v1073_v10 = vadd.f32 %v2033_v42, %v976_v45  ;;  %v1970_v46 = vpop.f32.mrb[36].mxu0  ;;  %v1132_v50 = vmax.f32 %v1070_v43, 0.0 }
 0x13f   :  { %v2034_v47 = vpop.f32.mrb[36].mxu1  ;;  %v1971_v48 = vpop.f32.mrb[37].mxu0 }
 0x140   :  { %v1133_v52 = vmax.f32 %v1073_v10, 0.0  ;;  %v1972_v53 = vadd.f32 %v1971_v48, %v1970_v46  ;;  %v2035_v54 = vpop.f32.mrb[37].mxu1  ;;  %v1973_v55 = vpop.f32.mrb[38].mxu0 }
 0x141   :  { %v2036_v56 = vadd.f32 %v2035_v54, %v2034_v47  ;;  %v2037_v57 = vpop.f32.mrb[38].mxu1  ;;  %v1974_v58 = vpop.f32.mrb[39].mxu0 }
 0x142   :  { %v981_v22 = vadd.f32 %v1972_v53, %v2995_v41  ;;  %v1975_v60 = vadd.f32 %v1974_v58, %v1973_v55  ;;  %v2038_v61 = vpop.f32.mrb[39].mxu1  ;;  %v1148_v63 = vpack.c.bf16 %v1133_v52, %v1132_v50 }
 0x143   :  { %v2039_v0 = vadd.f32 %v2038_v61, %v2037_v57 }
 0x144   :  { %v1078_v1 = vadd.f32 %v2036_v56, %v981_v22  ;;  %v984_v25 = vadd.f32 %v1975_v60, %v3001_v44  ;;  %2140 = vmatprep.mubr.bf16.mxu0 %v1148_v63 }
 0x146   :  { %v1081_v2 = vadd.f32 %v2039_v0, %v984_v25  ;;  %v1976_v4 = vpop.f32.mrb[40].mxu0  ;;  %v1134_v8 = vmax.f32 %v1078_v1, 0.0 }
 0x147   :  { %v2040_v6 = vpop.f32.mrb[40].mxu1  ;;  %v1977_v7 = vpop.f32.mrb[41].mxu0 }
 0x148   :  { %v1135_v9 = vmax.f32 %v1081_v2, 0.0  ;;  %v1978_v11 = vadd.f32 %v1977_v7, %v1976_v4  ;;  %v2041_v12 = vpop.f32.mrb[41].mxu1  ;;  %v1979_v14 = vpop.f32.mrb[42].mxu0 }
 0x149   :  { %v2042_v16 = vadd.f32 %v2041_v12, %v2040_v6  ;;  %v2043_v17 = vpop.f32.mrb[42].mxu1  ;;  %v1980_v41 = vpop.f32.mrb[43].mxu0 }
 0x14a   :  { %v1149_v18 = vpack.c.bf16 %v1135_v9, %v1134_v8  ;;  %v989_v19 = vadd.f32 %v1978_v11, %v3007_v59  ;;  %v1981_v20 = vadd.f32 %v1980_v41, %v1979_v14  ;;  %v2044_v21 = vpop.f32.mrb[43].mxu1 }
 0x14b   :  { %v2045_v24 = vadd.f32 %v2044_v21, %v2043_v17 }
 0x14c   :  { %v1086_v44 = vadd.f32 %v2042_v16, %v989_v19  ;;  %v992_v27 = vadd.f32 %v1981_v20, %v3013_v62  ;;  %2141 = vmatmul.mubr.bf16.vlgmr.msra.gmra.mrb[64].mxu0 %v1149_v18 }
 0x14e   :  { %v1089_v28 = vadd.f32 %v2045_v24, %v992_v27  ;;  %v1982_v29 = vpop.f32.mrb[44].mxu0  ;;  %v1136_v34 = vmax.f32 %v1086_v44, 0.0 }
 0x14f   :  { %v2046_v30 = vpop.f32.mrb[44].mxu1  ;;  %v1983_v32 = vpop.f32.mrb[45].mxu0 }
 0x150   :  { %v1137_v35 = vmax.f32 %v1089_v28, 0.0  ;;  %v1984_v36 = vadd.f32 %v1983_v32, %v1982_v29  ;;  %v2047_v37 = vpop.f32.mrb[45].mxu1  ;;  %v1985_v38 = vpop.f32.mrb[46].mxu0 }
 0x151   :  { %v2048_v39 = vadd.f32 %v2047_v37, %v2046_v30  ;;  %v2049_v40 = vpop.f32.mrb[46].mxu1  ;;  %v1986_v42 = vpop.f32.mrb[47].mxu0 }
 0x152   :  { %v997_v59 = vadd.f32 %v1984_v36, %v3016_v13  ;;  %v1987_v43 = vadd.f32 %v1986_v42, %v1985_v38  ;;  %v2050_v45 = vpop.f32.mrb[47].mxu1  ;;  %v1150_v10 = vpack.c.bf16 %v1137_v35, %v1136_v34 }
 0x153   :  { %v2051_v46 = vadd.f32 %v2050_v45, %v2049_v40 }
 0x154   :  { %v1094_v62 = vadd.f32 %v2048_v39, %v997_v59  ;;  %v1000_v47 = vadd.f32 %v1987_v43, %v3019_v15  ;;  %2144 = vmatprep.mubr.bf16.mxu0 %v1150_v10 }
 0x156   :  { %v1097_v48 = vadd.f32 %v2051_v46, %v1000_v47  ;;  %v1988_v50 = vpop.f32.mrb[48].mxu0  ;;  %v1138_v54 = vmax.f32 %v1094_v62, 0.0 }
 0x157   :  { %v2052_v52 = vpop.f32.mrb[48].mxu1  ;;  %v1989_v53 = vpop.f32.mrb[49].mxu0 }
 0x158   :  { %v1139_v55 = vmax.f32 %v1097_v48, 0.0  ;;  %v1990_v56 = vadd.f32 %v1989_v53, %v1988_v50  ;;  %v2053_v57 = vpop.f32.mrb[49].mxu1  ;;  %v1991_v58 = vpop.f32.mrb[50].mxu0 }
 0x159   :  { %v2054_v22 = vadd.f32 %v2053_v57, %v2052_v52  ;;  %v2055_v60 = vpop.f32.mrb[50].mxu1  ;;  %v1992_v13 = vpop.f32.mrb[51].mxu0 }
 0x15a   :  { %v1005_v61 = vadd.f32 %v1990_v56, %v3022_v31  ;;  %v1993_v63 = vadd.f32 %v1992_v13, %v1991_v58  ;;  %v2056_v0 = vpop.f32.mrb[51].mxu1  ;;  %v1151_v1 = vpack.c.bf16 %v1139_v55, %v1138_v54 }
 0x15b   :  { %v2057_v25 = vadd.f32 %v2056_v0, %v2055_v60 }
 0x15c   :  { %v1102_v15 = vadd.f32 %v2054_v22, %v1005_v61  ;;  %v1008_v2 = vadd.f32 %v1993_v63, %v3025_v33  ;;  %2145 = vmatmul.mubr.bf16.gmra.mrb[68].mxu0 %v1151_v1 }
 0x15e   :  { %v1105_v4 = vadd.f32 %v2057_v25, %v1008_v2  ;;  %v1994_v6 = vpop.f32.mrb[52].mxu0  ;;  %v1140_v9 = vmax.f32 %v1102_v15, 0.0  ;;  %v2314_v2 = vld [vmem:[%s3170_s5 + $0x30] sm:$0xff]  }
 0x15f   :  { %v2058_v7 = vpop.f32.mrb[52].mxu1  ;;  %v1995_v8 = vpop.f32.mrb[53].mxu0  ;;  %2168 = vmatprep.subr.bf16.mxu1 %v2314_v2 }
 0x160   :  { %v1141_v11 = vmax.f32 %v1105_v4, 0.0  ;;  %v1996_v12 = vadd.f32 %v1995_v8, %v1994_v6  ;;  %v2059_v14 = vpop.f32.mrb[53].mxu1  ;;  %v1997_v16 = vpop.f32.mrb[54].mxu0  ;;  %2169 = vmatpush3.bf16.msra.mxu1 %v2314_v2  ;;  %v2317_v4 = vld [vmem:[%s3171_s7 + $0x8] sm:$0xff]   ;;  %v2318_v6 = vld [vmem:[%s3171_s7 + $0x10] sm:$0xff]   ;;  %v2320_v8 = vld [vmem:[%s3171_s7 + $0x20] sm:$0xff]  }
 0x161   :  { %v2060_v17 = vadd.f32 %v2059_v14, %v2058_v7  ;;  %v2061_v41 = vpop.f32.mrb[54].mxu1  ;;  %v1998_v31 = vpop.f32.mrb[55].mxu0  ;;  %v2319_v7 = vld [vmem:[%s3171_s7 + $0x18] sm:$0xff]  }
 0x162   :  { %v1013_v18 = vadd.f32 %v1996_v12, %v3028_v49  ;;  %v1999_v19 = vadd.f32 %v1998_v31, %v1997_v16  ;;  %v2062_v20 = vpop.f32.mrb[55].mxu1  ;;  %v1152_v21 = vpack.c.bf16 %v1141_v11, %v1140_v9  ;;  %v2321_v9 = vld [vmem:[%s3171_s7 + $0x28] sm:$0xff]   ;;  %v3088_v11 = vld [vmem:[%s3172_s4] ss:$0 sm:$0xff] }
 0x163   :  { %v2063_v24 = vadd.f32 %v2062_v20, %v2061_v41 }
 0x164   :  { %v1110_v33 = vadd.f32 %v2060_v17, %v1013_v18  ;;  %v1016_v44 = vadd.f32 %v1999_v19, %v3031_v51  ;;  %2148 = vmatprep.mubr.bf16.mxu0 %v1152_v21 }
 0x166   :  { %v1113_v27 = vadd.f32 %v2063_v24, %v1016_v44  ;;  %v2000_v28 = vpop.f32.mrb[56].mxu0  ;;  %v1142_v32 = vmax.f32 %v1110_v33, 0.0 }
 0x167   :  { %v2064_v29 = vpop.f32.mrb[56].mxu1  ;;  %v2001_v30 = vpop.f32.mrb[57].mxu0 }
 0x168   :  { %v1143_v34 = vmax.f32 %v1113_v27, 0.0  ;;  %v2002_v35 = vadd.f32 %v2001_v30, %v2000_v28  ;;  %v2065_v36 = vpop.f32.mrb[57].mxu1  ;;  %v2003_v37 = vpop.f32.mrb[58].mxu0 }
 0x169   :  { %v2066_v38 = vadd.f32 %v2065_v36, %v2064_v29  ;;  %v2067_v39 = vpop.f32.mrb[58].mxu1  ;;  %v2004_v49 = vpop.f32.mrb[59].mxu0 }
 0x16a   :  { %v1021_v40 = vadd.f32 %v2002_v35, %v3034_v3  ;;  %v2005_v42 = vadd.f32 %v2004_v49, %v2003_v37  ;;  %v2068_v59 = vpop.f32.mrb[59].mxu1  ;;  %v1153_v43 = vpack.c.bf16 %v1143_v34, %v1142_v32 }
 0x16b   :  { %v2069_v45 = vadd.f32 %v2068_v59, %v2067_v39 }
 0x16c   :  { %v1118_v51 = vadd.f32 %v2066_v38, %v1021_v40  ;;  %v1024_v10 = vadd.f32 %v2005_v42, %v3037_v5  ;;  %2149 = vmatmul.mubr.bf16.gmra.mrb[72].mxu0 %v1153_v43 }
 0x16e   :  { %v1121_v46 = vadd.f32 %v2069_v45, %v1024_v10  ;;  %v2006_v62 = vpop.f32.mrb[60].mxu0  ;;  %v1144_v50 = vmax.f32 %v1118_v51, 0.0 }
 0x16f   :  { %v2070_v47 = vpop.f32.mrb[60].mxu1  ;;  %v2007_v48 = vpop.f32.mrb[61].mxu0 }
 0x170   :  { %v1145_v52 = vmax.f32 %v1121_v46, 0.0  ;;  %v2008_v53 = vadd.f32 %v2007_v48, %v2006_v62  ;;  %v2071_v54 = vpop.f32.mrb[61].mxu1  ;;  %v2009_v55 = vpop.f32.mrb[62].mxu0 }
 0x171   :  { %v2072_v56 = vadd.f32 %v2071_v54, %v2070_v47  ;;  %v2073_v57 = vpop.f32.mrb[62].mxu1  ;;  %v2010_v3 = vpop.f32.mrb[63].mxu0 }
 0x172   :  { %v1029_v58 = vadd.f32 %v2008_v53, %v3040_v23  ;;  %v2011_v22 = vadd.f32 %v2010_v3, %v2009_v55  ;;  %v2074_v60 = vpop.f32.mrb[63].mxu1  ;;  %v1154_v13 = vpack.c.bf16 %v1145_v52, %v1144_v50  ;;  %v2315_v23 = vld [vmem:[%s3170_s5 + $0x38] sm:$0xff]  }
 0x173   :  { %v2075_v61 = vadd.f32 %v2074_v60, %v2073_v57  ;;  %2170 = vmatprep.subr.bf16.mxu1 %v2315_v23 }
 0x174   :  { %v1126_v5 = vadd.f32 %v2072_v56, %v1029_v58  ;;  %v1032_v63 = vadd.f32 %v2011_v22, %v3043_v26  ;;  %2152 = vmatprep.mubr.bf16.mxu0 %v1154_v13  ;;  %2171 = vmatpush3.bf16.msra.mxu1 %v2315_v23  ;;  %v2316_v26 = vld [vmem:[%s3171_s7] sm:$0xff]   ;;  %v2322_v23 = vld [vmem:[%s3171_s7 + $0x30] sm:$0xff]  }
 0x175   :  { %2188 = vmatprep.subr.bf16.mxu0 %v2316_v26  ;;  %2220 = vmatprep.subr.bf16.mxu1 %v2316_v26 }
 0x176   :  { %v1129_v0 = vadd.f32 %v2075_v61, %v1032_v63  ;;  %v1146_v1 = vmax.f32 %v1126_v5, 0.0  ;;  %2189 = vmatpush3.bf16.msra.mxu0 %v2316_v26 }
 0x177   :  { %2190 = vmatprep.subr.bf16.mxu0 %v2317_v4 }
 0x178   :  { %v1147_v25 = vmax.f32 %v1129_v0, 0.0 }
 0x17a   :  { %v1155_v15 = vpack.c.bf16 %v1147_v25, %v1146_v1  ;;  %2191 = vmatpush3.bf16.msra.mxu0 %v2317_v4 }
 0x17b   :  { %2192 = vmatprep.subr.bf16.mxu0 %v2318_v6 }
 0x17c   :  { %2153 = vmatmul.mubr.bf16.gmra.mrb[76].mxu0 %v1155_v15 }
 0x17e   :  { %2193 = vmatpush3.bf16.msra.mxu0 %v2318_v6 }
 0x17f   :  { %2194 = vmatprep.subr.bf16.mxu0 %v2319_v7 }
 0x182   :  { %2195 = vmatpush3.bf16.msra.mxu0 %v2319_v7 }
 0x183   :  { %2196 = vmatprep.subr.bf16.mxu0 %v2320_v8 }
 0x186   :  { %2197 = vmatpush3.bf16.msra.mxu0 %v2320_v8 }
 0x187   :  { %2198 = vmatprep.subr.bf16.mxu0 %v2321_v9 }
 0x18a   :  { %2199 = vmatpush3.bf16.msra.mxu0 %v2321_v9 }
 0x18b   :  { %2200 = vmatprep.subr.bf16.mxu0 %v2322_v23 }
 0x18e   :  { %2201 = vmatpush3.bf16.msra.mxu0 %v2322_v23 }
 0x21f   :  { %v2142_v12 = vpop.f32.mrb[64].mxu0 }
 0x220   :  { %v1270_v14 = vadd.f32 %v2142_v12, %v3088_v11  ;;  %v1261_v16 = vpop.f32.mrb[65].mxu0 }
 0x221   :  { %v1262_v17 = vadd.f32 %v3088_v11, %v1261_v16  ;;  %v2143_v41 = vpop.f32.mrb[66].mxu0 }
 0x222   :  { %v1273_v31 = vadd.f32 %v2143_v41, %v3088_v11  ;;  %v1264_v18 = vpop.f32.mrb[67].mxu0  ;;  %v1326_v20 = vmax.f32 %v1270_v14, 0.0 }
 0x223   :  { %v1265_v19 = vadd.f32 %v3088_v11, %v1264_v18  ;;  %v1324_v24 = vmax.f32 %v1262_v17, 0.0 }
 0x224   :  { %v1327_v21 = vmax.f32 %v1273_v31, 0.0 }
 0x225   :  { %v1325_v33 = vmax.f32 %v1265_v19, 0.0 }
 0x226   :  { %v1341_v44 = vpack.c.bf16 %v1327_v21, %v1326_v20 }
 0x227   :  { %v1340_v27 = vpack.c.bf16 %v1325_v33, %v1324_v24 }
 0x229   :  { %2172 = vmatprep.mubr.bf16.mxu1 %v1340_v27 }
 0x22a   :  { %2173 = vmatmul.mubr.bf16.vlgmr.msra.gmra.mrb[64].mxu1 %v1341_v44 }
 0x22b   :  { %2228 = vmatpush3.bf16.msra.mxu1 %v2316_v26  ;;  %v2323_v26 = vld [vmem:[%s3171_s7 + $0x38] sm:$0xff]  }
 0x22c   :  { %2221 = vmatprep.subr.bf16.mxu1 %v2317_v4  ;;  %2202 = vmatprep.subr.bf16.mxu0 %v2323_v26 }
 0x22d   :  { %2203 = vmatpush3.bf16.msra.mxu0 %v2323_v26 }
 0x22f   :  { %v2146_v28 = vpop.f32.mrb[68].mxu0  ;;  %2229 = vmatpush3.bf16.msra.mxu1 %v2317_v4  ;;  %v1802_v4 = vld [vmem:[%s3173_s6] ss:$0 sm:$0xff] }
 0x230   :  { %v1286_v29 = vadd.f32 %v2146_v28, %v3088_v11  ;;  %v1277_v30 = vpop.f32.mrb[69].mxu0  ;;  %2222 = vmatprep.subr.bf16.mxu1 %v2318_v6 }
 0x231   :  { %v1278_v32 = vadd.f32 %v3088_v11, %v1277_v30  ;;  %v2147_v34 = vpop.f32.mrb[70].mxu0 }
 0x232   :  { %v1289_v35 = vadd.f32 %v2147_v34, %v3088_v11  ;;  %v1280_v36 = vpop.f32.mrb[71].mxu0  ;;  %v1330_v38 = vmax.f32 %v1286_v29, 0.0 }
 0x233   :  { %v1281_v37 = vadd.f32 %v3088_v11, %v1280_v36  ;;  %2230 = vmatpush3.bf16.msra.mxu1 %v2318_v6  ;;  %v1328_v49 = vmax.f32 %v1278_v32, 0.0 }
 0x234   :  { %v1331_v39 = vmax.f32 %v1289_v35, 0.0  ;;  %2223 = vmatprep.subr.bf16.mxu1 %v2319_v7 }
 0x235   :  { %v1329_v40 = vmax.f32 %v1281_v37, 0.0 }
 0x236   :  { %v1343_v42 = vpack.c.bf16 %v1331_v39, %v1330_v38 }
 0x237   :  { %v1342_v59 = vpack.c.bf16 %v1329_v40, %v1328_v49  ;;  %2231 = vmatpush3.bf16.msra.mxu1 %v2319_v7 }
 0x238   :  { %2224 = vmatprep.subr.bf16.mxu1 %v2320_v8 }
 0x239   :  { %2176 = vmatprep.mubr.bf16.mxu1 %v1342_v59 }
 0x23a   :  { %2177 = vmatmul.mubr.bf16.gmra.mrb[68].mxu1 %v1343_v42 }
 0x23b   :  { %2232 = vmatpush3.bf16.msra.mxu1 %v2320_v8 }
 0x23c   :  { %2225 = vmatprep.subr.bf16.mxu1 %v2321_v9 }
 0x23f   :  { %v2150_v43 = vpop.f32.mrb[72].mxu0  ;;  %2233 = vmatpush3.bf16.msra.mxu1 %v2321_v9 }
 0x240   :  { %v1302_v45 = vadd.f32 %v2150_v43, %v3088_v11  ;;  %v1293_v51 = vpop.f32.mrb[73].mxu0  ;;  %2226 = vmatprep.subr.bf16.mxu1 %v2322_v23 }
 0x241   :  { %v1294_v10 = vadd.f32 %v3088_v11, %v1293_v51  ;;  %v2151_v46 = vpop.f32.mrb[74].mxu0 }
 0x242   :  { %v1305_v62 = vadd.f32 %v2151_v46, %v3088_v11  ;;  %v1296_v47 = vpop.f32.mrb[75].mxu0  ;;  %v1334_v50 = vmax.f32 %v1302_v45, 0.0 }
 0x243   :  { %v1297_v48 = vadd.f32 %v3088_v11, %v1296_v47  ;;  %v1332_v53 = vmax.f32 %v1294_v10, 0.0  ;;  %2234 = vmatpush3.bf16.msra.mxu1 %v2322_v23 }
 0x244   :  { %v1335_v52 = vmax.f32 %v1305_v62, 0.0  ;;  %2227 = vmatprep.subr.bf16.mxu1 %v2323_v26 }
 0x245   :  { %v1333_v54 = vmax.f32 %v1297_v48, 0.0 }
 0x246   :  { %v1345_v55 = vpack.c.bf16 %v1335_v52, %v1334_v50 }
 0x247   :  { %v1344_v56 = vpack.c.bf16 %v1333_v54, %v1332_v53  ;;  %2235 = vmatpush3.bf16.msra.mxu1 %v2323_v26 }
 0x249   :  { %2180 = vmatprep.mubr.bf16.mxu1 %v1344_v56 }
 0x24a   :  { %2181 = vmatmul.mubr.bf16.gmra.mrb[72].mxu1 %v1345_v55 }
 0x24f   :  { %v2154_v57 = vpop.f32.mrb[76].mxu0 }
 0x250   :  { %v1318_v3 = vadd.f32 %v2154_v57, %v3088_v11  ;;  %v1309_v58 = vpop.f32.mrb[77].mxu0 }
 0x251   :  { %v1310_v22 = vadd.f32 %v3088_v11, %v1309_v58  ;;  %v2155_v60 = vpop.f32.mrb[78].mxu0 }
 0x252   :  { %v1321_v13 = vadd.f32 %v2155_v60, %v3088_v11  ;;  %v1312_v61 = vpop.f32.mrb[79].mxu0  ;;  %v1338_v63 = vmax.f32 %v1318_v3, 0.0 }
 0x253   :  { %v1313_v5 = vadd.f32 %v3088_v11, %v1312_v61  ;;  %v1336_v1 = vmax.f32 %v1310_v22, 0.0 }
 0x254   :  { %v1339_v0 = vmax.f32 %v1321_v13, 0.0 }
 0x255   :  { %v1337_v25 = vmax.f32 %v1313_v5, 0.0 }
 0x256   :  { %v1347_v15 = vpack.c.bf16 %v1339_v0, %v1338_v63  ;;  %v1811_v0 = vld [vmem:[%s3174_s8] ss:$0 sm:$0xff] }
 0x257   :  { %v1346_v2 = vpack.c.bf16 %v1337_v25, %v1336_v1 }
 0x259   :  { %2184 = vmatprep.mubr.bf16.mxu1 %v1346_v2 }
 0x25a   :  { %2185 = vmatmul.mubr.bf16.gmra.mrb[76].mxu1 %v1347_v15 }
 0x2fd   :  { %v2174_v6 = vpop.f32.mrb[64].mxu1 }
 0x2fe   :  { %v1462_v7 = vadd.f32 %v2174_v6, %v1802_v4  ;;  %v1453_v8 = vpop.f32.mrb[65].mxu1 }
 0x2ff   :  { %v1454_v9 = vadd.f32 %v1802_v4, %v1453_v8  ;;  %v2175_v11 = vpop.f32.mrb[66].mxu1 }
 0x300   :  { %v1465_v12 = vadd.f32 %v2175_v11, %v1802_v4  ;;  %v1456_v14 = vpop.f32.mrb[67].mxu1  ;;  %v1518_v17 = vmax.f32 %v1462_v7, 0.0 }
 0x301   :  { %v1457_v16 = vadd.f32 %v1802_v4, %v1456_v14  ;;  %v1516_v31 = vmax.f32 %v1454_v9, 0.0 }
 0x302   :  { %v1519_v41 = vmax.f32 %v1465_v12, 0.0 }
 0x303   :  { %v1517_v18 = vmax.f32 %v1457_v16, 0.0 }
 0x304   :  { %v1533_v19 = vpack.c.bf16 %v1519_v41, %v1518_v17 }
 0x305   :  { %v1532_v20 = vpack.c.bf16 %v1517_v18, %v1516_v31 }
 0x307   :  { %2204 = vmatprep.mubr.bf16.mxu0 %v1532_v20 }
 0x308   :  { %2205 = vmatmul.mubr.bf16.vlgmr.msra.gmra.mrb[80].mxu0 %v1533_v19 }
 0x30d   :  { %v2178_v21 = vpop.f32.mrb[68].mxu1 }
 0x30e   :  { %v1478_v24 = vadd.f32 %v2178_v21, %v1802_v4  ;;  %v1469_v33 = vpop.f32.mrb[69].mxu1 }
 0x30f   :  { %v1470_v44 = vadd.f32 %v1802_v4, %v1469_v33  ;;  %v2179_v27 = vpop.f32.mrb[70].mxu1 }
 0x310   :  { %v1481_v28 = vadd.f32 %v2179_v27, %v1802_v4  ;;  %v1472_v29 = vpop.f32.mrb[71].mxu1  ;;  %v1522_v32 = vmax.f32 %v1478_v24, 0.0 }
 0x311   :  { %v1473_v30 = vadd.f32 %v1802_v4, %v1472_v29  ;;  %v1520_v35 = vmax.f32 %v1470_v44, 0.0 }
 0x312   :  { %v1523_v34 = vmax.f32 %v1481_v28, 0.0 }
 0x313   :  { %v1521_v36 = vmax.f32 %v1473_v30, 0.0 }
 0x314   :  { %v1535_v37 = vpack.c.bf16 %v1523_v34, %v1522_v32 }
 0x315   :  { %v1534_v38 = vpack.c.bf16 %v1521_v36, %v1520_v35 }
 0x317   :  { %2208 = vmatprep.mubr.bf16.mxu0 %v1534_v38 }
 0x318   :  { %2209 = vmatmul.mubr.bf16.gmra.mrb[84].mxu0 %v1535_v37 }
 0x31d   :  { %v2182_v39 = vpop.f32.mrb[72].mxu1 }
 0x31e   :  { %v1494_v49 = vadd.f32 %v2182_v39, %v1802_v4  ;;  %v1485_v40 = vpop.f32.mrb[73].mxu1 }
 0x31f   :  { %v1486_v42 = vadd.f32 %v1802_v4, %v1485_v40  ;;  %v2183_v59 = vpop.f32.mrb[74].mxu1 }
 0x320   :  { %v1497_v43 = vadd.f32 %v2183_v59, %v1802_v4  ;;  %v1488_v45 = vpop.f32.mrb[75].mxu1  ;;  %v1526_v10 = vmax.f32 %v1494_v49, 0.0 }
 0x321   :  { %v1489_v51 = vadd.f32 %v1802_v4, %v1488_v45  ;;  %v1524_v62 = vmax.f32 %v1486_v42, 0.0 }
 0x322   :  { %v1527_v46 = vmax.f32 %v1497_v43, 0.0 }
 0x323   :  { %v1525_v47 = vmax.f32 %v1489_v51, 0.0 }
 0x324   :  { %v1537_v48 = vpack.c.bf16 %v1527_v46, %v1526_v10 }
 0x325   :  { %v1536_v50 = vpack.c.bf16 %v1525_v47, %v1524_v62 }
 0x327   :  { %2212 = vmatprep.mubr.bf16.mxu1 %v1536_v50 }
 0x328   :  { %2213 = vmatmul.mubr.bf16.vlgmr.msra.gmra.mrb[80].mxu1 %v1537_v48 }
 0x32d   :  { %v2186_v52 = vpop.f32.mrb[76].mxu1 }
 0x32e   :  { %v1510_v53 = vadd.f32 %v2186_v52, %v1802_v4  ;;  %v1501_v54 = vpop.f32.mrb[77].mxu1 }
 0x32f   :  { %v1502_v55 = vadd.f32 %v1802_v4, %v1501_v54  ;;  %v2187_v56 = vpop.f32.mrb[78].mxu1 }
 0x330   :  { %v1513_v57 = vadd.f32 %v2187_v56, %v1802_v4  ;;  %v1504_v3 = vpop.f32.mrb[79].mxu1  ;;  %v1530_v22 = vmax.f32 %v1510_v53, 0.0 }
 0x331   :  { %v1505_v58 = vadd.f32 %v1802_v4, %v1504_v3  ;;  %v1528_v13 = vmax.f32 %v1502_v55, 0.0 }
 0x332   :  { %v1531_v60 = vmax.f32 %v1513_v57, 0.0 }
 0x333   :  { %v1529_v61 = vmax.f32 %v1505_v58, 0.0 }
 0x334   :  { %v1539_v5 = vpack.c.bf16 %v1531_v60, %v1530_v22 }
 0x335   :  { %v1538_v63 = vpack.c.bf16 %v1529_v61, %v1528_v13 }
 0x337   :  { %2216 = vmatprep.mubr.bf16.mxu1 %v1538_v63 }
 0x338   :  { %2217 = vmatmul.mubr.bf16.gmra.mrb[84].mxu1 %v1539_v5 }
 0x3db   :  { %v2206_v1 = vpop.f32.mrb[80].mxu0 }
 0x3dc   :  { %v1654_v25 = vadd.f32 %v2206_v1, %v1811_v0  ;;  %v1645_v15 = vpop.f32.mrb[81].mxu0 }
 0x3dd   :  { %v1646_v2 = vadd.f32 %v1811_v0, %v1645_v15  ;;  %v2207_v23 = vpop.f32.mrb[82].mxu0 }
 0x3de   :  { %1710 = vst [vmem:[%s3175_s9 + $0x10] sm:$0xff] %v1654_v25  ;;  %v1657_v26 = vadd.f32 %v2207_v23, %v1811_v0  ;;  %v1648_v4 = vpop.f32.mrb[83].mxu0 }
 0x3df   :  { %1708 = vst [vmem:[%s3175_s9] sm:$0xff] %v1646_v2  ;;  %v1649_v6 = vadd.f32 %v1811_v0, %v1648_v4 }
 0x3e0   :  { %1711 = vst [vmem:[%s3175_s9 + $0x18] sm:$0xff] %v1657_v26 }
 0x3e1   :  { %1709 = vst [vmem:[%s3175_s9 + $0x8] sm:$0xff] %v1649_v6 }
 0x3eb   :  { %v2210_v7 = vpop.f32.mrb[84].mxu0 }
 0x3ec   :  { %v1670_v8 = vadd.f32 %v2210_v7, %v1811_v0  ;;  %v1661_v9 = vpop.f32.mrb[85].mxu0 }
 0x3ed   :  { %v1662_v11 = vadd.f32 %v1811_v0, %v1661_v9  ;;  %v2211_v12 = vpop.f32.mrb[86].mxu0 }
 0x3ee   :  { %1714 = vst [vmem:[%s3175_s9 + $0x30] sm:$0xff] %v1670_v8  ;;  %v1673_v14 = vadd.f32 %v2211_v12, %v1811_v0  ;;  %v1664_v16 = vpop.f32.mrb[87].mxu0 }
 0x3ef   :  { %1712 = vst [vmem:[%s3175_s9 + $0x20] sm:$0xff] %v1662_v11  ;;  %v1665_v17 = vadd.f32 %v1811_v0, %v1664_v16 }
 0x3f0   :  { %1715 = vst [vmem:[%s3175_s9 + $0x38] sm:$0xff] %v1673_v14 }
 0x3f1   :  { %1713 = vst [vmem:[%s3175_s9 + $0x28] sm:$0xff] %v1665_v17 }
 0x3fb   :  { %v2214_v41 = vpop.f32.mrb[80].mxu1 }
 0x3fc   :  { %v1686_v31 = vadd.f32 %v2214_v41, %v1811_v0  ;;  %v1677_v18 = vpop.f32.mrb[81].mxu1 }
 0x3fd   :  { %v1678_v19 = vadd.f32 %v1811_v0, %v1677_v18  ;;  %v2215_v20 = vpop.f32.mrb[82].mxu1 }
 0x3fe   :  { %1718 = vst [vmem:[%s3175_s9 + $0x50] sm:$0xff] %v1686_v31  ;;  %v1689_v21 = vadd.f32 %v2215_v20, %v1811_v0  ;;  %v1680_v24 = vpop.f32.mrb[83].mxu1 }
 0x3ff   :  { %1716 = vst [vmem:[%s3175_s9 + $0x40] sm:$0xff] %v1678_v19  ;;  %v1681_v33 = vadd.f32 %v1811_v0, %v1680_v24 }
 0x400   :  { %1719 = vst [vmem:[%s3175_s9 + $0x58] sm:$0xff] %v1689_v21 }
 0x401   :  { %1717 = vst [vmem:[%s3175_s9 + $0x48] sm:$0xff] %v1681_v33 }
 0x40b   :  { %v2218_v44 = vpop.f32.mrb[84].mxu1 }
 0x40c   :  { %v1702_v27 = vadd.f32 %v2218_v44, %v1811_v0  ;;  %v1693_v28 = vpop.f32.mrb[85].mxu1 }
 0x40d   :  { %v1694_v29 = vadd.f32 %v1811_v0, %v1693_v28  ;;  %v2219_v30 = vpop.f32.mrb[86].mxu1 }
 0x40e   :  { %1722 = vst [vmem:[%s3175_s9 + $0x70] sm:$0xff] %v1702_v27  ;;  %v1705_v32 = vadd.f32 %v2219_v30, %v1811_v0  ;;  %v1696_v34 = vpop.f32.mrb[87].mxu1 }
 0x40f   :  { %1720 = vst [vmem:[%s3175_s9 + $0x60] sm:$0xff] %v1694_v29  ;;  %v1697_v35 = vadd.f32 %v1811_v0, %v1696_v34 }
 0x410   :  { %1723 = vst [vmem:[%s3175_s9 + $0x78] sm:$0xff] %v1705_v32 }
 0x411   :  { %1721 = vst [vmem:[%s3175_s9 + $0x68] sm:$0xff] %v1697_v35 }

</bundles_post_ra>
